<compile_context>
chip_gen: v5e
topology: v5e:2x2
jax: 0.10.0
libtpu: 0.0.40
codegen_flags: <defaults>
</compile_context>

<pallas_src>
import functools
import math

import jax
import jax.numpy as jnp
from jax.experimental import pallas as pl
from jax.experimental.pallas import tpu as pltpu

BN_EPS = 1e-5
SSFC_EPS = 1.1920929e-07          # np.finfo(np.float32).eps
VMEM_LIMIT = 32 * 1024 * 1024     # explicit scoped-VMEM budget (safe on v5e/v6e/v7x)


def _pick_tile(p):
    """Largest lane tile (multiple of 128 preferred) dividing p."""
    for t in (1024, 512, 256, 128):
        if p % t == 0:
            return t
    return p


def _cparams(semantics):
    return pltpu.CompilerParams(dimension_semantics=semantics,
                                vmem_limit_bytes=VMEM_LIMIT)


# -----------------------------------------------------------------------------
# In-kernel helpers
# -----------------------------------------------------------------------------
def _mm(w, x):
    """(Co, Ci) @ (Ci, TP) -> (Co, TP) f32.

    For the tiny channel counts in this module the MXU is wasted; do Ci broadcast
    FMAs on the VPU instead (perf-review item).  Falls back to the MXU for large C.
    """
    co, ci = w.shape
    if ci <= 32 and co <= 32:
        acc = w[:, 0:1] * x[0:1, :]
        for c in range(1, ci):
            acc = acc + w[:, c:c + 1] * x[c:c + 1, :]
        return acc
    return jnp.dot(w, x, preferred_element_type=jnp.float32)


def _spatial_sum3(a):
    """(C, H, W) -> (C, 1, 1) sum over spatial dims (lane reduce then sublane reduce)."""
    s = jnp.sum(a, axis=2, keepdims=True)
    return jnp.sum(s, axis=1, keepdims=True)


def _spatial_sum2(a):
    """(C, H, W) -> (C, 1)."""
    return _spatial_sum3(a)[:, :, 0]


def _channel_sum(a):
    """(C, P) -> (1, P): reduce across channels (sublane-major dim), not across lanes."""
    c = a.shape[0]
    if c <= 16:
        acc = a[0:1, :]
        for i in range(1, c):
            acc = acc + a[i:i + 1, :]
        return acc
    return jnp.sum(a, axis=0, keepdims=True)


# -----------------------------------------------------------------------------
# Kernel 1a: 1x1 conv (primary branch) + per-channel sum/sumsq accumulation.
# -----------------------------------------------------------------------------
def _pw_input_kernel(x_ref, w_ref, raw_ref, stats_ref, acc_ref):
    first = (pl.program_id(0) == 0) & (pl.program_id(1) == 0)

    @pl.when(first)
    def _():
        acc_ref[...] = jnp.zeros_like(acc_ref)

    y = _mm(w_ref[...], x_ref[0])                                # (Co, TP)
    raw_ref[0] = y
    acc_ref[:, 0:1] += jnp.sum(y, axis=1, keepdims=True)
    acc_ref[:, 1:2] += jnp.sum(y * y, axis=1, keepdims=True)
    stats_ref[...] = acc_ref[...]


def pw_conv_stats(x_flat, w):
    """x_flat: (B, Cin, P); w: (Co, Cin) -> raw (B, Co, P), stats (Co, 2)."""
    B, Cin, P = x_flat.shape
    Co = w.shape[0]
    TP = _pick_tile(P)
    return pl.pallas_call(
        _pw_input_kernel,
        out_shape=(jax.ShapeDtypeStruct((B, Co, P), jnp.float32),
                   jax.ShapeDtypeStruct((Co, 2), jnp.float32)),
        grid=(B, P // TP),
        in_specs=[
            pl.BlockSpec((1, Cin, TP), lambda b, t: (b, 0, t)),
            pl.BlockSpec((Co, Cin), lambda b, t: (0, 0)),
        ],
        out_specs=(
            pl.BlockSpec((1, Co, TP), lambda b, t: (b, 0, t)),
            pl.BlockSpec((Co, 2), lambda b, t: (0, 0)),
        ),
        scratch_shapes=[pltpu.VMEM((Co, 2), jnp.float32)],
        compiler_params=_cparams(("arbitrary", "arbitrary")),
    )(x_flat, w)


# -----------------------------------------------------------------------------
# Kernel 1b: fused [BN+ReLU of previous MSD output (two channel halves)] + 1x1 conv.
# The ghost-module concat of the previous block is never materialized in HBM.
# -----------------------------------------------------------------------------
def _pw_halves_kernel(a_ref, b_ref, sc_ref, sh_ref, w_ref, raw_ref, stats_ref,
                      acc_ref, *, ch):
    first = (pl.program_id(0) == 0) & (pl.program_id(1) == 0)

    @pl.when(first)
    def _():
        acc_ref[...] = jnp.zeros_like(acc_ref)

    sc = sc_ref[...]                                             # (Cprev, 1)
    sh = sh_ref[...]
    na = jnp.maximum(a_ref[0] * sc[0:ch] + sh[0:ch], 0.0)        # (ch, TP)
    nb = jnp.maximum(b_ref[0] * sc[ch:] + sh[ch:], 0.0)
    w = w_ref[...]                                               # (Co, Cprev)
    y = _mm(w[:, 0:ch], na) + _mm(w[:, ch:], nb)                 # (Co, TP)
    raw_ref[0] = y
    acc_ref[:, 0:1] += jnp.sum(y, axis=1, keepdims=True)
    acc_ref[:, 1:2] += jnp.sum(y * y, axis=1, keepdims=True)
    stats_ref[...] = acc_ref[...]


def pw_conv_halves_stats(xa, xb, scale, shift, w):
    """xa/xb: (B, Ch, P) halves of previous MSD output; scale/shift: (2*Ch,); w: (Co, 2*Ch)."""
    B, Ch, P = xa.shape
    Cprev = scale.shape[0]
    Co = w.shape[0]
    TP = _pick_tile(P)
    kern = functools.partial(_pw_halves_kernel, ch=Ch)
    return pl.pallas_call(
        kern,
        out_shape=(jax.ShapeDtypeStruct((B, Co, P), jnp.float32),
                   jax.ShapeDtypeStruct((Co, 2), jnp.float32)),
        grid=(B, P // TP),
        in_specs=[
            pl.BlockSpec((1, Ch, TP), lambda b, t: (b, 0, t)),
            pl.BlockSpec((1, Ch, TP), lambda b, t: (b, 0, t)),
            pl.BlockSpec((Cprev, 1), lambda b, t: (0, 0)),
            pl.BlockSpec((Cprev, 1), lambda b, t: (0, 0)),
            pl.BlockSpec((Co, Cprev), lambda b, t: (0, 0)),
        ],
        out_specs=(
            pl.BlockSpec((1, Co, TP), lambda b, t: (b, 0, t)),
            pl.BlockSpec((Co, 2), lambda b, t: (0, 0)),
        ),
        scratch_shapes=[pltpu.VMEM((Co, 2), jnp.float32)],
        compiler_params=_cparams(("arbitrary", "arbitrary")),
    )(xa, xb, scale.reshape(Cprev, 1), shift.reshape(Cprev, 1), w)


# -----------------------------------------------------------------------------
# Kernel 2: fused BN1+ReLU + dilated 3x3 depthwise conv (padding done in VMEM scratch,
# no jnp.pad HBM pass).  Emits x1 (final primary half), raw cheap conv, and stats for
# both (x1 feeds the outer BN, raw feeds BN2).
# -----------------------------------------------------------------------------
def _dw_kernel(raw1_ref, sc_ref, sh_ref, w_ref, x1_ref, raw2_ref, stats_ref,
               xp_ref, acc_ref, *, H, W, d):
    b = pl.program_id(0)

    @pl.when(b == 0)
    def _():
        acc_ref[...] = jnp.zeros_like(acc_ref)
        xp_ref[...] = jnp.zeros_like(xp_ref)      # zero the padded scratch (border) once

    x1 = jnp.maximum(raw1_ref[0] * sc_ref[...] + sh_ref[...], 0.0)   # (C, H, W)
    x1_ref[0] = x1
    xp_ref[:, d:d + H, d:d + W] = x1              # interior overwritten every image
    xp = xp_ref[...]                              # (C, H+2d, W+2d)
    w = w_ref[...]                                # (C, 3, 3)

    conv = xp[:, 0:H, 0:W] * w[:, 0:1, 0:1]
    for di in range(3):                           # fully unrolled 9-tap depthwise MAC
        for dj in range(3):
            if di == 0 and dj == 0:
                continue
            conv = conv + (xp[:, di * d:di * d + H, dj * d:dj * d + W]
                           * w[:, di:di + 1, dj:dj + 1])
    raw2_ref[0] = conv

    acc_ref[:, 0:1] += _spatial_sum2(x1)
    acc_ref[:, 1:2] += _spatial_sum2(x1 * x1)
    acc_ref[:, 2:3] += _spatial_sum2(conv)
    acc_ref[:, 3:4] += _spatial_sum2(conv * conv)
    stats_ref[...] = acc_ref[...]


def dw_conv_block(raw1, scale, shift, w_dw, dilation):
    """raw1: (B, C, H, W) pre-BN primary conv; returns x1, raw_cheap, stats (C, 4)."""
    B, C, H, W = raw1.shape
    d = dilation
    kern = functools.partial(_dw_kernel, H=H, W=W, d=d)
    return pl.pallas_call(
        kern,
        out_shape=(jax.ShapeDtypeStruct((B, C, H, W), jnp.float32),
                   jax.ShapeDtypeStruct((B, C, H, W), jnp.float32),
                   jax.ShapeDtypeStruct((C, 4), jnp.float32)),
        grid=(B,),
        in_specs=[
            pl.BlockSpec((1, C, H, W), lambda b: (b, 0, 0, 0)),
            pl.BlockSpec((C, 1, 1), lambda b: (0, 0, 0)),
            pl.BlockSpec((C, 1, 1), lambda b: (0, 0, 0)),
            pl.BlockSpec((C, 3, 3), lambda b: (0, 0, 0)),
        ],
        out_specs=(
            pl.BlockSpec((1, C, H, W), lambda b: (b, 0, 0, 0)),
            pl.BlockSpec((1, C, H, W), lambda b: (b, 0, 0, 0)),
            pl.BlockSpec((C, 4), lambda b: (0, 0)),
        ),
        scratch_shapes=[pltpu.VMEM((C, H + 2 * d, W + 2 * d), jnp.float32),
                        pltpu.VMEM((C, 4), jnp.float32)],
        compiler_params=_cparams(("arbitrary",)),
    )(raw1, scale.reshape(C, 1, 1), shift.reshape(C, 1, 1), w_dw)


# -----------------------------------------------------------------------------
# Kernel 3: fused BN2+ReLU + SSFC spatial-spectral attention, lane-dense (C, H*W) slabs.
# -----------------------------------------------------------------------------
def _ssfc_kernel(raw2_ref, sc_ref, sh_ref, wp_ref, bp_ref, x2_ref, stats_ref,
                 acc_ref, *, eps, inv_hw):
    b = pl.program_id(0)

    @pl.when(b == 0)
    def _():
        acc_ref[...] = jnp.zeros_like(acc_ref)

    t = jnp.maximum(raw2_ref[0] * sc_ref[...] + sh_ref[...], 0.0)    # (C, P)
    q = jnp.sum(t, axis=1, keepdims=True) * inv_hw                   # (C, 1) spectral branch
    k = _channel_sum(t * wp_ref[...]) + bp_ref[...]                  # (1, P) spatial branch
    sq = (k - q) ** 2                                                # (C, P)
    sigma = jnp.sum(sq, axis=1, keepdims=True) * inv_hw              # (C, 1)
    att = sq / (2.0 * sigma + eps) + 0.5
    x2 = t * jax.nn.sigmoid(att)
    x2_ref[0] = x2
    acc_ref[:, 0:1] += jnp.sum(x2, axis=1, keepdims=True)
    acc_ref[:, 1:2] += jnp.sum(x2 * x2, axis=1, keepdims=True)
    stats_ref[...] = acc_ref[...]


def ssfc_block(raw2_flat, scale, shift, w_proj, b_proj):
    """raw2_flat: (B, C, P) pre-BN cheap conv; returns x2 (B, C, P) and stats (C, 2)."""
    B, C, P = raw2_flat.shape
    kern = functools.partial(_ssfc_kernel, eps=SSFC_EPS, inv_hw=1.0 / P)
    return pl.pallas_call(
        kern,
        out_shape=(jax.ShapeDtypeStruct((B, C, P), jnp.float32),
                   jax.ShapeDtypeStruct((C, 2), jnp.float32)),
        grid=(B,),
        in_specs=[
            pl.BlockSpec((1, C, P), lambda b: (b, 0, 0)),
            pl.BlockSpec((C, 1), lambda b: (0, 0)),
            pl.BlockSpec((C, 1), lambda b: (0, 0)),
            pl.BlockSpec((C, 1), lambda b: (0, 0)),
            pl.BlockSpec((1, 1), lambda b: (0, 0)),
        ],
        out_specs=(
            pl.BlockSpec((1, C, P), lambda b: (b, 0, 0)),
            pl.BlockSpec((C, 2), lambda b: (0, 0)),
        ),
        scratch_shapes=[pltpu.VMEM((C, 2), jnp.float32)],
        compiler_params=_cparams(("arbitrary",)),
    )(raw2_flat, scale.reshape(C, 1), shift.reshape(C, 1),
      w_proj.reshape(C, 1), b_proj.reshape(1, 1))


# -----------------------------------------------------------------------------
# Kernel 4: final BN+ReLU of DoubleConv, writing both channel halves into disjoint
# channel ranges of ONE lane-dense output (no concat pass).  Fully parallel grid.
# -----------------------------------------------------------------------------
def _final_kernel(a_ref, b_ref, sc_ref, sh_ref, o_ref, *, ch):
    sc = sc_ref[...]
    sh = sh_ref[...]
    ya = jnp.maximum(a_ref[0] * sc[0:ch] + sh[0:ch], 0.0)
    yb = jnp.maximum(b_ref[0] * sc[ch:] + sh[ch:], 0.0)
    o_ref[0, 0:ch, :] = ya
    o_ref[0, ch:, :] = yb


def final_bn_relu(xa, xb, scale, shift):
    B, Ch, P = xa.shape
    Cout = scale.shape[0]
    TP = _pick_tile(P)
    kern = functools.partial(_final_kernel, ch=Ch)
    return pl.pallas_call(
        kern,
        out_shape=jax.ShapeDtypeStruct((B, Cout, P), jnp.float32),
        grid=(B, P // TP),
        in_specs=[
            pl.BlockSpec((1, Ch, TP), lambda b, t: (b, 0, t)),
            pl.BlockSpec((1, Ch, TP), lambda b, t: (b, 0, t)),
            pl.BlockSpec((Cout, 1), lambda b, t: (0, 0)),
            pl.BlockSpec((Cout, 1), lambda b, t: (0, 0)),
        ],
        out_specs=pl.BlockSpec((1, Cout, TP), lambda b, t: (b, 0, t)),
        compiler_params=_cparams(("parallel", "parallel")),
    )(xa, xb, scale.reshape(Cout, 1), shift.reshape(Cout, 1))


# -----------------------------------------------------------------------------
# Glue: turn accumulated (sum, sumsq) into training-mode BN affine (scale, shift).
# Operates on (C,)-sized parameter vectors only (negligible work outside Pallas).
# -----------------------------------------------------------------------------
def _bn_affine(stats, count, gamma, beta):
    mean = stats[:, 0] / count
    var = jnp.maximum(stats[:, 1] / count - mean * mean, 0.0)   # biased var, as PyTorch
    scale = gamma * jax.lax.rsqrt(var + BN_EPS)
    return scale, beta - mean * scale


# -----------------------------------------------------------------------------
# MSDConv_SSFC block: 3 pallas_calls, deferred-BN chaining, halves kept separate.
# -----------------------------------------------------------------------------
def _msd_block(p, spatial, dilation=3, x_flat=None, halves=None, prenorm=None):
    H, W = spatial
    if halves is None:
        raw1, st1 = pw_conv_stats(x_flat, p["w_primary"])
    else:
        xa, xb = halves
        sc, sh = prenorm
        raw1, st1 = pw_conv_halves_stats(xa, xb, sc, sh, p["w_primary"])

    B, Ci2, P = raw1.shape
    count = B * P

    sc1, sh1 = _bn_affine(st1, count, p["bn1_gamma"], p["bn1_beta"])
    x1, raw2, st_dw = dw_conv_block(raw1.reshape(B, Ci2, H, W), sc1, sh1,
                                    p["w_dw"], dilation)

    sc2, sh2 = _bn_affine(st_dw[:, 2:4], count, p["bn2_gamma"], p["bn2_beta"])
    x2, st_x2 = ssfc_block(raw2.reshape(B, Ci2, P), sc2, sh2,
                           p["w_proj"], p["b_proj"])

    # Stats of the (logical) concat [primary, cheap] for the following BatchNorm.
    stats_out = jnp.concatenate([st_dw[:, 0:2], st_x2], axis=0)     # (out_ch, 2)
    return (x1.reshape(B, Ci2, P), x2), stats_out


def double_conv(x_nchw, params, dilation=3):
    """DoubleConv forward, NCHW in / NCHW out (training-mode batch statistics)."""
    x = x_nchw.astype(jnp.float32)
    B, Cin, H, W = x.shape
    P = H * W
    count = B * P

    halves1, st_a = _msd_block(params["msd1"], (H, W), dilation,
                               x_flat=x.reshape(B, Cin, P))
    sca, sha = _bn_affine(st_a, count, params["bn_a_gamma"], params["bn_a_beta"])

    halves2, st_b = _msd_block(params["msd2"], (H, W), dilation,
                               halves=halves1, prenorm=(sca, sha))
    scb, shb = _bn_affine(st_b, count, params["bn_b_gamma"], params["bn_b_beta"])

    y = final_bn_relu(halves2[0], halves2[1], scb, shb)             # (B, out_ch, P)
    return y.reshape(B, -1, H, W)


# -----------------------------------------------------------------------------
# Deterministic synthetic parameter initialization (not a checkpoint load).
# -----------------------------------------------------------------------------
def init_double_conv_params(key, in_ch, out_ch):
    assert out_ch % 2 == 0, "MSDConv_SSFC reconstruction (ratio=2) assumes even out_ch"

    def init_msd(k, cin, cout):
        ci2 = cout // 2
        ks = jax.random.split(k, 8)
        return dict(
            # PyTorch primary weight (ci2, cin, 1, 1) -> ours (ci2, cin)
            w_primary=jax.random.normal(ks[0], (ci2, cin), jnp.float32) / math.sqrt(cin),
            bn1_gamma=1.0 + 0.1 * jax.random.normal(ks[1], (ci2,), jnp.float32),
            bn1_beta=0.1 * jax.random.normal(ks[2], (ci2,), jnp.float32),
            # PyTorch depthwise weight (ci2, 1, 3, 3) -> ours (ci2, 3, 3)
            w_dw=jax.random.normal(ks[3], (ci2, 3, 3), jnp.float32) / 3.0,
            bn2_gamma=1.0 + 0.1 * jax.random.normal(ks[4], (ci2,), jnp.float32),
            bn2_beta=0.1 * jax.random.normal(ks[5], (ci2,), jnp.float32),
            # SSFC 1x1 projection: PyTorch (1, ci2, 1, 1) weight + (1,) bias
            w_proj=jax.random.normal(ks[6], (ci2,), jnp.float32) / math.sqrt(ci2),
            b_proj=0.1 * jax.random.normal(ks[7], (1,), jnp.float32),
        )

    k1, k2, k3, k4, k5, k6 = jax.random.split(key, 6)
    return dict(
        msd1=init_msd(k1, in_ch, out_ch),
        bn_a_gamma=1.0 + 0.1 * jax.random.normal(k2, (out_ch,), jnp.float32),
        bn_a_beta=0.1 * jax.random.normal(k3, (out_ch,), jnp.float32),
        msd2=init_msd(k4, out_ch, out_ch),
        bn_b_gamma=1.0 + 0.1 * jax.random.normal(k5, (out_ch,), jnp.float32),
        bn_b_beta=0.1 * jax.random.normal(k6, (out_ch,), jnp.float32),
    )


if __name__ == "__main__":
    key = jax.random.PRNGKey(0)
    kx, kp = jax.random.split(key)

    B, in_ch, H, W = 2, 4, 16, 16
    out_ch = 8

    x = jax.random.normal(kx, (B, in_ch, H, W), jnp.float32)    # NCHW, like PyTorch
    params = init_double_conv_params(kp, in_ch, out_ch)

    y = jax.jit(double_conv)(x, params)
    y = jax.block_until_ready(y)

    assert y.shape == (B, out_ch, H, W), y.shape
    assert bool(jnp.all(jnp.isfinite(y)))
    print("KERNEL_OK")
</pallas_src>

<mosaic_0001>
module attributes {stable_mosaic.version = 11 : i64} {
  func.func @_pw_input_kernel(%arg0: i32, %arg1: i32, %arg2: memref<1x4x256xf32, #tpu.memory_space<vmem>>, %arg3: memref<4x4xf32, #tpu.memory_space<vmem>>, %arg4: memref<1x4x256xf32, #tpu.memory_space<vmem>>, %arg5: memref<4x2xf32, #tpu.memory_space<vmem>>, %arg6: memref<4x2xf32, #tpu.memory_space<vmem>>) attributes {dimension_semantics = [#tpu.dimension_semantics<arbitrary>, #tpu.dimension_semantics<arbitrary>], iteration_bounds = array<i64: 2, 1>, scalar_prefetch = 0 : i64, scratch_operands = 1 : i64, tpu.core_type = #tpu.core_type<tc>, window_params = [{transform_indices = @transform_0, window_bounds = array<i64: 1, 4, 256>}, {pipeline_mode = #tpu.pipeline_mode<synchronous>, transform_indices = @transform_1, window_bounds = array<i64: 4, 4>}, {transform_indices = @transform_2, window_bounds = array<i64: 1, 4, 256>}, {pipeline_mode = #tpu.pipeline_mode<synchronous>, transform_indices = @transform_3, window_bounds = array<i64: 4, 2>}]} {
    %c0_i32 = arith.constant 0 : i32
    %0 = arith.cmpi eq, %arg0, %c0_i32 : i32
    %c0_i32_0 = arith.constant 0 : i32
    %1 = arith.cmpi eq, %arg1, %c0_i32_0 : i32
    %2 = arith.andi %0, %1 : i1
    %3 = arith.extui %2 : i1 to i32
    %c0_i32_1 = arith.constant 0 : i32
    %4 = arith.cmpi ne, %3, %c0_i32_1 : i32
    scf.if %4 {
      %cst_21 = arith.constant 0.000000e+00 : f32
      %47 = vector.broadcast %cst_21 : f32 to vector<4x2xf32>
      %c0_22 = arith.constant 0 : index
      %c0_23 = arith.constant 0 : index
      %48 = vector.load %arg6[%c0_22, %c0_23] : memref<4x2xf32, #tpu.memory_space<vmem>>, vector<4x2xf32>
      tpu.vector_store %arg6[%c0_22, %c0_23], %47 {strides = array<i32>} : memref<4x2xf32, #tpu.memory_space<vmem>>, vector<4x2xf32>,
    } else {
    }
    %c0 = arith.constant 0 : index
    %c0_2 = arith.constant 0 : index
    %5 = vector.load %arg3[%c0, %c0_2] : memref<4x4xf32, #tpu.memory_space<vmem>>, vector<4x4xf32>
    %c0_3 = arith.constant 0 : index
    %c0_4 = arith.constant 0 : index
    %c0_5 = arith.constant 0 : index
    %6 = vector.load %arg2[%c0_3, %c0_4, %c0_5] : memref<1x4x256xf32, #tpu.memory_space<vmem>>, vector<1x4x256xf32>
    %7 = vector.shape_cast %6 : vector<1x4x256xf32> to vector<4x256xf32>
    %8 = vector.extract_strided_slice %5 {offsets = [0, 0], sizes = [4, 1], strides = [1, 1]} : vector<4x4xf32> to vector<4x1xf32>
    %9 = vector.extract_strided_slice %7 {offsets = [0, 0], sizes = [1, 256], strides = [1, 1]} : vector<4x256xf32> to vector<1x256xf32>
    %10 = vector.broadcast %8 : vector<4x1xf32> to vector<4x256xf32>
    %11 = vector.broadcast %9 : vector<1x256xf32> to vector<4x256xf32>
    %12 = arith.mulf %10, %11 : vector<4x256xf32>
    %13 = vector.extract_strided_slice %5 {offsets = [0, 1], sizes = [4, 1], strides = [1, 1]} : vector<4x4xf32> to vector<4x1xf32>
    %14 = vector.extract_strided_slice %7 {offsets = [1, 0], sizes = [1, 256], strides = [1, 1]} : vector<4x256xf32> to vector<1x256xf32>
    %15 = vector.broadcast %13 : vector<4x1xf32> to vector<4x256xf32>
    %16 = vector.broadcast %14 : vector<1x256xf32> to vector<4x256xf32>
    %17 = arith.mulf %15, %16 : vector<4x256xf32>
    %18 = arith.addf %12, %17 : vector<4x256xf32>
    %19 = vector.extract_strided_slice %5 {offsets = [0, 2], sizes = [4, 1], strides = [1, 1]} : vector<4x4xf32> to vector<4x1xf32>
    %20 = vector.extract_strided_slice %7 {offsets = [2, 0], sizes = [1, 256], strides = [1, 1]} : vector<4x256xf32> to vector<1x256xf32>
    %21 = vector.broadcast %19 : vector<4x1xf32> to vector<4x256xf32>
    %22 = vector.broadcast %20 : vector<1x256xf32> to vector<4x256xf32>
    %23 = arith.mulf %21, %22 : vector<4x256xf32>
    %24 = arith.addf %18, %23 : vector<4x256xf32>
    %25 = vector.extract_strided_slice %5 {offsets = [0, 3], sizes = [4, 1], strides = [1, 1]} : vector<4x4xf32> to vector<4x1xf32>
    %26 = vector.extract_strided_slice %7 {offsets = [3, 0], sizes = [1, 256], strides = [1, 1]} : vector<4x256xf32> to vector<1x256xf32>
    %27 = vector.broadcast %25 : vector<4x1xf32> to vector<4x256xf32>
    %28 = vector.broadcast %26 : vector<1x256xf32> to vector<4x256xf32>
    %29 = arith.mulf %27, %28 : vector<4x256xf32>
    %30 = arith.addf %24, %29 : vector<4x256xf32>
    %c0_6 = arith.constant 0 : index
    %c0_7 = arith.constant 0 : index
    %c0_8 = arith.constant 0 : index
    %31 = vector.load %arg4[%c0_6, %c0_7, %c0_8] : memref<1x4x256xf32, #tpu.memory_space<vmem>>, vector<1x4x256xf32>
    %32 = vector.shape_cast %31 : vector<1x4x256xf32> to vector<4x256xf32>
    %33 = vector.shape_cast %30 : vector<4x256xf32> to vector<1x4x256xf32>
    tpu.vector_store %arg4[%c0_6, %c0_7, %c0_8], %33 {strides = array<i32>} : memref<1x4x256xf32, #tpu.memory_space<vmem>>, vector<1x4x256xf32>,
    %c0_9 = arith.constant 0 : index
    %c0_10 = arith.constant 0 : index
    %34 = vector.load %arg6[%c0_9, %c0_10] : memref<4x2xf32, #tpu.memory_space<vmem>>, vector<4x1xf32>
    %cst = arith.constant dense<0.000000e+00> : vector<4xf32>
    %35 = vector.multi_reduction <add>, %30, %cst [1] : vector<4x256xf32> to vector<4xf32>
    %36 = vector.shape_cast %35 : vector<4xf32> to vector<4x1xf32>
    %37 = arith.addf %34, %36 : vector<4x1xf32>
    %c0_11 = arith.constant 0 : index
    %c0_12 = arith.constant 0 : index
    %38 = vector.load %arg6[%c0_11, %c0_12] : memref<4x2xf32, #tpu.memory_space<vmem>>, vector<4x1xf32>
    tpu.vector_store %arg6[%c0_11, %c0_12], %37 {strides = array<i32>} : memref<4x2xf32, #tpu.memory_space<vmem>>, vector<4x1xf32>,
    %c0_13 = arith.constant 0 : index
    %c1 = arith.constant 1 : index
    %39 = vector.load %arg6[%c0_13, %c1] : memref<4x2xf32, #tpu.memory_space<vmem>>, vector<4x1xf32>
    %40 = arith.mulf %30, %30 : vector<4x256xf32>
    %cst_14 = arith.constant dense<0.000000e+00> : vector<4xf32>
    %41 = vector.multi_reduction <add>, %40, %cst_14 [1] : vector<4x256xf32> to vector<4xf32>
    %42 = vector.shape_cast %41 : vector<4xf32> to vector<4x1xf32>
    %43 = arith.addf %39, %42 : vector<4x1xf32>
    %c0_15 = arith.constant 0 : index
    %c1_16 = arith.constant 1 : index
    %44 = vector.load %arg6[%c0_15, %c1_16] : memref<4x2xf32, #tpu.memory_space<vmem>>, vector<4x1xf32>
    tpu.vector_store %arg6[%c0_15, %c1_16], %43 {strides = array<i32>} : memref<4x2xf32, #tpu.memory_space<vmem>>, vector<4x1xf32>,
    %c0_17 = arith.constant 0 : index
    %c0_18 = arith.constant 0 : index
    %45 = vector.load %arg6[%c0_17, %c0_18] : memref<4x2xf32, #tpu.memory_space<vmem>>, vector<4x2xf32>
    %c0_19 = arith.constant 0 : index
    %c0_20 = arith.constant 0 : index
    %46 = vector.load %arg5[%c0_19, %c0_20] : memref<4x2xf32, #tpu.memory_space<vmem>>, vector<4x2xf32>
    tpu.vector_store %arg5[%c0_19, %c0_20], %45 {strides = array<i32>} : memref<4x2xf32, #tpu.memory_space<vmem>>, vector<4x2xf32>,
    return
  }
  func.func @transform_0(%arg0: i32, %arg1: i32) -> (i32, i32, i32) {
    %c0_i32 = arith.constant 0 : i32
    %c0_i32_0 = arith.constant 0 : i32
    return %arg0, %c0_i32, %arg1 : i32, i32, i32
  }
  func.func @transform_1(%arg0: i32, %arg1: i32) -> (i32, i32) {
    %c0_i32 = arith.constant 0 : i32
    %c0_i32_0 = arith.constant 0 : i32
    %c0_i32_1 = arith.constant 0 : i32
    return %c0_i32, %c0_i32_0 : i32, i32
  }
  func.func @transform_2(%arg0: i32, %arg1: i32) -> (i32, i32, i32) {
    %c0_i32 = arith.constant 0 : i32
    %c0_i32_0 = arith.constant 0 : i32
    return %arg0, %c0_i32, %arg1 : i32, i32, i32
  }
  func.func @transform_3(%arg0: i32, %arg1: i32) -> (i32, i32) {
    %c0_i32 = arith.constant 0 : i32
    %c0_i32_0 = arith.constant 0 : i32
    %c0_i32_1 = arith.constant 0 : i32
    return %c0_i32, %c0_i32_0 : i32, i32
  }
}

module attributes {stable_mosaic.version = 11 : i64} {
  func.func @_dw_kernel(%arg0: i32, %arg1: memref<1x4x16x16xf32, #tpu.memory_space<vmem>>, %arg2: memref<4x1x1xf32, #tpu.memory_space<vmem>>, %arg3: memref<4x1x1xf32, #tpu.memory_space<vmem>>, %arg4: memref<4x3x3xf32, #tpu.memory_space<vmem>>, %arg5: memref<1x4x16x16xf32, #tpu.memory_space<vmem>>, %arg6: memref<1x4x16x16xf32, #tpu.memory_space<vmem>>, %arg7: memref<4x4xf32, #tpu.memory_space<vmem>>, %arg8: memref<4x22x22xf32, #tpu.memory_space<vmem>>, %arg9: memref<4x4xf32, #tpu.memory_space<vmem>>) attributes {dimension_semantics = [#tpu.dimension_semantics<arbitrary>], iteration_bounds = array<i64: 2>, scalar_prefetch = 0 : i64, scratch_operands = 2 : i64, tpu.core_type = #tpu.core_type<tc>, window_params = [{transform_indices = @transform_0, window_bounds = array<i64: 1, 4, 16, 16>}, {pipeline_mode = #tpu.pipeline_mode<synchronous>, transform_indices = @transform_1, window_bounds = array<i64: 4, 1, 1>}, {pipeline_mode = #tpu.pipeline_mode<synchronous>, transform_indices = @transform_2, window_bounds = array<i64: 4, 1, 1>}, {pipeline_mode = #tpu.pipeline_mode<synchronous>, transform_indices = @transform_3, window_bounds = array<i64: 4, 3, 3>}, {transform_indices = @transform_4, window_bounds = array<i64: 1, 4, 16, 16>}, {transform_indices = @transform_5, window_bounds = array<i64: 1, 4, 16, 16>}, {pipeline_mode = #tpu.pipeline_mode<synchronous>, transform_indices = @transform_6, window_bounds = array<i64: 4, 4>}]} {
    %c0_i32 = arith.constant 0 : i32
    %0 = arith.cmpi eq, %arg0, %c0_i32 : i32
    %1 = arith.extui %0 : i1 to i32
    %c0_i32_0 = arith.constant 0 : i32
    %2 = arith.cmpi ne, %1, %c0_i32_0 : i32
    scf.if %2 {
      %cst_52 = arith.constant 0.000000e+00 : f32
      %102 = vector.broadcast %cst_52 : f32 to vector<4x4xf32>
      %c0_53 = arith.constant 0 : index
      %c0_54 = arith.constant 0 : index
      %103 = vector.load %arg9[%c0_53, %c0_54] : memref<4x4xf32, #tpu.memory_space<vmem>>, vector<4x4xf32>
      tpu.vector_store %arg9[%c0_53, %c0_54], %102 {strides = array<i32>} : memref<4x4xf32, #tpu.memory_space<vmem>>, vector<4x4xf32>,
      %cst_55 = arith.constant 0.000000e+00 : f32
      %104 = vector.broadcast %cst_55 : f32 to vector<4x22x22xf32>
      %c0_56 = arith.constant 0 : index
      %c0_57 = arith.constant 0 : index
      %c0_58 = arith.constant 0 : index
      %105 = vector.load %arg8[%c0_56, %c0_57, %c0_58] : memref<4x22x22xf32, #tpu.memory_space<vmem>>, vector<4x22x22xf32>
      tpu.vector_store %arg8[%c0_56, %c0_57, %c0_58], %104 {strides = array<i32>} : memref<4x22x22xf32, #tpu.memory_space<vmem>>, vector<4x22x22xf32>,
    } else {
    }
    %c0 = arith.constant 0 : index
    %c0_1 = arith.constant 0 : index
    %c0_2 = arith.constant 0 : index
    %c0_3 = arith.constant 0 : index
    %3 = vector.load %arg1[%c0, %c0_1, %c0_2, %c0_3] : memref<1x4x16x16xf32, #tpu.memory_space<vmem>>, vector<1x4x16x16xf32>
    %4 = vector.shape_cast %3 : vector<1x4x16x16xf32> to vector<4x16x16xf32>
    %c0_4 = arith.constant 0 : index
    %c0_5 = arith.constant 0 : index
    %c0_6 = arith.constant 0 : index
    %5 = vector.load %arg2[%c0_4, %c0_5, %c0_6] : memref<4x1x1xf32, #tpu.memory_space<vmem>>, vector<4x1x1xf32>
    %6 = vector.broadcast %5 : vector<4x1x1xf32> to vector<4x16x16xf32>
    %7 = arith.mulf %4, %6 : vector<4x16x16xf32>
    %c0_7 = arith.constant 0 : index
    %c0_8 = arith.constant 0 : index
    %c0_9 = arith.constant 0 : index
    %8 = vector.load %arg3[%c0_7, %c0_8, %c0_9] : memref<4x1x1xf32, #tpu.memory_space<vmem>>, vector<4x1x1xf32>
    %9 = vector.broadcast %8 : vector<4x1x1xf32> to vector<4x16x16xf32>
    %10 = arith.addf %7, %9 : vector<4x16x16xf32>
    %cst = arith.constant 0.000000e+00 : f32
    %11 = vector.broadcast %cst : f32 to vector<4x16x16xf32>
    %12 = arith.maximumf %10, %11 : vector<4x16x16xf32>
    %c0_10 = arith.constant 0 : index
    %c0_11 = arith.constant 0 : index
    %c0_12 = arith.constant 0 : index
    %c0_13 = arith.constant 0 : index
    %13 = vector.load %arg5[%c0_10, %c0_11, %c0_12, %c0_13] : memref<1x4x16x16xf32, #tpu.memory_space<vmem>>, vector<1x4x16x16xf32>
    %14 = vector.shape_cast %13 : vector<1x4x16x16xf32> to vector<4x16x16xf32>
    %15 = vector.shape_cast %12 : vector<4x16x16xf32> to vector<1x4x16x16xf32>
    tpu.vector_store %arg5[%c0_10, %c0_11, %c0_12, %c0_13], %15 {strides = array<i32>} : memref<1x4x16x16xf32, #tpu.memory_space<vmem>>, vector<1x4x16x16xf32>,
    %c0_14 = arith.constant 0 : index
    %c3 = arith.constant 3 : index
    %c3_15 = arith.constant 3 : index
    %16 = vector.load %arg8[%c0_14, %c3, %c3_15] : memref<4x22x22xf32, #tpu.memory_space<vmem>>, vector<4x16x16xf32>
    tpu.vector_store %arg8[%c0_14, %c3, %c3_15], %12 {strides = array<i32>} : memref<4x22x22xf32, #tpu.memory_space<vmem>>, vector<4x16x16xf32>,
    %c0_16 = arith.constant 0 : index
    %c0_17 = arith.constant 0 : index
    %c0_18 = arith.constant 0 : index
    %17 = vector.load %arg8[%c0_16, %c0_17, %c0_18] : memref<4x22x22xf32, #tpu.memory_space<vmem>>, vector<4x22x22xf32>
    %c0_19 = arith.constant 0 : index
    %c0_20 = arith.constant 0 : index
    %c0_21 = arith.constant 0 : index
    %18 = vector.load %arg4[%c0_19, %c0_20, %c0_21] : memref<4x3x3xf32, #tpu.memory_space<vmem>>, vector<4x3x3xf32>
    %19 = vector.extract_strided_slice %17 {offsets = [0, 0, 0], sizes = [4, 16, 16], strides = [1, 1, 1]} : vector<4x22x22xf32> to vector<4x16x16xf32>
    %20 = vector.extract_strided_slice %18 {offsets = [0, 0, 0], sizes = [4, 1, 1], strides = [1, 1, 1]} : vector<4x3x3xf32> to vector<4x1x1xf32>
    %21 = vector.broadcast %20 : vector<4x1x1xf32> to vector<4x16x16xf32>
    %22 = arith.mulf %19, %21 : vector<4x16x16xf32>
    %23 = vector.extract_strided_slice %17 {offsets = [0, 0, 3], sizes = [4, 16, 16], strides = [1, 1, 1]} : vector<4x22x22xf32> to vector<4x16x16xf32>
    %24 = vector.extract_strided_slice %18 {offsets = [0, 0, 1], sizes = [4, 1, 1], strides = [1, 1, 1]} : vector<4x3x3xf32> to vector<4x1x1xf32>
    %25 = vector.broadcast %24 : vector<4x1x1xf32> to vector<4x16x16xf32>
    %26 = arith.mulf %23, %25 : vector<4x16x16xf32>
    %27 = arith.addf %22, %26 : vector<4x16x16xf32>
    %28 = vector.extract_strided_slice %17 {offsets = [0, 0, 6], sizes = [4, 16, 16], strides = [1, 1, 1]} : vector<4x22x22xf32> to vector<4x16x16xf32>
    %29 = vector.extract_strided_slice %18 {offsets = [0, 0, 2], sizes = [4, 1, 1], strides = [1, 1, 1]} : vector<4x3x3xf32> to vector<4x1x1xf32>
    %30 = vector.broadcast %29 : vector<4x1x1xf32> to vector<4x16x16xf32>
    %31 = arith.mulf %28, %30 : vector<4x16x16xf32>
    %32 = arith.addf %27, %31 : vector<4x16x16xf32>
    %33 = vector.extract_strided_slice %17 {offsets = [0, 3, 0], sizes = [4, 16, 16], strides = [1, 1, 1]} : vector<4x22x22xf32> to vector<4x16x16xf32>
    %34 = vector.extract_strided_slice %18 {offsets = [0, 1, 0], sizes = [4, 1, 1], strides = [1, 1, 1]} : vector<4x3x3xf32> to vector<4x1x1xf32>
    %35 = vector.broadcast %34 : vector<4x1x1xf32> to vector<4x16x16xf32>
    %36 = arith.mulf %33, %35 : vector<4x16x16xf32>
    %37 = arith.addf %32, %36 : vector<4x16x16xf32>
    %38 = vector.extract_strided_slice %17 {offsets = [0, 3, 3], sizes = [4, 16, 16], strides = [1, 1, 1]} : vector<4x22x22xf32> to vector<4x16x16xf32>
    %39 = vector.extract_strided_slice %18 {offsets = [0, 1, 1], sizes = [4, 1, 1], strides = [1, 1, 1]} : vector<4x3x3xf32> to vector<4x1x1xf32>
    %40 = vector.broadcast %39 : vector<4x1x1xf32> to vector<4x16x16xf32>
    %41 = arith.mulf %38, %40 : vector<4x16x16xf32>
    %42 = arith.addf %37, %41 : vector<4x16x16xf32>
    %43 = vector.extract_strided_slice %17 {offsets = [0, 3, 6], sizes = [4, 16, 16], strides = [1, 1, 1]} : vector<4x22x22xf32> to vector<4x16x16xf32>
    %44 = vector.extract_strided_slice %18 {offsets = [0, 1, 2], sizes = [4, 1, 1], strides = [1, 1, 1]} : vector<4x3x3xf32> to vector<4x1x1xf32>
    %45 = vector.broadcast %44 : vector<4x1x1xf32> to vector<4x16x16xf32>
    %46 = arith.mulf %43, %45 : vector<4x16x16xf32>
    %47 = arith.addf %42, %46 : vector<4x16x16xf32>
    %48 = vector.extract_strided_slice %17 {offsets = [0, 6, 0], sizes = [4, 16, 16], strides = [1, 1, 1]} : vector<4x22x22xf32> to vector<4x16x16xf32>
    %49 = vector.extract_strided_slice %18 {offsets = [0, 2, 0], sizes = [4, 1, 1], strides = [1, 1, 1]} : vector<4x3x3xf32> to vector<4x1x1xf32>
    %50 = vector.broadcast %49 : vector<4x1x1xf32> to vector<4x16x16xf32>
    %51 = arith.mulf %48, %50 : vector<4x16x16xf32>
    %52 = arith.addf %47, %51 : vector<4x16x16xf32>
    %53 = vector.extract_strided_slice %17 {offsets = [0, 6, 3], sizes = [4, 16, 16], strides = [1, 1, 1]} : vector<4x22x22xf32> to vector<4x16x16xf32>
    %54 = vector.extract_strided_slice %18 {offsets = [0, 2, 1], sizes = [4, 1, 1], strides = [1, 1, 1]} : vector<4x3x3xf32> to vector<4x1x1xf32>
    %55 = vector.broadcast %54 : vector<4x1x1xf32> to vector<4x16x16xf32>
    %56 = arith.mulf %53, %55 : vector<4x16x16xf32>
    %57 = arith.addf %52, %56 : vector<4x16x16xf32>
    %58 = vector.extract_strided_slice %17 {offsets = [0, 6, 6], sizes = [4, 16, 16], strides = [1, 1, 1]} : vector<4x22x22xf32> to vector<4x16x16xf32>
    %59 = vector.extract_strided_slice %18 {offsets = [0, 2, 2], sizes = [4, 1, 1], strides = [1, 1, 1]} : vector<4x3x3xf32> to vector<4x1x1xf32>
    %60 = vector.broadcast %59 : vector<4x1x1xf32> to vector<4x16x16xf32>
    %61 = arith.mulf %58, %60 : vector<4x16x16xf32>
    %62 = arith.addf %57, %61 : vector<4x16x16xf32>
    %c0_22 = arith.constant 0 : index
    %c0_23 = arith.constant 0 : index
    %c0_24 = arith.constant 0 : index
    %c0_25 = arith.constant 0 : index
    %63 = vector.load %arg6[%c0_22, %c0_23, %c0_24, %c0_25] : memref<1x4x16x16xf32, #tpu.memory_space<vmem>>, vector<1x4x16x16xf32>
    %64 = vector.shape_cast %63 : vector<1x4x16x16xf32> to vector<4x16x16xf32>
    %65 = vector.shape_cast %62 : vector<4x16x16xf32> to vector<1x4x16x16xf32>
    tpu.vector_store %arg6[%c0_22, %c0_23, %c0_24, %c0_25], %65 {strides = array<i32>} : memref<1x4x16x16xf32, #tpu.memory_space<vmem>>, vector<1x4x16x16xf32>,
    %c0_26 = arith.constant 0 : index
    %c0_27 = arith.constant 0 : index
    %66 = vector.load %arg9[%c0_26, %c0_27] : memref<4x4xf32, #tpu.memory_space<vmem>>, vector<4x1xf32>
    %cst_28 = arith.constant dense<0.000000e+00> : vector<4x16xf32>
    %67 = vector.multi_reduction <add>, %12, %cst_28 [2] : vector<4x16x16xf32> to vector<4x16xf32>
    %68 = vector.shape_cast %67 : vector<4x16xf32> to vector<4x16x1xf32>
    %cst_29 = arith.constant dense<0.000000e+00> : vector<4x1xf32>
    %69 = vector.multi_reduction <add>, %68, %cst_29 [1] : vector<4x16x1xf32> to vector<4x1xf32>
    %70 = vector.shape_cast %69 : vector<4x1xf32> to vector<4x1x1xf32>
    %71 = vector.shape_cast %70 : vector<4x1x1xf32> to vector<4x1xf32>
    %72 = arith.addf %66, %71 : vector<4x1xf32>
    %c0_30 = arith.constant 0 : index
    %c0_31 = arith.constant 0 : index
    %73 = vector.load %arg9[%c0_30, %c0_31] : memref<4x4xf32, #tpu.memory_space<vmem>>, vector<4x1xf32>
    tpu.vector_store %arg9[%c0_30, %c0_31], %72 {strides = array<i32>} : memref<4x4xf32, #tpu.memory_space<vmem>>, vector<4x1xf32>,
    %c0_32 = arith.constant 0 : index
    %c1 = arith.constant 1 : index
    %74 = vector.load %arg9[%c0_32, %c1] : memref<4x4xf32, #tpu.memory_space<vmem>>, vector<4x1xf32>
    %75 = arith.mulf %12, %12 : vector<4x16x16xf32>
    %cst_33 = arith.constant dense<0.000000e+00> : vector<4x16xf32>
    %76 = vector.multi_reduction <add>, %75, %cst_33 [2] : vector<4x16x16xf32> to vector<4x16xf32>
    %77 = vector.shape_cast %76 : vector<4x16xf32> to vector<4x16x1xf32>
    %cst_34 = arith.constant dense<0.000000e+00> : vector<4x1xf32>
    %78 = vector.multi_reduction <add>, %77, %cst_34 [1] : vector<4x16x1xf32> to vector<4x1xf32>
    %79 = vector.shape_cast %78 : vector<4x1xf32> to vector<4x1x1xf32>
    %80 = vector.shape_cast %79 : vector<4x1x1xf32> to vector<4x1xf32>
    %81 = arith.addf %74, %80 : vector<4x1xf32>
    %c0_35 = arith.constant 0 : index
    %c1_36 = arith.constant 1 : index
    %82 = vector.load %arg9[%c0_35, %c1_36] : memref<4x4xf32, #tpu.memory_space<vmem>>, vector<4x1xf32>
    tpu.vector_store %arg9[%c0_35, %c1_36], %81 {strides = array<i32>} : memref<4x4xf32, #tpu.memory_space<vmem>>, vector<4x1xf32>,
    %c0_37 = arith.constant 0 : index
    %c2 = arith.constant 2 : index
    %83 = vector.load %arg9[%c0_37, %c2] : memref<4x4xf32, #tpu.memory_space<vmem>>, vector<4x1xf32>
    %cst_38 = arith.constant dense<0.000000e+00> : vector<4x16xf32>
    %84 = vector.multi_reduction <add>, %62, %cst_38 [2] : vector<4x16x16xf32> to vector<4x16xf32>
    %85 = vector.shape_cast %84 : vector<4x16xf32> to vector<4x16x1xf32>
    %cst_39 = arith.constant dense<0.000000e+00> : vector<4x1xf32>
    %86 = vector.multi_reduction <add>, %85, %cst_39 [1] : vector<4x16x1xf32> to vector<4x1xf32>
    %87 = vector.shape_cast %86 : vector<4x1xf32> to vector<4x1x1xf32>
    %88 = vector.shape_cast %87 : vector<4x1x1xf32> to vector<4x1xf32>
    %89 = arith.addf %83, %88 : vector<4x1xf32>
    %c0_40 = arith.constant 0 : index
    %c2_41 = arith.constant 2 : index
    %90 = vector.load %arg9[%c0_40, %c2_41] : memref<4x4xf32, #tpu.memory_space<vmem>>, vector<4x1xf32>
    tpu.vector_store %arg9[%c0_40, %c2_41], %89 {strides = array<i32>} : memref<4x4xf32, #tpu.memory_space<vmem>>, vector<4x1xf32>,
    %c0_42 = arith.constant 0 : index
    %c3_43 = arith.constant 3 : index
    %91 = vector.load %arg9[%c0_42, %c3_43] : memref<4x4xf32, #tpu.memory_space<vmem>>, vector<4x1xf32>
    %92 = arith.mulf %62, %62 : vector<4x16x16xf32>
    %cst_44 = arith.constant dense<0.000000e+00> : vector<4x16xf32>
    %93 = vector.multi_reduction <add>, %92, %cst_44 [2] : vector<4x16x16xf32> to vector<4x16xf32>
    %94 = vector.shape_cast %93 : vector<4x16xf32> to vector<4x16x1xf32>
    %cst_45 = arith.constant dense<0.000000e+00> : vector<4x1xf32>
    %95 = vector.multi_reduction <add>, %94, %cst_45 [1] : vector<4x16x1xf32> to vector<4x1xf32>
    %96 = vector.shape_cast %95 : vector<4x1xf32> to vector<4x1x1xf32>
    %97 = vector.shape_cast %96 : vector<4x1x1xf32> to vector<4x1xf32>
    %98 = arith.addf %91, %97 : vector<4x1xf32>
    %c0_46 = arith.constant 0 : index
    %c3_47 = arith.constant 3 : index
    %99 = vector.load %arg9[%c0_46, %c3_47] : memref<4x4xf32, #tpu.memory_space<vmem>>, vector<4x1xf32>
    tpu.vector_store %arg9[%c0_46, %c3_47], %98 {strides = array<i32>} : memref<4x4xf32, #tpu.memory_space<vmem>>, vector<4x1xf32>,
    %c0_48 = arith.constant 0 : index
    %c0_49 = arith.constant 0 : index
    %100 = vector.load %arg9[%c0_48, %c0_49] : memref<4x4xf32, #tpu.memory_space<vmem>>, vector<4x4xf32>
    %c0_50 = arith.constant 0 : index
    %c0_51 = arith.constant 0 : index
    %101 = vector.load %arg7[%c0_50, %c0_51] : memref<4x4xf32, #tpu.memory_space<vmem>>, vector<4x4xf32>
    tpu.vector_store %arg7[%c0_50, %c0_51], %100 {strides = array<i32>} : memref<4x4xf32, #tpu.memory_space<vmem>>, vector<4x4xf32>,
    return
  }
  func.func @transform_0(%arg0: i32) -> (i32, i32, i32, i32) {
    %c0_i32 = arith.constant 0 : i32
    %c0_i32_0 = arith.constant 0 : i32
    %c0_i32_1 = arith.constant 0 : i32
    %c0_i32_2 = arith.constant 0 : i32
    return %arg0, %c0_i32, %c0_i32_0, %c0_i32_1 : i32, i32, i32, i32
  }
  func.func @transform_1(%arg0: i32) -> (i32, i32, i32) {
    %c0_i32 = arith.constant 0 : i32
    %c0_i32_0 = arith.constant 0 : i32
    %c0_i32_1 = arith.constant 0 : i32
    %c0_i32_2 = arith.constant 0 : i32
    return %c0_i32, %c0_i32_0, %c0_i32_1 : i32, i32, i32
  }
  func.func @transform_2(%arg0: i32) -> (i32, i32, i32) {
    %c0_i32 = arith.constant 0 : i32
    %c0_i32_0 = arith.constant 0 : i32
    %c0_i32_1 = arith.constant 0 : i32
    %c0_i32_2 = arith.constant 0 : i32
    return %c0_i32, %c0_i32_0, %c0_i32_1 : i32, i32, i32
  }
  func.func @transform_3(%arg0: i32) -> (i32, i32, i32) {
    %c0_i32 = arith.constant 0 : i32
    %c0_i32_0 = arith.constant 0 : i32
    %c0_i32_1 = arith.constant 0 : i32
    %c0_i32_2 = arith.constant 0 : i32
    return %c0_i32, %c0_i32_0, %c0_i32_1 : i32, i32, i32
  }
  func.func @transform_4(%arg0: i32) -> (i32, i32, i32, i32) {
    %c0_i32 = arith.constant 0 : i32
    %c0_i32_0 = arith.constant 0 : i32
    %c0_i32_1 = arith.constant 0 : i32
    %c0_i32_2 = arith.constant 0 : i32
    return %arg0, %c0_i32, %c0_i32_0, %c0_i32_1 : i32, i32, i32, i32
  }
  func.func @transform_5(%arg0: i32) -> (i32, i32, i32, i32) {
    %c0_i32 = arith.constant 0 : i32
    %c0_i32_0 = arith.constant 0 : i32
    %c0_i32_1 = arith.constant 0 : i32
    %c0_i32_2 = arith.constant 0 : i32
    return %arg0, %c0_i32, %c0_i32_0, %c0_i32_1 : i32, i32, i32, i32
  }
  func.func @transform_6(%arg0: i32) -> (i32, i32) {
    %c0_i32 = arith.constant 0 : i32
    %c0_i32_0 = arith.constant 0 : i32
    %c0_i32_1 = arith.constant 0 : i32
    return %c0_i32, %c0_i32_0 : i32, i32
  }
}

module attributes {stable_mosaic.version = 11 : i64} {
  func.func @_pw_halves_kernel(%arg0: i32, %arg1: i32, %arg2: memref<1x4x256xf32, #tpu.memory_space<vmem>>, %arg3: memref<1x4x256xf32, #tpu.memory_space<vmem>>, %arg4: memref<8x1xf32, #tpu.memory_space<vmem>>, %arg5: memref<8x1xf32, #tpu.memory_space<vmem>>, %arg6: memref<4x8xf32, #tpu.memory_space<vmem>>, %arg7: memref<1x4x256xf32, #tpu.memory_space<vmem>>, %arg8: memref<4x2xf32, #tpu.memory_space<vmem>>, %arg9: memref<4x2xf32, #tpu.memory_space<vmem>>) attributes {dimension_semantics = [#tpu.dimension_semantics<arbitrary>, #tpu.dimension_semantics<arbitrary>], iteration_bounds = array<i64: 2, 1>, scalar_prefetch = 0 : i64, scratch_operands = 1 : i64, tpu.core_type = #tpu.core_type<tc>, window_params = [{transform_indices = @transform_0, window_bounds = array<i64: 1, 4, 256>}, {transform_indices = @transform_1, window_bounds = array<i64: 1, 4, 256>}, {pipeline_mode = #tpu.pipeline_mode<synchronous>, transform_indices = @transform_2, window_bounds = array<i64: 8, 1>}, {pipeline_mode = #tpu.pipeline_mode<synchronous>, transform_indices = @transform_3, window_bounds = array<i64: 8, 1>}, {pipeline_mode = #tpu.pipeline_mode<synchronous>, transform_indices = @transform_4, window_bounds = array<i64: 4, 8>}, {transform_indices = @transform_5, window_bounds = array<i64: 1, 4, 256>}, {pipeline_mode = #tpu.pipeline_mode<synchronous>, transform_indices = @transform_6, window_bounds = array<i64: 4, 2>}]} {
    %c0_i32 = arith.constant 0 : i32
    %0 = arith.cmpi eq, %arg0, %c0_i32 : i32
    %c0_i32_0 = arith.constant 0 : i32
    %1 = arith.cmpi eq, %arg1, %c0_i32_0 : i32
    %2 = arith.andi %0, %1 : i1
    %3 = arith.extui %2 : i1 to i32
    %c0_i32_1 = arith.constant 0 : i32
    %4 = arith.cmpi ne, %3, %c0_i32_1 : i32
    scf.if %4 {
      %cst_30 = arith.constant 0.000000e+00 : f32
      %93 = vector.broadcast %cst_30 : f32 to vector<4x2xf32>
      %c0_31 = arith.constant 0 : index
      %c0_32 = arith.constant 0 : index
      %94 = vector.load %arg9[%c0_31, %c0_32] : memref<4x2xf32, #tpu.memory_space<vmem>>, vector<4x2xf32>
      tpu.vector_store %arg9[%c0_31, %c0_32], %93 {strides = array<i32>} : memref<4x2xf32, #tpu.memory_space<vmem>>, vector<4x2xf32>,
    } else {
    }
    %c0 = arith.constant 0 : index
    %c0_2 = arith.constant 0 : index
    %5 = vector.load %arg4[%c0, %c0_2] : memref<8x1xf32, #tpu.memory_space<vmem>>, vector<8x1xf32>
    %c0_3 = arith.constant 0 : index
    %c0_4 = arith.constant 0 : index
    %6 = vector.load %arg5[%c0_3, %c0_4] : memref<8x1xf32, #tpu.memory_space<vmem>>, vector<8x1xf32>
    %c0_5 = arith.constant 0 : index
    %c0_6 = arith.constant 0 : index
    %c0_7 = arith.constant 0 : index
    %7 = vector.load %arg2[%c0_5, %c0_6, %c0_7] : memref<1x4x256xf32, #tpu.memory_space<vmem>>, vector<1x4x256xf32>
    %8 = vector.shape_cast %7 : vector<1x4x256xf32> to vector<4x256xf32>
    %9 = vector.extract_strided_slice %5 {offsets = [0, 0], sizes = [4, 1], strides = [1, 1]} : vector<8x1xf32> to vector<4x1xf32>
    %10 = vector.broadcast %9 : vector<4x1xf32> to vector<4x256xf32>
    %11 = arith.mulf %8, %10 : vector<4x256xf32>
    %12 = vector.extract_strided_slice %6 {offsets = [0, 0], sizes = [4, 1], strides = [1, 1]} : vector<8x1xf32> to vector<4x1xf32>
    %13 = vector.broadcast %12 : vector<4x1xf32> to vector<4x256xf32>
    %14 = arith.addf %11, %13 : vector<4x256xf32>
    %cst = arith.constant 0.000000e+00 : f32
    %15 = vector.broadcast %cst : f32 to vector<4x256xf32>
    %16 = arith.maximumf %14, %15 : vector<4x256xf32>
    %c0_8 = arith.constant 0 : index
    %c0_9 = arith.constant 0 : index
    %c0_10 = arith.constant 0 : index
    %17 = vector.load %arg3[%c0_8, %c0_9, %c0_10] : memref<1x4x256xf32, #tpu.memory_space<vmem>>, vector<1x4x256xf32>
    %18 = vector.shape_cast %17 : vector<1x4x256xf32> to vector<4x256xf32>
    %19 = vector.extract_strided_slice %5 {offsets = [4, 0], sizes = [4, 1], strides = [1, 1]} : vector<8x1xf32> to vector<4x1xf32>
    %20 = vector.broadcast %19 : vector<4x1xf32> to vector<4x256xf32>
    %21 = arith.mulf %18, %20 : vector<4x256xf32>
    %22 = vector.extract_strided_slice %6 {offsets = [4, 0], sizes = [4, 1], strides = [1, 1]} : vector<8x1xf32> to vector<4x1xf32>
    %23 = vector.broadcast %22 : vector<4x1xf32> to vector<4x256xf32>
    %24 = arith.addf %21, %23 : vector<4x256xf32>
    %cst_11 = arith.constant 0.000000e+00 : f32
    %25 = vector.broadcast %cst_11 : f32 to vector<4x256xf32>
    %26 = arith.maximumf %24, %25 : vector<4x256xf32>
    %c0_12 = arith.constant 0 : index
    %c0_13 = arith.constant 0 : index
    %27 = vector.load %arg6[%c0_12, %c0_13] : memref<4x8xf32, #tpu.memory_space<vmem>>, vector<4x8xf32>
    %28 = vector.extract_strided_slice %27 {offsets = [0, 0], sizes = [4, 4], strides = [1, 1]} : vector<4x8xf32> to vector<4x4xf32>
    %29 = vector.extract_strided_slice %28 {offsets = [0, 0], sizes = [4, 1], strides = [1, 1]} : vector<4x4xf32> to vector<4x1xf32>
    %30 = vector.extract_strided_slice %16 {offsets = [0, 0], sizes = [1, 256], strides = [1, 1]} : vector<4x256xf32> to vector<1x256xf32>
    %31 = vector.broadcast %29 : vector<4x1xf32> to vector<4x256xf32>
    %32 = vector.broadcast %30 : vector<1x256xf32> to vector<4x256xf32>
    %33 = arith.mulf %31, %32 : vector<4x256xf32>
    %34 = vector.extract_strided_slice %28 {offsets = [0, 1], sizes = [4, 1], strides = [1, 1]} : vector<4x4xf32> to vector<4x1xf32>
    %35 = vector.extract_strided_slice %16 {offsets = [1, 0], sizes = [1, 256], strides = [1, 1]} : vector<4x256xf32> to vector<1x256xf32>
    %36 = vector.broadcast %34 : vector<4x1xf32> to vector<4x256xf32>
    %37 = vector.broadcast %35 : vector<1x256xf32> to vector<4x256xf32>
    %38 = arith.mulf %36, %37 : vector<4x256xf32>
    %39 = arith.addf %33, %38 : vector<4x256xf32>
    %40 = vector.extract_strided_slice %28 {offsets = [0, 2], sizes = [4, 1], strides = [1, 1]} : vector<4x4xf32> to vector<4x1xf32>
    %41 = vector.extract_strided_slice %16 {offsets = [2, 0], sizes = [1, 256], strides = [1, 1]} : vector<4x256xf32> to vector<1x256xf32>
    %42 = vector.broadcast %40 : vector<4x1xf32> to vector<4x256xf32>
    %43 = vector.broadcast %41 : vector<1x256xf32> to vector<4x256xf32>
    %44 = arith.mulf %42, %43 : vector<4x256xf32>
    %45 = arith.addf %39, %44 : vector<4x256xf32>
    %46 = vector.extract_strided_slice %28 {offsets = [0, 3], sizes = [4, 1], strides = [1, 1]} : vector<4x4xf32> to vector<4x1xf32>
    %47 = vector.extract_strided_slice %16 {offsets = [3, 0], sizes = [1, 256], strides = [1, 1]} : vector<4x256xf32> to vector<1x256xf32>
    %48 = vector.broadcast %46 : vector<4x1xf32> to vector<4x256xf32>
    %49 = vector.broadcast %47 : vector<1x256xf32> to vector<4x256xf32>
    %50 = arith.mulf %48, %49 : vector<4x256xf32>
    %51 = arith.addf %45, %50 : vector<4x256xf32>
    %52 = vector.extract_strided_slice %27 {offsets = [0, 4], sizes = [4, 4], strides = [1, 1]} : vector<4x8xf32> to vector<4x4xf32>
    %53 = vector.extract_strided_slice %52 {offsets = [0, 0], sizes = [4, 1], strides = [1, 1]} : vector<4x4xf32> to vector<4x1xf32>
    %54 = vector.extract_strided_slice %26 {offsets = [0, 0], sizes = [1, 256], strides = [1, 1]} : vector<4x256xf32> to vector<1x256xf32>
    %55 = vector.broadcast %53 : vector<4x1xf32> to vector<4x256xf32>
    %56 = vector.broadcast %54 : vector<1x256xf32> to vector<4x256xf32>
    %57 = arith.mulf %55, %56 : vector<4x256xf32>
    %58 = vector.extract_strided_slice %52 {offsets = [0, 1], sizes = [4, 1], strides = [1, 1]} : vector<4x4xf32> to vector<4x1xf32>
    %59 = vector.extract_strided_slice %26 {offsets = [1, 0], sizes = [1, 256], strides = [1, 1]} : vector<4x256xf32> to vector<1x256xf32>
    %60 = vector.broadcast %58 : vector<4x1xf32> to vector<4x256xf32>
    %61 = vector.broadcast %59 : vector<1x256xf32> to vector<4x256xf32>
    %62 = arith.mulf %60, %61 : vector<4x256xf32>
    %63 = arith.addf %57, %62 : vector<4x256xf32>
    %64 = vector.extract_strided_slice %52 {offsets = [0, 2], sizes = [4, 1], strides = [1, 1]} : vector<4x4xf32> to vector<4x1xf32>
    %65 = vector.extract_strided_slice %26 {offsets = [2, 0], sizes = [1, 256], strides = [1, 1]} : vector<4x256xf32> to vector<1x256xf32>
    %66 = vector.broadcast %64 : vector<4x1xf32> to vector<4x256xf32>
    %67 = vector.broadcast %65 : vector<1x256xf32> to vector<4x256xf32>
    %68 = arith.mulf %66, %67 : vector<4x256xf32>
    %69 = arith.addf %63, %68 : vector<4x256xf32>
    %70 = vector.extract_strided_slice %52 {offsets = [0, 3], sizes = [4, 1], strides = [1, 1]} : vector<4x4xf32> to vector<4x1xf32>
    %71 = vector.extract_strided_slice %26 {offsets = [3, 0], sizes = [1, 256], strides = [1, 1]} : vector<4x256xf32> to vector<1x256xf32>
    %72 = vector.broadcast %70 : vector<4x1xf32> to vector<4x256xf32>
    %73 = vector.broadcast %71 : vector<1x256xf32> to vector<4x256xf32>
    %74 = arith.mulf %72, %73 : vector<4x256xf32>
    %75 = arith.addf %69, %74 : vector<4x256xf32>
    %76 = arith.addf %51, %75 : vector<4x256xf32>
    %c0_14 = arith.constant 0 : index
    %c0_15 = arith.constant 0 : index
    %c0_16 = arith.constant 0 : index
    %77 = vector.load %arg7[%c0_14, %c0_15, %c0_16] : memref<1x4x256xf32, #tpu.memory_space<vmem>>, vector<1x4x256xf32>
    %78 = vector.shape_cast %77 : vector<1x4x256xf32> to vector<4x256xf32>
    %79 = vector.shape_cast %76 : vector<4x256xf32> to vector<1x4x256xf32>
    tpu.vector_store %arg7[%c0_14, %c0_15, %c0_16], %79 {strides = array<i32>} : memref<1x4x256xf32, #tpu.memory_space<vmem>>, vector<1x4x256xf32>,
    %c0_17 = arith.constant 0 : index
    %c0_18 = arith.constant 0 : index
    %80 = vector.load %arg9[%c0_17, %c0_18] : memref<4x2xf32, #tpu.memory_space<vmem>>, vector<4x1xf32>
    %cst_19 = arith.constant dense<0.000000e+00> : vector<4xf32>
    %81 = vector.multi_reduction <add>, %76, %cst_19 [1] : vector<4x256xf32> to vector<4xf32>
    %82 = vector.shape_cast %81 : vector<4xf32> to vector<4x1xf32>
    %83 = arith.addf %80, %82 : vector<4x1xf32>
    %c0_20 = arith.constant 0 : index
    %c0_21 = arith.constant 0 : index
    %84 = vector.load %arg9[%c0_20, %c0_21] : memref<4x2xf32, #tpu.memory_space<vmem>>, vector<4x1xf32>
    tpu.vector_store %arg9[%c0_20, %c0_21], %83 {strides = array<i32>} : memref<4x2xf32, #tpu.memory_space<vmem>>, vector<4x1xf32>,
    %c0_22 = arith.constant 0 : index
    %c1 = arith.constant 1 : index
    %85 = vector.load %arg9[%c0_22, %c1] : memref<4x2xf32, #tpu.memory_space<vmem>>, vector<4x1xf32>
    %86 = arith.mulf %76, %76 : vector<4x256xf32>
    %cst_23 = arith.constant dense<0.000000e+00> : vector<4xf32>
    %87 = vector.multi_reduction <add>, %86, %cst_23 [1] : vector<4x256xf32> to vector<4xf32>
    %88 = vector.shape_cast %87 : vector<4xf32> to vector<4x1xf32>
    %89 = arith.addf %85, %88 : vector<4x1xf32>
    %c0_24 = arith.constant 0 : index
    %c1_25 = arith.constant 1 : index
    %90 = vector.load %arg9[%c0_24, %c1_25] : memref<4x2xf32, #tpu.memory_space<vmem>>, vector<4x1xf32>
    tpu.vector_store %arg9[%c0_24, %c1_25], %89 {strides = array<i32>} : memref<4x2xf32, #tpu.memory_space<vmem>>, vector<4x1xf32>,
    %c0_26 = arith.constant 0 : index
    %c0_27 = arith.constant 0 : index
    %91 = vector.load %arg9[%c0_26, %c0_27] : memref<4x2xf32, #tpu.memory_space<vmem>>, vector<4x2xf32>
    %c0_28 = arith.constant 0 : index
    %c0_29 = arith.constant 0 : index
    %92 = vector.load %arg8[%c0_28, %c0_29] : memref<4x2xf32, #tpu.memory_space<vmem>>, vector<4x2xf32>
    tpu.vector_store %arg8[%c0_28, %c0_29], %91 {strides = array<i32>} : memref<4x2xf32, #tpu.memory_space<vmem>>, vector<4x2xf32>,
    return
  }
  func.func @transform_0(%arg0: i32, %arg1: i32) -> (i32, i32, i32) {
    %c0_i32 = arith.constant 0 : i32
    %c0_i32_0 = arith.constant 0 : i32
    return %arg0, %c0_i32, %arg1 : i32, i32, i32
  }
  func.func @transform_1(%arg0: i32, %arg1: i32) -> (i32, i32, i32) {
    %c0_i32 = arith.constant 0 : i32
    %c0_i32_0 = arith.constant 0 : i32
    return %arg0, %c0_i32, %arg1 : i32, i32, i32
  }
  func.func @transform_2(%arg0: i32, %arg1: i32) -> (i32, i32) {
    %c0_i32 = arith.constant 0 : i32
    %c0_i32_0 = arith.constant 0 : i32
    %c0_i32_1 = arith.constant 0 : i32
    return %c0_i32, %c0_i32_0 : i32, i32
  }
  func.func @transform_3(%arg0: i32, %arg1: i32) -> (i32, i32) {
    %c0_i32 = arith.constant 0 : i32
    %c0_i32_0 = arith.constant 0 : i32
    %c0_i32_1 = arith.constant 0 : i32
    return %c0_i32, %c0_i32_0 : i32, i32
  }
  func.func @transform_4(%arg0: i32, %arg1: i32) -> (i32, i32) {
    %c0_i32 = arith.constant 0 : i32
    %c0_i32_0 = arith.constant 0 : i32
    %c0_i32_1 = arith.constant 0 : i32
    return %c0_i32, %c0_i32_0 : i32, i32
  }
  func.func @transform_5(%arg0: i32, %arg1: i32) -> (i32, i32, i32) {
    %c0_i32 = arith.constant 0 : i32
    %c0_i32_0 = arith.constant 0 : i32
    return %arg0, %c0_i32, %arg1 : i32, i32, i32
  }
  func.func @transform_6(%arg0: i32, %arg1: i32) -> (i32, i32) {
    %c0_i32 = arith.constant 0 : i32
    %c0_i32_0 = arith.constant 0 : i32
    %c0_i32_1 = arith.constant 0 : i32
    return %c0_i32, %c0_i32_0 : i32, i32
  }
}

module attributes {stable_mosaic.version = 11 : i64} {
  func.func @_ssfc_kernel(%arg0: i32, %arg1: memref<1x4x256xf32, #tpu.memory_space<vmem>>, %arg2: memref<4x1xf32, #tpu.memory_space<vmem>>, %arg3: memref<4x1xf32, #tpu.memory_space<vmem>>, %arg4: memref<4x1xf32, #tpu.memory_space<vmem>>, %arg5: memref<1x1xf32, #tpu.memory_space<vmem>>, %arg6: memref<1x4x256xf32, #tpu.memory_space<vmem>>, %arg7: memref<4x2xf32, #tpu.memory_space<vmem>>, %arg8: memref<4x2xf32, #tpu.memory_space<vmem>>) attributes {dimension_semantics = [#tpu.dimension_semantics<arbitrary>], iteration_bounds = array<i64: 2>, scalar_prefetch = 0 : i64, scratch_operands = 1 : i64, tpu.core_type = #tpu.core_type<tc>, window_params = [{transform_indices = @transform_0, window_bounds = array<i64: 1, 4, 256>}, {pipeline_mode = #tpu.pipeline_mode<synchronous>, transform_indices = @transform_1, window_bounds = array<i64: 4, 1>}, {pipeline_mode = #tpu.pipeline_mode<synchronous>, transform_indices = @transform_2, window_bounds = array<i64: 4, 1>}, {pipeline_mode = #tpu.pipeline_mode<synchronous>, transform_indices = @transform_3, window_bounds = array<i64: 4, 1>}, {pipeline_mode = #tpu.pipeline_mode<synchronous>, transform_indices = @transform_4, window_bounds = array<i64: 1, 1>}, {transform_indices = @transform_5, window_bounds = array<i64: 1, 4, 256>}, {pipeline_mode = #tpu.pipeline_mode<synchronous>, transform_indices = @transform_6, window_bounds = array<i64: 4, 2>}]} {
    %c0_i32 = arith.constant 0 : i32
    %0 = arith.cmpi eq, %arg0, %c0_i32 : i32
    %1 = arith.extui %0 : i1 to i32
    %c0_i32_0 = arith.constant 0 : i32
    %2 = arith.cmpi ne, %1, %c0_i32_0 : i32
    scf.if %2 {
      %cst_35 = arith.constant 0.000000e+00 : f32
      %68 = vector.broadcast %cst_35 : f32 to vector<4x2xf32>
      %c0_36 = arith.constant 0 : index
      %c0_37 = arith.constant 0 : index
      %69 = vector.load %arg8[%c0_36, %c0_37] : memref<4x2xf32, #tpu.memory_space<vmem>>, vector<4x2xf32>
      tpu.vector_store %arg8[%c0_36, %c0_37], %68 {strides = array<i32>} : memref<4x2xf32, #tpu.memory_space<vmem>>, vector<4x2xf32>,
    } else {
    }
    %c0 = arith.constant 0 : index
    %c0_1 = arith.constant 0 : index
    %c0_2 = arith.constant 0 : index
    %3 = vector.load %arg1[%c0, %c0_1, %c0_2] : memref<1x4x256xf32, #tpu.memory_space<vmem>>, vector<1x4x256xf32>
    %4 = vector.shape_cast %3 : vector<1x4x256xf32> to vector<4x256xf32>
    %c0_3 = arith.constant 0 : index
    %c0_4 = arith.constant 0 : index
    %5 = vector.load %arg2[%c0_3, %c0_4] : memref<4x1xf32, #tpu.memory_space<vmem>>, vector<4x1xf32>
    %6 = vector.broadcast %5 : vector<4x1xf32> to vector<4x256xf32>
    %7 = arith.mulf %4, %6 : vector<4x256xf32>
    %c0_5 = arith.constant 0 : index
    %c0_6 = arith.constant 0 : index
    %8 = vector.load %arg3[%c0_5, %c0_6] : memref<4x1xf32, #tpu.memory_space<vmem>>, vector<4x1xf32>
    %9 = vector.broadcast %8 : vector<4x1xf32> to vector<4x256xf32>
    %10 = arith.addf %7, %9 : vector<4x256xf32>
    %cst = arith.constant 0.000000e+00 : f32
    %11 = vector.broadcast %cst : f32 to vector<4x256xf32>
    %12 = arith.maximumf %10, %11 : vector<4x256xf32>
    %cst_7 = arith.constant dense<0.000000e+00> : vector<4xf32>
    %13 = vector.multi_reduction <add>, %12, %cst_7 [1] : vector<4x256xf32> to vector<4xf32>
    %14 = vector.shape_cast %13 : vector<4xf32> to vector<4x1xf32>
    %cst_8 = arith.constant 3.906250e-03 : f32
    %15 = vector.broadcast %cst_8 : f32 to vector<4x1xf32>
    %16 = arith.mulf %14, %15 : vector<4x1xf32>
    %c0_9 = arith.constant 0 : index
    %c0_10 = arith.constant 0 : index
    %17 = vector.load %arg4[%c0_9, %c0_10] : memref<4x1xf32, #tpu.memory_space<vmem>>, vector<4x1xf32>
    %18 = vector.broadcast %17 : vector<4x1xf32> to vector<4x256xf32>
    %19 = arith.mulf %12, %18 : vector<4x256xf32>
    %20 = vector.extract_strided_slice %19 {offsets = [0, 0], sizes = [1, 256], strides = [1, 1]} : vector<4x256xf32> to vector<1x256xf32>
    %21 = vector.extract_strided_slice %19 {offsets = [1, 0], sizes = [1, 256], strides = [1, 1]} : vector<4x256xf32> to vector<1x256xf32>
    %22 = arith.addf %20, %21 : vector<1x256xf32>
    %23 = vector.extract_strided_slice %19 {offsets = [2, 0], sizes = [1, 256], strides = [1, 1]} : vector<4x256xf32> to vector<1x256xf32>
    %24 = arith.addf %22, %23 : vector<1x256xf32>
    %25 = vector.extract_strided_slice %19 {offsets = [3, 0], sizes = [1, 256], strides = [1, 1]} : vector<4x256xf32> to vector<1x256xf32>
    %26 = arith.addf %24, %25 : vector<1x256xf32>
    %c0_11 = arith.constant 0 : index
    %c0_12 = arith.constant 0 : index
    %27 = vector.load %arg5[%c0_11, %c0_12] : memref<1x1xf32, #tpu.memory_space<vmem>>, vector<1x1xf32>
    %28 = vector.broadcast %27 : vector<1x1xf32> to vector<1x256xf32>
    %29 = arith.addf %26, %28 : vector<1x256xf32>
    %30 = vector.broadcast %29 : vector<1x256xf32> to vector<4x256xf32>
    %31 = vector.broadcast %16 : vector<4x1xf32> to vector<4x256xf32>
    %32 = arith.subf %30, %31 : vector<4x256xf32>
    %33 = arith.mulf %32, %32 : vector<4x256xf32>
    %cst_13 = arith.constant dense<0.000000e+00> : vector<4xf32>
    %34 = vector.multi_reduction <add>, %33, %cst_13 [1] : vector<4x256xf32> to vector<4xf32>
    %35 = vector.shape_cast %34 : vector<4xf32> to vector<4x1xf32>
    %cst_14 = arith.constant 3.906250e-03 : f32
    %36 = vector.broadcast %cst_14 : f32 to vector<4x1xf32>
    %37 = arith.mulf %35, %36 : vector<4x1xf32>
    %cst_15 = arith.constant 2.000000e+00 : f32
    %38 = vector.broadcast %cst_15 : f32 to vector<4x1xf32>
    %39 = arith.mulf %38, %37 : vector<4x1xf32>
    %cst_16 = arith.constant 1.1920929E-7 : f32
    %40 = vector.broadcast %cst_16 : f32 to vector<4x1xf32>
    %41 = arith.addf %39, %40 : vector<4x1xf32>
    %42 = vector.broadcast %41 : vector<4x1xf32> to vector<4x256xf32>
    %43 = arith.divf %33, %42 : vector<4x256xf32>
    %cst_17 = arith.constant 5.000000e-01 : f32
    %44 = vector.broadcast %cst_17 : f32 to vector<4x256xf32>
    %45 = arith.addf %43, %44 : vector<4x256xf32>
    %46 = arith.negf %45 : vector<4x256xf32>
    %47 = math.exp %46 : vector<4x256xf32>
    %cst_18 = arith.constant 1.000000e+00 : f32
    %48 = vector.broadcast %cst_18 : f32 to vector<4x256xf32>
    %49 = arith.addf %48, %47 : vector<4x256xf32>
    %50 = arith.divf %48, %49 : vector<4x256xf32>
    %51 = arith.mulf %12, %50 : vector<4x256xf32>
    %c0_19 = arith.constant 0 : index
    %c0_20 = arith.constant 0 : index
    %c0_21 = arith.constant 0 : index
    %52 = vector.load %arg6[%c0_19, %c0_20, %c0_21] : memref<1x4x256xf32, #tpu.memory_space<vmem>>, vector<1x4x256xf32>
    %53 = vector.shape_cast %52 : vector<1x4x256xf32> to vector<4x256xf32>
    %54 = vector.shape_cast %51 : vector<4x256xf32> to vector<1x4x256xf32>
    tpu.vector_store %arg6[%c0_19, %c0_20, %c0_21], %54 {strides = array<i32>} : memref<1x4x256xf32, #tpu.memory_space<vmem>>, vector<1x4x256xf32>,
    %c0_22 = arith.constant 0 : index
    %c0_23 = arith.constant 0 : index
    %55 = vector.load %arg8[%c0_22, %c0_23] : memref<4x2xf32, #tpu.memory_space<vmem>>, vector<4x1xf32>
    %cst_24 = arith.constant dense<0.000000e+00> : vector<4xf32>
    %56 = vector.multi_reduction <add>, %51, %cst_24 [1] : vector<4x256xf32> to vector<4xf32>
    %57 = vector.shape_cast %56 : vector<4xf32> to vector<4x1xf32>
    %58 = arith.addf %55, %57 : vector<4x1xf32>
    %c0_25 = arith.constant 0 : index
    %c0_26 = arith.constant 0 : index
    %59 = vector.load %arg8[%c0_25, %c0_26] : memref<4x2xf32, #tpu.memory_space<vmem>>, vector<4x1xf32>
    tpu.vector_store %arg8[%c0_25, %c0_26], %58 {strides = array<i32>} : memref<4x2xf32, #tpu.memory_space<vmem>>, vector<4x1xf32>,
    %c0_27 = arith.constant 0 : index
    %c1 = arith.constant 1 : index
    %60 = vector.load %arg8[%c0_27, %c1] : memref<4x2xf32, #tpu.memory_space<vmem>>, vector<4x1xf32>
    %61 = arith.mulf %51, %51 : vector<4x256xf32>
    %cst_28 = arith.constant dense<0.000000e+00> : vector<4xf32>
    %62 = vector.multi_reduction <add>, %61, %cst_28 [1] : vector<4x256xf32> to vector<4xf32>
    %63 = vector.shape_cast %62 : vector<4xf32> to vector<4x1xf32>
    %64 = arith.addf %60, %63 : vector<4x1xf32>
    %c0_29 = arith.constant 0 : index
    %c1_30 = arith.constant 1 : index
    %65 = vector.load %arg8[%c0_29, %c1_30] : memref<4x2xf32, #tpu.memory_space<vmem>>, vector<4x1xf32>
    tpu.vector_store %arg8[%c0_29, %c1_30], %64 {strides = array<i32>} : memref<4x2xf32, #tpu.memory_space<vmem>>, vector<4x1xf32>,
    %c0_31 = arith.constant 0 : index
    %c0_32 = arith.constant 0 : index
    %66 = vector.load %arg8[%c0_31, %c0_32] : memref<4x2xf32, #tpu.memory_space<vmem>>, vector<4x2xf32>
    %c0_33 = arith.constant 0 : index
    %c0_34 = arith.constant 0 : index
    %67 = vector.load %arg7[%c0_33, %c0_34] : memref<4x2xf32, #tpu.memory_space<vmem>>, vector<4x2xf32>
    tpu.vector_store %arg7[%c0_33, %c0_34], %66 {strides = array<i32>} : memref<4x2xf32, #tpu.memory_space<vmem>>, vector<4x2xf32>,
    return
  }
  func.func @transform_0(%arg0: i32) -> (i32, i32, i32) {
    %c0_i32 = arith.constant 0 : i32
    %c0_i32_0 = arith.constant 0 : i32
    %c0_i32_1 = arith.constant 0 : i32
    return %arg0, %c0_i32, %c0_i32_0 : i32, i32, i32
  }
  func.func @transform_1(%arg0: i32) -> (i32, i32) {
    %c0_i32 = arith.constant 0 : i32
    %c0_i32_0 = arith.constant 0 : i32
    %c0_i32_1 = arith.constant 0 : i32
    return %c0_i32, %c0_i32_0 : i32, i32
  }
  func.func @transform_2(%arg0: i32) -> (i32, i32) {
    %c0_i32 = arith.constant 0 : i32
    %c0_i32_0 = arith.constant 0 : i32
    %c0_i32_1 = arith.constant 0 : i32
    return %c0_i32, %c0_i32_0 : i32, i32
  }
  func.func @transform_3(%arg0: i32) -> (i32, i32) {
    %c0_i32 = arith.constant 0 : i32
    %c0_i32_0 = arith.constant 0 : i32
    %c0_i32_1 = arith.constant 0 : i32
    return %c0_i32, %c0_i32_0 : i32, i32
  }
  func.func @transform_4(%arg0: i32) -> (i32, i32) {
    %c0_i32 = arith.constant 0 : i32
    %c0_i32_0 = arith.constant 0 : i32
    %c0_i32_1 = arith.constant 0 : i32
    return %c0_i32, %c0_i32_0 : i32, i32
  }
  func.func @transform_5(%arg0: i32) -> (i32, i32, i32) {
    %c0_i32 = arith.constant 0 : i32
    %c0_i32_0 = arith.constant 0 : i32
    %c0_i32_1 = arith.constant 0 : i32
    return %arg0, %c0_i32, %c0_i32_0 : i32, i32, i32
  }
  func.func @transform_6(%arg0: i32) -> (i32, i32) {
    %c0_i32 = arith.constant 0 : i32
    %c0_i32_0 = arith.constant 0 : i32
    %c0_i32_1 = arith.constant 0 : i32
    return %c0_i32, %c0_i32_0 : i32, i32
  }
}

module attributes {stable_mosaic.version = 11 : i64} {
  func.func @_final_kernel(%arg0: i32, %arg1: i32, %arg2: memref<1x4x256xf32, #tpu.memory_space<vmem>>, %arg3: memref<1x4x256xf32, #tpu.memory_space<vmem>>, %arg4: memref<8x1xf32, #tpu.memory_space<vmem>>, %arg5: memref<8x1xf32, #tpu.memory_space<vmem>>, %arg6: memref<1x8x256xf32, #tpu.memory_space<vmem>>) attributes {dimension_semantics = [#tpu.dimension_semantics<parallel>, #tpu.dimension_semantics<parallel>], iteration_bounds = array<i64: 2, 1>, scalar_prefetch = 0 : i64, scratch_operands = 0 : i64, tpu.core_type = #tpu.core_type<tc>, window_params = [{transform_indices = @transform_0, window_bounds = array<i64: 1, 4, 256>}, {transform_indices = @transform_1, window_bounds = array<i64: 1, 4, 256>}, {pipeline_mode = #tpu.pipeline_mode<synchronous>, transform_indices = @transform_2, window_bounds = array<i64: 8, 1>}, {pipeline_mode = #tpu.pipeline_mode<synchronous>, transform_indices = @transform_3, window_bounds = array<i64: 8, 1>}, {transform_indices = @transform_4, window_bounds = array<i64: 1, 8, 256>}]} {
    %c0 = arith.constant 0 : index
    %c0_0 = arith.constant 0 : index
    %0 = vector.load %arg4[%c0, %c0_0] : memref<8x1xf32, #tpu.memory_space<vmem>>, vector<8x1xf32>
    %c0_1 = arith.constant 0 : index
    %c0_2 = arith.constant 0 : index
    %1 = vector.load %arg5[%c0_1, %c0_2] : memref<8x1xf32, #tpu.memory_space<vmem>>, vector<8x1xf32>
    %c0_3 = arith.constant 0 : index
    %c0_4 = arith.constant 0 : index
    %c0_5 = arith.constant 0 : index
    %2 = vector.load %arg2[%c0_3, %c0_4, %c0_5] : memref<1x4x256xf32, #tpu.memory_space<vmem>>, vector<1x4x256xf32>
    %3 = vector.shape_cast %2 : vector<1x4x256xf32> to vector<4x256xf32>
    %4 = vector.extract_strided_slice %0 {offsets = [0, 0], sizes = [4, 1], strides = [1, 1]} : vector<8x1xf32> to vector<4x1xf32>
    %5 = vector.broadcast %4 : vector<4x1xf32> to vector<4x256xf32>
    %6 = arith.mulf %3, %5 : vector<4x256xf32>
    %7 = vector.extract_strided_slice %1 {offsets = [0, 0], sizes = [4, 1], strides = [1, 1]} : vector<8x1xf32> to vector<4x1xf32>
    %8 = vector.broadcast %7 : vector<4x1xf32> to vector<4x256xf32>
    %9 = arith.addf %6, %8 : vector<4x256xf32>
    %cst = arith.constant 0.000000e+00 : f32
    %10 = vector.broadcast %cst : f32 to vector<4x256xf32>
    %11 = arith.maximumf %9, %10 : vector<4x256xf32>
    %c0_6 = arith.constant 0 : index
    %c0_7 = arith.constant 0 : index
    %c0_8 = arith.constant 0 : index
    %12 = vector.load %arg3[%c0_6, %c0_7, %c0_8] : memref<1x4x256xf32, #tpu.memory_space<vmem>>, vector<1x4x256xf32>
    %13 = vector.shape_cast %12 : vector<1x4x256xf32> to vector<4x256xf32>
    %14 = vector.extract_strided_slice %0 {offsets = [4, 0], sizes = [4, 1], strides = [1, 1]} : vector<8x1xf32> to vector<4x1xf32>
    %15 = vector.broadcast %14 : vector<4x1xf32> to vector<4x256xf32>
    %16 = arith.mulf %13, %15 : vector<4x256xf32>
    %17 = vector.extract_strided_slice %1 {offsets = [4, 0], sizes = [4, 1], strides = [1, 1]} : vector<8x1xf32> to vector<4x1xf32>
    %18 = vector.broadcast %17 : vector<4x1xf32> to vector<4x256xf32>
    %19 = arith.addf %16, %18 : vector<4x256xf32>
    %cst_9 = arith.constant 0.000000e+00 : f32
    %20 = vector.broadcast %cst_9 : f32 to vector<4x256xf32>
    %21 = arith.maximumf %19, %20 : vector<4x256xf32>
    %c0_10 = arith.constant 0 : index
    %c0_11 = arith.constant 0 : index
    %c0_12 = arith.constant 0 : index
    %22 = vector.load %arg6[%c0_10, %c0_11, %c0_12] : memref<1x8x256xf32, #tpu.memory_space<vmem>>, vector<1x4x256xf32>
    %23 = vector.shape_cast %22 : vector<1x4x256xf32> to vector<4x256xf32>
    %24 = vector.shape_cast %11 : vector<4x256xf32> to vector<1x4x256xf32>
    tpu.vector_store %arg6[%c0_10, %c0_11, %c0_12], %24 {strides = array<i32>} : memref<1x8x256xf32, #tpu.memory_space<vmem>>, vector<1x4x256xf32>,
    %c0_13 = arith.constant 0 : index
    %c4 = arith.constant 4 : index
    %c0_14 = arith.constant 0 : index
    %25 = vector.load %arg6[%c0_13, %c4, %c0_14] : memref<1x8x256xf32, #tpu.memory_space<vmem>>, vector<1x4x256xf32>
    %26 = vector.shape_cast %25 : vector<1x4x256xf32> to vector<4x256xf32>
    %27 = vector.shape_cast %21 : vector<4x256xf32> to vector<1x4x256xf32>
    tpu.vector_store %arg6[%c0_13, %c4, %c0_14], %27 {strides = array<i32>} : memref<1x8x256xf32, #tpu.memory_space<vmem>>, vector<1x4x256xf32>,
    return
  }
  func.func @transform_0(%arg0: i32, %arg1: i32) -> (i32, i32, i32) {
    %c0_i32 = arith.constant 0 : i32
    %c0_i32_0 = arith.constant 0 : i32
    return %arg0, %c0_i32, %arg1 : i32, i32, i32
  }
  func.func @transform_1(%arg0: i32, %arg1: i32) -> (i32, i32, i32) {
    %c0_i32 = arith.constant 0 : i32
    %c0_i32_0 = arith.constant 0 : i32
    return %arg0, %c0_i32, %arg1 : i32, i32, i32
  }
  func.func @transform_2(%arg0: i32, %arg1: i32) -> (i32, i32) {
    %c0_i32 = arith.constant 0 : i32
    %c0_i32_0 = arith.constant 0 : i32
    %c0_i32_1 = arith.constant 0 : i32
    return %c0_i32, %c0_i32_0 : i32, i32
  }
  func.func @transform_3(%arg0: i32, %arg1: i32) -> (i32, i32) {
    %c0_i32 = arith.constant 0 : i32
    %c0_i32_0 = arith.constant 0 : i32
    %c0_i32_1 = arith.constant 0 : i32
    return %c0_i32, %c0_i32_0 : i32, i32
  }
  func.func @transform_4(%arg0: i32, %arg1: i32) -> (i32, i32, i32) {
    %c0_i32 = arith.constant 0 : i32
    %c0_i32_0 = arith.constant 0 : i32
    return %arg0, %c0_i32, %arg1 : i32, i32, i32
  }
}

</mosaic_0001>

<bundles_post_ra>
// kernel: double_conv.7
= control target key start
LH: loop header
LB: loop body
LE: loop exit
PB: predicated region body
PF: predicated region fallthrough
CT: control target
= control target key end

     0   :  { %s495_s12 = smov 0   ;;  %s497_s13 = smov 0   ;;  %s537_s0 = inlined_call_operand.vmem [shape: f32[2,4,256], index: 0, kind: input, shape index: {}]   ;;  %s538_s1 = inlined_call_operand.vmem [shape: f32[4,4], index: 1, kind: input, shape index: {}]   ;;  %s539_s2 = inlined_call_operand.vmem [shape: f32[2,4,256], index: 2, kind: output, shape index: {0}]   ;;  %s540_s3 = inlined_call_operand.vmem [shape: f32[4,2], index: 3, kind: output, shape index: {1}]  }
   0x1   :  { %s499_s14 = smov 0  }
   0x2 LB: > { %s26_s15 = sadd.s32 1, %s464_s13  ;;  %p401_p0 = scmp.ge.s32.totalorder %s468_s14, 1  ;;  %s468_s14 = sphi %s499_s14, %s14_s14   ;;  %s464_s13 = sphi %s497_s13, %s542_s13   ;;  %s460_s12 = sphi %s495_s12, %s541_s12  }
   0x3   : > { %p28_p1 = scmp.ge.s32.totalorder %s26_s15, 2  ;;  %p156_p2 = scmp.lt.s32.totalorder %s468_s14, 3 }
   0x5   : > { %s544_s15 = smov (%p28_p1, %s26_s15), 0  ;;  %p157_p3 = pnand %p401_p0, %p156_p2 }
   0x6   : > { %p189_p4 = scmp.lt.s32.totalorder (!%p157_p3), %s460_s12, 1  ;;  %p208_p5 = scmp.eq.s32.totalorder (!%p157_p3), %s460_s12, 0 }
   0x7   : > { %160 = sbr.rel (%p157_p3) target bundleno = 291 (0x123), region = 28 }
   0xc   : > { %s546_s12 = smov (!%p189_p4, %s460_s12), 1  ;;  %213 = sbr.rel (!%p208_p5) target bundleno = 17 (0x11), region = 32  ;;  %vm214_vm0 = vcmask (%p208_p5), 11264   ;;  %v470_v0 = vmov (%p208_p5), 0.0  }
   0xd   : > { %s409_s16 = sshll.u32 %s546_s12, 3  ;;  %215 = vst.msk [vmem:[#allocation2] sm:$0xf] (%p208_p5), %vm214_vm0, %v470_v0 }
   0xe   : > { %s196_s19 = scalar_lea.vmem %s537_s0, %s409_s16  ;;  %s519_s22 = scalar_lea.vmem %s539_s2, %s409_s16 }
  0x11 PF: > { %v216_v1 = vld [vmem:[%s538_s1] sm:$0xf]  ;;  %v471_v2 = vmov 0   ;;  %v472_v3 = vmov 2   ;;  %v473_v4 = vmov 1   ;;  %v474_v5 = vmov 3  }
  0x12   : > { %441 = vset.pattern.permute.xlu0 %v471_v2  ;;  %443 = vset.pattern.permute.xlu1 %v472_v3  ;;  %v217_v6 = vld [vmem:[%s196_s19] sm:$0xff]  ;;  %vm277_vm1 = vcmask 1043456   ;;  %vm288_vm2 = vcmask 3072   ;;  %vm299_vm3 = vcmask 11272   ;;  %vm302_vm4 = vcmask 11264  }
  0x13   : > { %220 = vperm.xlu0 %441, %v216_v1   ;;  %247 = vperm.xlu1 %443, %v216_v1   ;;  %v224_v9 = vperm.slane %v217_v6, 0  ;;  %v225_v10 = vperm.slane %v217_v6, 4  ;;  %v236_v11 = vperm.slane %v217_v6, 1  ;;  %v237_v12 = vperm.slane %v217_v6, 5 }
  0x14   : > { %v250_v13 = vperm.slane %v217_v6, 2  ;;  %v251_v14 = vperm.slane %v217_v6, 6  ;;  %v264_v15 = vperm.slane %v217_v6, 3  ;;  %v265_v16 = vperm.slane %v217_v6, 7  ;;  %v281_v51 = vld [vmem:[#allocation2] sm:$0xf] }
  0x15   : > { %v228_v17 = vperm.slane %v224_v9, 0  ;;  %v229_v18 = vperm.slane %v225_v10, 0  ;;  %v240_v19 = vperm.slane %v236_v11, 1  ;;  %v241_v20 = vperm.slane %v237_v12, 1 }
  0x16   : > { %v254_v21 = vperm.slane %v250_v13, 2  ;;  %v255_v22 = vperm.slane %v251_v14, 2  ;;  %v268_v23 = vperm.slane %v264_v15, 3  ;;  %v269_v24 = vperm.slane %v265_v16, 3 }
  0x1b   : > { %442 = vset.pattern.permute.xlu0 %v473_v4  ;;  %444 = vset.pattern.permute.xlu1 %v474_v5 }
  0x1c   : > { %233 = vperm.xlu0 %442, %v216_v1   ;;  %261 = vperm.xlu1 %444, %v216_v1  }
  0x24   : > { %445 = vset.pattern.permute.xlu0 %v474_v5 }
  0x85   : > { %v221_v7 = vpop.permute.xlu0 %220  ;;  %v248_v8 = vpop.permute.xlu1 %247 }
  0x86   : > { %v230_v27 = vmul.f32 %v228_v17, %v221_v7  ;;  %v231_v28 = vmul.f32 %v229_v18, %v221_v7  ;;  %v256_v31 = vmul.f32 %v254_v21, %v248_v8  ;;  %v257_v32 = vmul.f32 %v255_v22, %v248_v8 }
  0x8e   : > { %v234_v25 = vpop.permute.xlu0 %233  ;;  %v262_v26 = vpop.permute.xlu1 %261 }
  0x8f   : > { %v242_v29 = vmul.f32 %v240_v19, %v234_v25  ;;  %v243_v30 = vmul.f32 %v241_v20, %v234_v25  ;;  %v270_v35 = vmul.f32 %v268_v23, %v262_v26  ;;  %v271_v36 = vmul.f32 %v269_v24, %v262_v26 }
  0x91   : > { %v244_v33 = vadd.f32 %v242_v29, %v230_v27  ;;  %v245_v34 = vadd.f32 %v243_v30, %v231_v28 }
  0x93   : > { %v258_v37 = vadd.f32 %v256_v31, %v244_v33  ;;  %v259_v38 = vadd.f32 %v257_v32, %v245_v34 }
  0x95   : > { %v272_v39 = vadd.f32 %v270_v35, %v258_v37  ;;  %v273_v40 = vadd.f32 %v271_v36, %v259_v38 }
  0x97   : > { %v276_v41 = vrot.slane %v273_v40, 4  ;;  %v282_v42 = vsel %vm277_vm1, %v272_v39, 0.0  ;;  %v283_v43 = vsel %vm277_vm1, %v273_v40, 0.0  ;;  %v291_v46 = vmul.f32 %v272_v39, %v272_v39 }
  0x98   : > { %v284_v44 = vadd.f32 %v283_v43, %v282_v42  ;;  %v292_v47 = vmul.f32 %v273_v40, %v273_v40 }
  0x99   : > { %v278_v45 = vsel %vm277_vm1, %v272_v39, %v276_v41  ;;  %v293_v48 = vsel %vm277_vm1, %v291_v46, 0.0 }
  0x9a   : > { %280 = vst [vmem:[%s519_s22] sm:$0xff] %v278_v45  ;;  %285 = vadd.xlane.f32.xlu2 %v284_v44  ;;  %v294_v49 = vsel %vm277_vm1, %v292_v47, 0.0 }
  0x9b   : > { %v295_v50 = vadd.f32 %v294_v49, %v293_v48 }
  0xa2   : > { %296 = vadd.xlane.f32.xlu2 %v295_v50 }
 0x10d   : > { %v286_v52 = vpop.xlane.xlu2 %285 }
 0x10e   : > { %v287_v53 = vadd.f32 %v286_v52, %v281_v51 }
 0x110   : > { %289 = vst.msk [vmem:[#allocation2] sm:$0xf] %vm288_vm2, %v287_v53 }
 0x115   : > { %v297_v55 = vpop.xlane.xlu2 %296 }
 0x117   : > { %v290_v54 = vld [vmem:[#allocation2] sm:$0xf] }
 0x118   : > { %v298_v56 = vadd.f32 %v297_v55, %v290_v54 }
 0x11a   : > { %300 = vst.msk [vmem:[#allocation2] sm:$0xf] %vm299_vm3, %v298_v56 }
 0x121   : > { %v301_v57 = vld [vmem:[#allocation2] sm:$0xf] }
 0x122   : > { %303 = vst.msk [vmem:[%s540_s3] sm:$0xf] %vm302_vm4, %v301_v57 }
 0x123 PF: > { %s14_s14 = sadd.s32 1, %s468_s14   ;;  %s541_s12 = smov %s464_s13 }
 0x124   : > { %p11_p6 = scmp.ge.s32.totalorder %s14_s14, 4   ;;  %s542_s13 = smov %s544_s15 }
 0x126   :  { %13 = sbr.rel (!%p11_p6) target bundleno = 2 (0x2), region = 70 }

// kernel: double_conv.10
= control target key start
LH: loop header
LB: loop body
LE: loop exit
PB: predicated region body
PF: predicated region fallthrough
CT: control target
= control target key end

     0   :  { %s759_s21 = smov 0   ;;  %s761_s22 = smov 0   ;;  %s827_s0 = inlined_call_operand.vmem [shape: f32[2,4,256], index: 0, kind: input, shape index: {}]   ;;  %s828_s1 = inlined_call_operand.vmem [shape: f32[2,4,256], index: 1, kind: input, shape index: {}]   ;;  %s829_s2 = inlined_call_operand.vmem [shape: f32[8,1], index: 2, kind: input, shape index: {}]   ;;  %s830_s3 = inlined_call_operand.vmem [shape: f32[8,1], index: 3, kind: input, shape index: {}]   ;;  %s831_s4 = inlined_call_operand.vmem [shape: f32[4,8], index: 4, kind: input, shape index: {}]   ;;  %s832_s5 = inlined_call_operand.vmem [shape: f32[2,4,256], index: 5, kind: output, shape index: {0}]   ;;  %s833_s6 = inlined_call_operand.vmem [shape: f32[4,2], index: 6, kind: output, shape index: {1}]  }
   0x1   :  { %s763_s23 = smov 0  }
   0x2 LB: > { %s29_s24 = sadd.s32 1, %s707_s22  ;;  %p630_p0 = scmp.ge.s32.totalorder %s711_s23, 1  ;;  %s711_s23 = sphi %s763_s23, %s17_s23   ;;  %s707_s22 = sphi %s761_s22, %s835_s22   ;;  %s703_s21 = sphi %s759_s21, %s834_s21  }
   0x3   : > { %p31_p1 = scmp.ge.s32.totalorder %s29_s24, 2  ;;  %p248_p2 = scmp.lt.s32.totalorder %s711_s23, 3 }
   0x5   : > { %s837_s24 = smov (%p31_p1, %s29_s24), 0  ;;  %p249_p3 = pnand %p630_p0, %p248_p2 }
   0x6   : > { %p296_p4 = scmp.lt.s32.totalorder (!%p249_p3), %s703_s21, 1  ;;  %p325_p5 = scmp.eq.s32.totalorder (!%p249_p3), %s703_s21, 0 }
   0x7   : > { %252 = sbr.rel (%p249_p3) target bundleno = 308 (0x134), region = 40 }
   0xc   : > { %s839_s21 = smov (!%p296_p4, %s703_s21), 1  ;;  %330 = sbr.rel (!%p325_p5) target bundleno = 17 (0x11), region = 44  ;;  %vm331_vm0 = vcmask (%p325_p5), 11264   ;;  %v713_v0 = vmov (%p325_p5), 0.0  }
   0xd   : > { %s777_s25 = sshll.u32 %s839_s21, 3  ;;  %332 = vst.msk [vmem:[#allocation2] sm:$0xf] (%p325_p5), %vm331_vm0, %v713_v0 }
   0xe   : > { %s303_s28 = scalar_lea.vmem %s827_s0, %s777_s25  ;;  %s313_s7 = scalar_lea.vmem %s828_s1, %s777_s25 }
   0xf   : > { %s323_s10 = scalar_lea.vmem %s832_s5, %s777_s25 }
  0x11 PF: > { %v371_v1 = vld [vmem:[%s831_s4] sm:$0xf]  ;;  %v714_v3 = vmov 0   ;;  %v715_v4 = vmov 4   ;;  %v716_v6 = vmov 1   ;;  %v717_v7 = vmov 5  }
  0x12   : > { %v333_v2 = vld [vmem:[%s829_s2] sm:$0xff]  ;;  %680 = vset.pattern.permute.xlu1 %v714_v3  ;;  %679 = vset.pattern.permute.xlu0 %v714_v3  ;;  %v718_v8 = vmov 2   ;;  %v719_v9 = vmov 6   ;;  %v720_v10 = vmov 3   ;;  %v721_v11 = vmov 7  }
  0x13   : > { %374 = vperm.xlu1 %680, %v371_v1   ;;  %338 = vperm.xlu0 %679, %v333_v2   ;;  %v334_v5 = vld [vmem:[%s830_s3] sm:$0xff]  ;;  %v722_v12 = vmov 839922192   ;;  %v723_v14 = vmov 1985246804   ;;  %vm488_vm1 = vcmask 1043456  }
  0x14   : > { %682 = vset.pattern.permute.xlu2 %v715_v4  ;;  %v341_v13 = vunpack.c.l.s4 %v722_v12  ;;  %v359_v15 = vunpack.c.l.s4 %v723_v14  ;;  %v335_v22 = vld [vmem:[%s303_s28] sm:$0xff]  ;;  %vm499_vm2 = vcmask 3072   ;;  %vm510_vm3 = vcmask 11272  }
  0x15   : > { %429 = vperm.xlu2 %682, %v371_v1   ;;  %v357_v23 = vld [vmem:[%s313_s7] sm:$0xff]  ;;  %vm513_vm4 = vcmask 11264  }
  0x16   : > { %v342_v16 = vunpack.c.0.s8 %v341_v13  ;;  %v360_v17 = vunpack.c.0.s8 %v359_v15 }
  0x1b   : > { %681 = vset.pattern.permute.xlu1 %v716_v6  ;;  %348 = vperm.xlu0 %679, %v334_v5  }
  0x1c   : > { %387 = vperm.xlu1 %681, %v371_v1  }
  0x1d   : > { %683 = vset.pattern.permute.xlu2 %v717_v7 }
  0x1e   : > { %442 = vperm.xlu2 %683, %v371_v1  }
  0x23   : > { %684 = vset.pattern.permute.xlu0 %v718_v8 }
  0x24   : > { %685 = vset.pattern.permute.xlu1 %v719_v9  ;;  %401 = vperm.xlu0 %684, %v371_v1  }
  0x25   : > { %456 = vperm.xlu1 %685, %v371_v1  }
  0x26   : > { %686 = vset.pattern.permute.xlu2 %v720_v10 }
  0x27   : > { %415 = vperm.xlu2 %686, %v371_v1  }
  0x2c   : > { %688 = vset.pattern.permute.xlu0 %v721_v11 }
  0x2d   : > { %687 = vset.pattern.permute.xlu1 %v721_v11 }
  0x2e   : > { %470 = vperm.xlu1 %687, %v371_v1  }
  0x6f   : > { %v430_v24 = vpop.permute.xlu2 %429 }
  0x78   : > { %v443_v39 = vpop.permute.xlu2 %442 }
  0x85   : > { %v375_v18 = vpop.permute.xlu1 %374  ;;  %v339_v19 = vpop.permute.xlu0 %338 }
  0x86   : > { %v343_v20 = vperm.slane %v339_v19, %v342_v16  ;;  %v361_v21 = vperm.slane %v339_v19, %v360_v17 }
  0x88   : > { %v345_v25 = vmul.f32 %v343_v20, %v335_v22  ;;  %v363_v26 = vmul.f32 %v361_v21, %v357_v23 }
  0x8d   : > { %v349_v27 = vpop.permute.xlu0 %348 }
  0x8e   : > { %v353_v28 = vperm.slane %v349_v27, %v342_v16  ;;  %v367_v29 = vperm.slane %v349_v27, %v360_v17  ;;  %v388_v30 = vpop.permute.xlu1 %387  ;;  %v416_v16 = vpop.permute.xlu2 %415 }
  0x90   : > { %v355_v31 = vadd.f32 %v353_v28, %v345_v25  ;;  %v369_v32 = vadd.f32 %v367_v29, %v363_v26 }
  0x92   : > { %v356_v33 = vmax.f32 %v355_v31, 0.0  ;;  %v370_v34 = vmax.f32 %v369_v32, 0.0 }
  0x94   : > { %v378_v35 = vperm.slane %v356_v33, 0  ;;  %v379_v36 = vperm.slane %v356_v33, 4  ;;  %v390_v37 = vperm.slane %v356_v33, 1  ;;  %v391_v38 = vperm.slane %v356_v33, 5 }
  0x95   : > { %v433_v40 = vperm.slane %v370_v34, 0  ;;  %v434_v41 = vperm.slane %v370_v34, 4  ;;  %v445_v42 = vperm.slane %v370_v34, 1  ;;  %v446_v43 = vperm.slane %v370_v34, 5 }
  0x96   : > { %v382_v44 = vperm.slane %v378_v35, 0  ;;  %v383_v45 = vperm.slane %v379_v36, 0  ;;  %v394_v46 = vperm.slane %v390_v37, 1  ;;  %v395_v47 = vperm.slane %v391_v38, 1  ;;  %v402_v9 = vpop.permute.xlu0 %401 }
  0x97   : > { %v437_v48 = vperm.slane %v433_v40, 0  ;;  %v438_v49 = vperm.slane %v434_v41, 0  ;;  %v449_v50 = vperm.slane %v445_v42, 1  ;;  %v450_v51 = vperm.slane %v446_v43, 1  ;;  %v457_v52 = vpop.permute.xlu1 %456 }
  0x98   : > { %v384_v53 = vmul.f32 %v382_v44, %v375_v18  ;;  %v385_v54 = vmul.f32 %v383_v45, %v375_v18  ;;  %v396_v55 = vmul.f32 %v394_v46, %v388_v30  ;;  %v397_v56 = vmul.f32 %v395_v47, %v388_v30 }
  0x99   : > { %v439_v57 = vmul.f32 %v437_v48, %v430_v24  ;;  %v440_v58 = vmul.f32 %v438_v49, %v430_v24  ;;  %v451_v59 = vmul.f32 %v449_v50, %v443_v39  ;;  %v452_v60 = vmul.f32 %v450_v51, %v443_v39  ;;  %v492_v48 = vld [vmem:[#allocation2] sm:$0xf] }
  0x9a   : > { %v418_v61 = vperm.slane %v356_v33, 3  ;;  %v419_v62 = vperm.slane %v356_v33, 7  ;;  %v398_v63 = vadd.f32 %v396_v55, %v384_v53  ;;  %v399_v0 = vadd.f32 %v397_v56, %v385_v54 }
  0x9b   : > { %v459_v1 = vperm.slane %v370_v34, 2  ;;  %v460_v2 = vperm.slane %v370_v34, 6  ;;  %v453_v3 = vadd.f32 %v451_v59, %v439_v57  ;;  %v454_v4 = vadd.f32 %v452_v60, %v440_v58 }
  0x9c   : > { %v404_v5 = vperm.slane %v356_v33, 2  ;;  %v405_v6 = vperm.slane %v356_v33, 6  ;;  %v473_v10 = vperm.slane %v370_v34, 3  ;;  %v474_v11 = vperm.slane %v370_v34, 7 }
  0x9d   : > { %v463_v7 = vperm.slane %v459_v1, 2  ;;  %v464_v8 = vperm.slane %v460_v2, 2  ;;  %v422_v12 = vperm.slane %v418_v61, 3  ;;  %v423_v13 = vperm.slane %v419_v62, 3 }
  0x9e   : > { %v408_v14 = vperm.slane %v404_v5, 2  ;;  %v409_v15 = vperm.slane %v405_v6, 2  ;;  %v477_v19 = vperm.slane %v473_v10, 3  ;;  %v478_v20 = vperm.slane %v474_v11, 3 }
  0x9f   : > { %v465_v17 = vmul.f32 %v463_v7, %v457_v52  ;;  %v466_v18 = vmul.f32 %v464_v8, %v457_v52  ;;  %v424_v28 = vmul.f32 %v422_v12, %v416_v16  ;;  %v425_v29 = vmul.f32 %v423_v13, %v416_v16 }
  0xa0   : > { %v410_v21 = vmul.f32 %v408_v14, %v402_v9  ;;  %v411_v22 = vmul.f32 %v409_v15, %v402_v9  ;;  %v471_v23 = vpop.permute.xlu1 %470 }
  0xa1   : > { %v467_v24 = vadd.f32 %v465_v17, %v453_v3  ;;  %v468_v25 = vadd.f32 %v466_v18, %v454_v4  ;;  %v479_v26 = vmul.f32 %v477_v19, %v471_v23  ;;  %v480_v27 = vmul.f32 %v478_v20, %v471_v23 }
  0xa2   : > { %v412_v30 = vadd.f32 %v410_v21, %v398_v63  ;;  %v413_v31 = vadd.f32 %v411_v22, %v399_v0 }
  0xa3   : > { %v481_v32 = vadd.f32 %v479_v26, %v467_v24  ;;  %v482_v33 = vadd.f32 %v480_v27, %v468_v25 }
  0xa4   : > { %v426_v34 = vadd.f32 %v424_v28, %v412_v30  ;;  %v427_v35 = vadd.f32 %v425_v29, %v413_v31 }
  0xa6   : > { %v483_v36 = vadd.f32 %v481_v32, %v426_v34  ;;  %v484_v37 = vadd.f32 %v482_v33, %v427_v35 }
  0xa8   : > { %v487_v38 = vrot.slane %v484_v37, 4  ;;  %v493_v39 = vsel %vm488_vm1, %v483_v36, 0.0  ;;  %v494_v40 = vsel %vm488_vm1, %v484_v37, 0.0  ;;  %v502_v41 = vmul.f32 %v483_v36, %v483_v36 }
  0xa9   : > { %v495_v42 = vadd.f32 %v494_v40, %v493_v39  ;;  %v503_v43 = vmul.f32 %v484_v37, %v484_v37 }
  0xaa   : > { %v489_v44 = vsel %vm488_vm1, %v483_v36, %v487_v38  ;;  %v504_v45 = vsel %vm488_vm1, %v502_v41, 0.0 }
  0xab   : > { %496 = vadd.xlane.f32.xlu2 %v495_v42  ;;  %491 = vst [vmem:[%s323_s10] sm:$0xff] %v489_v44  ;;  %v505_v46 = vsel %vm488_vm1, %v503_v43, 0.0 }
  0xac   : > { %v506_v47 = vadd.f32 %v505_v46, %v504_v45 }
  0xae   : > { %507 = vadd.xlane.f32.xlu0 %v506_v47 }
 0x11e   : > { %v497_v49 = vpop.xlane.xlu2 %496 }
 0x11f   : > { %v498_v50 = vadd.f32 %v497_v49, %v492_v48 }
 0x121   : > { %500 = vst.msk [vmem:[#allocation2] sm:$0xf] %vm499_vm2, %v498_v50  ;;  %v508_v51 = vpop.xlane.xlu0 %507 }
 0x128   : > { %v501_v52 = vld [vmem:[#allocation2] sm:$0xf] }
 0x129   : > { %v509_v53 = vadd.f32 %v508_v51, %v501_v52 }
 0x12b   : > { %511 = vst.msk [vmem:[#allocation2] sm:$0xf] %vm510_vm3, %v509_v53 }
 0x132   : > { %v512_v54 = vld [vmem:[#allocation2] sm:$0xf] }
 0x133   : > { %514 = vst.msk [vmem:[%s833_s6] sm:$0xf] %vm513_vm4, %v512_v54 }
 0x134 PF: > { %s17_s23 = sadd.s32 1, %s711_s23   ;;  %s834_s21 = smov %s707_s22 }
 0x135   : > { %p14_p6 = scmp.ge.s32.totalorder %s17_s23, 4   ;;  %s835_s22 = smov %s837_s24 }
 0x137   :  { %16 = sbr.rel (!%p14_p6) target bundleno = 2 (0x2), region = 85 }

// kernel: double_conv.9
= control target key start
LH: loop header
LB: loop body
LE: loop exit
PB: predicated region body
PF: predicated region fallthrough
CT: control target
= control target key end

     0   :  { %s595_s23 = smov 0   ;;  %s641_s0 = inlined_call_operand.vmem [shape: f32[2,4,256], index: 0, kind: input, shape index: {}]   ;;  %s642_s1 = inlined_call_operand.vmem [shape: f32[4,1], index: 1, kind: input, shape index: {}]   ;;  %s643_s2 = inlined_call_operand.vmem [shape: f32[4,1], index: 2, kind: input, shape index: {}]   ;;  %s644_s3 = inlined_call_operand.vmem [shape: f32[4,1], index: 3, kind: input, shape index: {}]   ;;  %s645_s4 = inlined_call_operand.<no memory space> [shape: f32[1,1], index: 4, kind: input, shape index: {}]   ;;  %s646_s5 = inlined_call_operand.vmem [shape: f32[2,4,256], index: 5, kind: output, shape index: {0}]   ;;  %s647_s6 = inlined_call_operand.vmem [shape: f32[4,2], index: 6, kind: output, shape index: {1}]  }
   0x1   :  { %v12_v0 = vstv %s645_s4 }
   0x2   :  { %13 = vst [vmem:[#allocation3] sm:$0x1] %v12_v0 }
   0x3 LB: > { %s504_s24 = sadd.s32 4294967295, %s552_s23   ;;  %p508_p0 = scmp.ge.s32.totalorder %s552_s23, 1  ;;  %s552_s23 = sphi %s595_s23, %s19_s23  }
   0x4   : > { %p212_p1 = scmp.lt.s32.totalorder %s552_s23, 3 }
   0x6   : > { %p213_p2 = pnand %p508_p0, %p212_p1 }
   0x7   : > { %p242_p3 = scmp.lt.s32.totalorder (!%p213_p2), %s504_s24, 1  ;;  %p513_p4 = scmp.ne.s32.totalorder (!%p213_p2), %s504_s24, 0 }
   0x8   : > { %216 = sbr.rel (%p213_p2) target bundleno = 613 (0x265), region = 40 }
   0xd   : > { %s243_s25 = scalar_select %p242_p3, %s504_s24, 1 }
   0xe   : > { %255 = sbr.rel (%p513_p4) target bundleno = 21 (0x15), region = 44 }
   0xf   : > { %s521_s26 = sshll.u32 %s243_s25, 3 }
  0x10   : > { %s246_s28 = scalar_lea.vmem %s641_s0, %s521_s26  ;;  %s609_s7 = scalar_lea.vmem %s646_s5, %s521_s26 }
  0x13   : > { %vm256_vm0 = vcmask 11264   ;;  %v554_v1 = vmov 0.0  }
  0x14   : > { %257 = vst.msk [vmem:[#allocation2] sm:$0xf] %vm256_vm0, %v554_v1 }
  0x15 PF: > { %v259_v2 = vld [vmem:[%s642_s1] sm:$0xf]  ;;  %v555_v3 = vmov 0   ;;  %v319_v6 = vld [vmem:[#allocation3] sm:$0x1]  ;;  %vm288_vm1 = vcmask 1043456  }
  0x16   : > { %534 = vset.pattern.permute.xlu0 %v555_v3  ;;  %535 = vset.pattern.permute.xlu1 %v555_v3  ;;  %v295_v4 = vld [vmem:[%s644_s3] sm:$0xf]  ;;  %v556_v7 = vmov 839922192   ;;  %vm422_vm14 = vcmask 3072   ;;  %vm438_vm15 = vcmask 11272  }
  0x17   : > { %262 = vperm.xlu0 %534, %v259_v2   ;;  %298 = vperm.xlu1 %535, %v295_v4   ;;  %v270_v5 = vld [vmem:[%s643_s2] sm:$0xf]  ;;  %v265_v8 = vunpack.c.l.s4 %v556_v7  ;;  %vm441_vm0 = vcmask 11264  }
  0x18   : > { %v258_v12 = vld [vmem:[%s246_s28] sm:$0xff] }
  0x19   : > { %v266_v10 = vunpack.c.0.s8 %v265_v8 }
  0x1f   : > { %273 = vperm.xlu0 %534, %v270_v5   ;;  %322 = vperm.xlu1 %535, %v319_v6  }
  0x89   : > { %v263_v9 = vpop.permute.xlu0 %262  ;;  %v299_v23 = vpop.permute.xlu1 %298 }
  0x8a   : > { %v267_v11 = vperm.slane %v263_v9, %v266_v10  ;;  %v303_v24 = vperm.slane %v299_v23, %v266_v10 }
  0x8c   : > { %v269_v14 = vmul.f32 %v267_v11, %v258_v12 }
  0x91   : > { %v274_v13 = vpop.permute.xlu0 %273  ;;  %v323_v30 = vpop.permute.xlu1 %322 }
  0x92   : > { %v278_v15 = vperm.slane %v274_v13, %v266_v10  ;;  %v325_v33 = vperm.slane %v323_v30, 0 }
  0x94   : > { %v280_v16 = vadd.f32 %v278_v15, %v269_v14 }
  0x96   : > { %v620_v17 = vmax.f32 %v280_v16, 0.0 }
  0x98   : > { %283 = vst [vmem:[#allocation1] ss:$2 sm:$0xff] %v620_v17  ;;  %v305_v25 = vmul.f32 %v303_v24, %v620_v17 }
  0x9a   : > { %v514_v26 = vrot.slane %v305_v25, 9  ;;  %v515_v28 = vrot.slane %v305_v25, 10  ;;  %v516_v31 = vrot.slane %v305_v25, 11 }
  0x9c   : > { %v310_v27 = vadd.f32 %v514_v26, %v305_v25 }
  0x9e   : > { %v314_v29 = vadd.f32 %v515_v28, %v310_v27 }
  0x9f   : > { %v284_v18 = vld.sshfl [vmem:[#allocation1] sm:$0xff pattern:$0x75316420]  ;;  %v285_v19 = vld.sshfl [vmem:[#allocation1 + $0x8] sm:$0xff pattern:$0x75316420] }
  0xa0   : > { %v289_v20 = vsel %vm288_vm1, %v284_v18, 0.0  ;;  %v290_v21 = vsel %vm288_vm1, %v285_v19, 0.0  ;;  %v318_v32 = vadd.f32 %v516_v31, %v314_v29 }
  0xa1   : > { %v291_v22 = vadd.f32 %v290_v21, %v289_v20 }
  0xa2   : > { %v326_v34 = vadd.f32 %v325_v33, %v318_v32 }
  0xa3   : > { %292 = vadd.xlane.f32.xlu2 %v291_v22 }
  0xa4   : > { %v328_v35 = vperm.slane %v326_v34, 0  ;;  %v329_v36 = vperm.slane %v326_v34, 4 }
  0xa6   : > { %v332_v38 = vperm.slane %v328_v35, 0  ;;  %v333_v39 = vperm.slane %v329_v36, 0 }
 0x116   : > { %v293_v37 = vpop.xlane.xlu2 %292 }
 0x117   : > { %v294_v40 = vmul.f32 0.00390625, %v293_v37 }
 0x119   : > { %v334_v41 = vsub.f32 %v332_v38, %v294_v40  ;;  %v335_v42 = vsub.f32 %v333_v39, %v294_v40 }
 0x11b   : > { %v336_v43 = vmul.f32 %v334_v41, %v334_v41  ;;  %v337_v44 = vmul.f32 %v335_v42, %v335_v42 }
 0x11d   : > { %v338_v45 = vsel %vm288_vm1, %v336_v43, 0.0  ;;  %v339_v46 = vsel %vm288_vm1, %v337_v44, 0.0 }
 0x11e   : > { %v340_v47 = vadd.f32 %v339_v46, %v338_v45 }
 0x120   : > { %341 = vadd.xlane.f32.xlu2 %v340_v47 }
 0x193   : > { %v342_v48 = vpop.xlane.xlu2 %341 }
 0x194   : > { %v343_v49 = vmul.f32 0.00390625, %v342_v48 }
 0x196   : > { %v344_v50 = vmul.f32 2.0, %v343_v49 }
 0x198   : > { %v345_v51 = vadd.f32 1.1920929e-07, %v344_v50 }
 0x19a   : > { %536 = vrcp.f32 %v345_v51  ;;  %v357_v55 = vand.u32 2147483648, %v345_v51  ;;  %v355_v57 = vand.u32 2147483647, %v345_v51  ;;  %vm351_vm3 = vweird.f32 %v345_v51 }
 0x19c   : > { %v358_v59 = vor.u32 1.1754944e-38, %v357_v55  ;;  %vm356_vm5 = vcmp.eq.f32.partialorder %v355_v57, 8.507059e+37 }
 0x1a0   : > { %v537_v52 = vpop.eup %536 }
 0x1a1   : > { %v347_v53 = vmul.f32 %v537_v52, %v345_v51  ;;  %vm352_vm2 = vweird.f32 %v537_v52 }
 0x1a2   : > { %vm353_vm4 = vmor %vm351_vm3, %vm352_vm2 }
 0x1a3   : > { %v348_v54 = vsub.f32 1.0, %v347_v53 }
 0x1a5   : > { %v349_v56 = vmul.f32 %v537_v52, %v348_v54 }
 0x1a7   : > { %v350_v58 = vadd.f32 %v537_v52, %v349_v56 }
 0x1a9   : > { %v354_v60 = vsel %vm353_vm4, %v537_v52, %v350_v58 }
 0x1aa   : > { %v359_v61 = vsel %vm356_vm5, %v358_v59, %v354_v60 }
 0x1ab   : > { %v360_v62 = vmul.f32 %v359_v61, %v336_v43  ;;  %v361_v63 = vmul.f32 %v359_v61, %v337_v44 }
 0x1ad   : > { %v362_v0 = vadd.f32 0.5, %v360_v62  ;;  %v363_v1 = vadd.f32 0.5, %v361_v63 }
 0x1af   : > { %v517_v2 = vmul.f32 -1.442695, %v362_v0  ;;  %v518_v3 = vmul.f32 -1.442695, %v363_v1 }
 0x1b1   : > { %538 = vpow2.f32 %v517_v2 }
 0x1b2   : > { %540 = vpow2.f32 %v518_v3 }
 0x1b7   : > { %v539_v4 = vpop.eup %538 }
 0x1b8   : > { %v541_v5 = vpop.eup %540  ;;  %v370_v6 = vadd.f32 1.0, %v539_v4 }
 0x1b9   : > { %v371_v7 = vadd.f32 1.0, %v541_v5 }
 0x1ba   : > { %542 = vrcp.f32 %v370_v6  ;;  %vm377_vm8 = vweird.f32 %v370_v6  ;;  %v383_v20 = vand.u32 2147483648, %v370_v6  ;;  %v381_v21 = vand.u32 2147483647, %v370_v6 }
 0x1bb   : > { %544 = vrcp.f32 %v371_v7  ;;  %v398_v15 = vand.u32 2147483648, %v371_v7  ;;  %v396_v18 = vand.u32 2147483647, %v371_v7  ;;  %vm392_vm10 = vweird.f32 %v371_v7 }
 0x1bc   : > { %v384_v26 = vor.u32 1.1754944e-38, %v383_v20  ;;  %vm382_vm13 = vcmp.eq.f32.partialorder %v381_v21, 8.507059e+37 }
 0x1bd   : > { %v399_v23 = vor.u32 1.1754944e-38, %v398_v15  ;;  %vm397_vm12 = vcmp.eq.f32.partialorder %v396_v18, 8.507059e+37 }
 0x1c0   : > { %v543_v8 = vpop.eup %542 }
 0x1c1   : > { %v545_v9 = vpop.eup %544  ;;  %v373_v10 = vmul.f32 %v543_v8, %v370_v6  ;;  %vm378_vm6 = vweird.f32 %v543_v8 }
 0x1c2   : > { %v388_v11 = vmul.f32 %v545_v9, %v371_v7  ;;  %vm393_vm7 = vweird.f32 %v545_v9  ;;  %vm379_vm9 = vmor %vm377_vm8, %vm378_vm6 }
 0x1c3   : > { %v374_v12 = vsub.f32 1.0, %v373_v10  ;;  %vm394_vm11 = vmor %vm392_vm10, %vm393_vm7 }
 0x1c4   : > { %v389_v13 = vsub.f32 1.0, %v388_v11 }
 0x1c5   : > { %v375_v14 = vmul.f32 %v543_v8, %v374_v12 }
 0x1c6   : > { %v390_v16 = vmul.f32 %v545_v9, %v389_v13 }
 0x1c7   : > { %v376_v19 = vadd.f32 %v543_v8, %v375_v14 }
 0x1c8   : > { %v391_v22 = vadd.f32 %v545_v9, %v390_v16 }
 0x1c9   : > { %v380_v25 = vsel %vm379_vm9, %v543_v8, %v376_v19 }
 0x1ca   : > { %v395_v24 = vsel %vm394_vm11, %v545_v9, %v391_v22  ;;  %v385_v29 = vsel %vm382_vm13, %v384_v26, %v380_v25 }
 0x1cb   : > { %v400_v27 = vsel %vm397_vm12, %v399_v23, %v395_v24 }
 0x1cc   : > { %v404_v28 = vrot.slane %v400_v27, 4 }
 0x1ce   : > { %v405_v30 = vsel %vm288_vm1, %v385_v29, %v404_v28 }
 0x1cf   : > { %v407_v31 = vmul.f32 %v405_v30, %v620_v17  ;;  %v409_v17 = vld [vmem:[#allocation2] sm:$0xf] }
 0x1d1   : > { %411 = vst [vmem:[#allocation1] ss:$2 sm:$0xff] %v407_v31  ;;  %v425_v32 = vmul.f32 %v407_v31, %v407_v31 }
 0x1d2   : > { %408 = vst [vmem:[%s609_s7] sm:$0xff] %v407_v31 }
 0x1d8   : > { %v412_v33 = vld.sshfl [vmem:[#allocation1] sm:$0xff pattern:$0x75316420]  ;;  %v413_v34 = vld.sshfl [vmem:[#allocation1 + $0x8] sm:$0xff pattern:$0x75316420] }
 0x1d9   : > { %v416_v35 = vsel %vm288_vm1, %v412_v33, 0.0  ;;  %v417_v36 = vsel %vm288_vm1, %v413_v34, 0.0  ;;  %427 = vst [vmem:[#allocation1] ss:$2 sm:$0xff] %v425_v32 }
 0x1da   : > { %v418_v37 = vadd.f32 %v417_v36, %v416_v35 }
 0x1dc   : > { %419 = vadd.xlane.f32.xlu0 %v418_v37 }
 0x1e0   : > { %v428_v38 = vld.sshfl [vmem:[#allocation1] sm:$0xff pattern:$0x75316420]  ;;  %v429_v39 = vld.sshfl [vmem:[#allocation1 + $0x8] sm:$0xff pattern:$0x75316420] }
 0x1e1   : > { %v432_v40 = vsel %vm288_vm1, %v428_v38, 0.0  ;;  %v433_v41 = vsel %vm288_vm1, %v429_v39, 0.0 }
 0x1e2   : > { %v434_v42 = vadd.f32 %v433_v41, %v432_v40 }
 0x1e4   : > { %435 = vadd.xlane.f32.xlu1 %v434_v42 }
 0x24f   : > { %v420_v43 = vpop.xlane.xlu0 %419 }
 0x250   : > { %v421_v44 = vadd.f32 %v420_v43, %v409_v17 }
 0x252   : > { %423 = vst.msk [vmem:[#allocation2] sm:$0xf] %vm422_vm14, %v421_v44 }
 0x257   : > { %v436_v45 = vpop.xlane.xlu1 %435 }
 0x259   : > { %v424_v46 = vld [vmem:[#allocation2] sm:$0xf] }
 0x25a   : > { %v437_v47 = vadd.f32 %v436_v45, %v424_v46 }
 0x25c   : > { %439 = vst.msk [vmem:[#allocation2] sm:$0xf] %vm438_vm15, %v437_v47 }
 0x263   : > { %v440_v48 = vld [vmem:[#allocation2] sm:$0xf] }
 0x264   : > { %442 = vst.msk [vmem:[%s647_s6] sm:$0xf] %vm441_vm0, %v440_v48 }
 0x265 PF: > { %s19_s23 = sadd.s32 1, %s552_s23  }
 0x266   : > { %p16_p5 = scmp.ge.s32.totalorder %s19_s23, 4  }
 0x268   :  { %18 = sbr.rel (!%p16_p5) target bundleno = 3 (0x3), region = 82 }

// kernel: double_conv.8
= control target key start
LH: loop header
LB: loop body
LE: loop exit
PB: predicated region body
PF: predicated region fallthrough
CT: control target
= control target key end

     0   :  { %s1679_s21 = smov 0   ;;  %s2559_s0 = inlined_call_operand.vmem [shape: f32[2,4,16,16], index: 0, kind: input, shape index: {}]   ;;  %s2560_s1 = inlined_call_operand.vmem [shape: f32[4,1,1], index: 1, kind: input, shape index: {}]   ;;  %s2561_s2 = inlined_call_operand.vmem [shape: f32[4,1,1], index: 2, kind: input, shape index: {}]   ;;  %s2562_s3 = inlined_call_operand.vmem [shape: f32[4,3,3], index: 3, kind: input, shape index: {}]   ;;  %s2563_s4 = inlined_call_operand.vmem [shape: f32[2,4,16,16], index: 4, kind: output, shape index: {0}]   ;;  %s2564_s5 = inlined_call_operand.vmem [shape: f32[2,4,16,16], index: 5, kind: output, shape index: {1}]   ;;  %s2565_s6 = inlined_call_operand.vmem [shape: f32[4,4], index: 6, kind: output, shape index: {2}]  }
   0x1   :  { %2598 = sst [smem:[#allocation25_spill]] %s2559_s0 }
   0x2   :  { %2599 = sst [smem:[#allocation26_spill]] %s2560_s1 }
   0x3 LB: > { %s1514_s22 = sadd.s32 4294967295, %s1635_s21   ;;  %p1518_p0 = scmp.ge.s32.totalorder %s1635_s21, 1  ;;  %s1635_s21 = sphi %s1679_s21, %s17_s21  }
   0x4   : > { %p212_p1 = scmp.lt.s32.totalorder %s1635_s21, 3 }
   0x6   : > { %p213_p2 = pnand %p1518_p0, %p212_p1 }
   0x8   : > { %216 = sbr.rel (%p213_p2) target bundleno = 699 (0x2bb), region = 36 }
   0xd   : > { %p247_p3 = scmp.lt.s32.totalorder %s1514_s22, 1  ;;  %s2600_s0 = sld [smem:[#allocation25_spill]] }
   0xe   : > { %p1525_p4 = scmp.ne.s32.totalorder %s1514_s22, 0 }
   0xf   : > { %s248_s23 = scalar_select %p247_p3, %s1514_s22, 1 }
  0x10   : > { %265 = sbr.rel (%p1525_p4) target bundleno = 35 (0x23), region = 40 }
  0x11   : > { %s1528_s24 = sshll.u32 %s248_s23, 6 }
  0x12   : > { %s1695_s30 = scalar_lea.vmem %s2563_s4, %s1528_s24  ;;  %s1700_s9 = scalar_lea.vmem %s2564_s5, %s1528_s24 }
  0x13   : > { %s1690_s27 = scalar_lea.vmem %s2600_s0, %s1528_s24 }
  0x15   : > { %vm266_vm0 = vcmask 27648   ;;  %vm268_vm1 = vcmask 179200   ;;  %v1637_v0 = vmov 0.0   ;;  %vm271_vm2 = vcmask 177152  }
  0x16   : > { %267 = vst.msk [vmem:[#allocation3] sm:$0xf] %vm266_vm0, %v1637_v0 }
  0x17   : > { %269 = vst.msk [vmem:[#allocation2] sm:$0xff] %vm268_vm1, %v1637_v0 }
  0x18   : > { %270 = vst.msk [vmem:[#allocation2 + $0x8] sm:$0xff] %vm268_vm1, %v1637_v0 }
  0x19   : > { %273 = vst.msk [vmem:[#allocation2 + $0x18] sm:$0xff] %vm268_vm1, %v1637_v0 }
  0x1a   : > { %274 = vst.msk [vmem:[#allocation2 + $0x20] sm:$0xff] %vm268_vm1, %v1637_v0 }
  0x1b   : > { %276 = vst.msk [vmem:[#allocation2 + $0x30] sm:$0xff] %vm268_vm1, %v1637_v0 }
  0x1c   : > { %277 = vst.msk [vmem:[#allocation2 + $0x38] sm:$0xff] %vm268_vm1, %v1637_v0 }
  0x1d   : > { %279 = vst.msk [vmem:[#allocation2 + $0x48] sm:$0xff] %vm268_vm1, %v1637_v0 }
  0x1e   : > { %280 = vst.msk [vmem:[#allocation2 + $0x50] sm:$0xff] %vm268_vm1, %v1637_v0 }
  0x1f   : > { %272 = vst.msk [vmem:[#allocation2 + $0x10] sm:$0x3f] %vm271_vm2, %v1637_v0 }
  0x20   : > { %275 = vst.msk [vmem:[#allocation2 + $0x28] sm:$0x3f] %vm271_vm2, %v1637_v0 }
  0x21   : > { %278 = vst.msk [vmem:[#allocation2 + $0x40] sm:$0x3f] %vm271_vm2, %v1637_v0 }
  0x22   : > { %281 = vst.msk [vmem:[#allocation2 + $0x58] sm:$0x3f] %vm271_vm2, %v1637_v0 }
  0x23 PF: > { %s2601_s1 = sld [smem:[#allocation26_spill]]  ;;  %v1638_v2 = vmov 0   ;;  %v1627_v4 = vld [vmem:[%s2561_s2] ss:$0 sm:$0xff]  ;;  %v1628_v8 = vld [vmem:[%s2561_s2 + $0x1] ss:$0 sm:$0xff] }
  0x24   : > { %1619 = vset.pattern.permute.xlu1 %v1638_v2  ;;  %1618 = vset.pattern.permute.xlu0 %v1638_v2  ;;  %v432_v5 = vld [vmem:[%s2562_s3] sm:$0x7]  ;;  %v1625_v9 = vld [vmem:[%s2561_s2 + $0x3] ss:$0 sm:$0xff]  ;;  %v434_v11 = vld [vmem:[%s2562_s3 + $0x8] sm:$0x7] }
  0x25   : > { %1620 = vset.pattern.permute.xlu2 %v1638_v2  ;;  %1531 = vpush %v432_v5  ;;  %v1626_v10 = vld [vmem:[%s2561_s2 + $0x2] ss:$0 sm:$0xff]  ;;  %s1639_s10 = smov 127   ;;  %v435_v12 = vld [vmem:[%s2562_s3 + $0xc] sm:$0x7]  ;;  %s1640_s15 = smov 126  }
  0x26   : > { %339 = vperm.xlu2 %1620, %v1627_v4   ;;  %v433_v13 = vld [vmem:[%s2562_s3 + $0x4] sm:$0x7]  ;;  %v1743_v14 = vrot.slane %v434_v11, 1  ;;  %v1749_v15 = vrot.slane %v432_v5, 1  ;;  %v1758_v17 = vrot.slane %v435_v12, 1  ;;  %v1766_v18 = vrot.slane %v434_v11, 2 }
  0x27   : > { %1533 = vpush %v433_v13  ;;  %v1751_v16 = vrot.slane %v433_v13, 1  ;;  %v1768_v19 = vrot.slane %v433_v13, 2  ;;  %v1776_v20 = vrot.slane %v432_v5, 2  ;;  %v1784_v21 = vrot.slane %v435_v12, 2  ;;  %v282_v22 = vld [vmem:[%s1690_s27] sm:$0xff]  ;;  %v283_v23 = vld [vmem:[%s1690_s27 + $0x8] sm:$0xff] }
  0x28   : > { %1535 = vpush %v434_v11  ;;  %vm370_vm3 = vcmask 130048   ;;  %v284_v33 = vld [vmem:[%s1690_s27 + $0x10] sm:$0xff]  ;;  %v285_v34 = vld [vmem:[%s1690_s27 + $0x18] sm:$0xff]  ;;  %s1641_s16 = smov 3   ;;  %v286_v44 = vld [vmem:[%s1690_s27 + $0x20] sm:$0xff]  ;;  %vm411_vm4 = vcmask 154648  }
  0x29   : > { %v1621_v1 = vld [vmem:[%s2601_s1 + $0x2] ss:$0 sm:$0xff]  ;;  %v1622_v3 = vld [vmem:[%s2601_s1] ss:$0 sm:$0xff]  ;;  %v1623_v6 = vld [vmem:[%s2601_s1 + $0x3] ss:$0 sm:$0xff]  ;;  %1537 = vpush %v435_v12 }
  0x2a   : > { %311 = vperm.xlu1 %1619, %v1621_v1   ;;  %303 = vperm.xlu0 %1618, %v1622_v3   ;;  %v1624_v7 = vld [vmem:[%s2601_s1 + $0x1] ss:$0 sm:$0xff]  ;;  %v288_v40 = vld [vmem:[%s1690_s27 + $0x30] sm:$0xff]  ;;  %v289_v41 = vld [vmem:[%s1690_s27 + $0x38] sm:$0xff]  ;;  %s2566_s8 = smov 125   ;;  %vm905_vm5 = vcmask 1041408  }
  0x2b   : > { %v287_v45 = vld [vmem:[%s1690_s27 + $0x28] sm:$0xff]  ;;  %vm636_vm6 = vcmask 1044480   ;;  %vm1199_vm7 = vcmask 1041409   ;;  %vm1201_vm8 = vcmask 1042434   ;;  %vm1203_vm9 = vcmask 1043459  }
  0x2c   : > { %vm1207_vm10 = vcmask 3072   ;;  %vm1279_vm11 = vcmask 11272   ;;  %vm1343_vm12 = vcmask 19472   ;;  %vm1415_vm13 = vcmask 27672  }
  0x2d   : > { %vm1418_vm14 = vcmask 27648  }
  0x2e   : > { %343 = vperm.xlu2 %1620, %v1628_v8  }
  0x32   : > { %315 = vperm.xlu1 %1619, %v1623_v6   ;;  %307 = vperm.xlu0 %1618, %v1624_v7  }
  0x36   : > { %462 = vrot.lane.b32.xlu2 %v433_v13, %s1639_s10 }
  0x3a   : > { %351 = vperm.xlu1 %1619, %v1625_v9   ;;  %347 = vperm.xlu0 %1618, %v1626_v10  }
  0x3e   : > { %530 = vrot.lane.b32.xlu2 %v433_v13, %s1640_s15 }
  0x42   : > { %460 = vrot.lane.b32.xlu1 %v432_v5, %s1639_s10  ;;  %464 = vrot.lane.b32.xlu0 %v434_v11, %s1639_s10 }
  0x46   : > { %675 = vrot.lane.b32.xlu2 %v1751_v16, %s1639_s10 }
  0x4a   : > { %466 = vrot.lane.b32.xlu1 %v435_v12, %s1639_s10  ;;  %532 = vrot.lane.b32.xlu0 %v434_v11, %s1640_s15 }
  0x4e   : > { %773 = vrot.lane.b32.xlu2 %v1743_v14, %s1640_s15 }
  0x52   : > { %528 = vrot.lane.b32.xlu1 %v432_v5, %s1640_s15  ;;  %677 = vrot.lane.b32.xlu0 %v1743_v14, %s1639_s10 }
  0x56   : > { %944 = vrot.lane.b32.xlu2 %v1768_v19, %s1639_s10  ;;  %s1864_s27 = spop %1531 }
  0x5a   : > { %534 = vrot.lane.b32.xlu1 %v435_v12, %s1640_s15  ;;  %769 = vrot.lane.b32.xlu0 %v1749_v15, %s1640_s15 }
  0x5e   : > { %1038 = vrot.lane.b32.xlu2 %v1776_v20, %s1640_s15 }
  0x62   : > { %673 = vrot.lane.b32.xlu1 %v1749_v15, %s1639_s10  ;;  %775 = vrot.lane.b32.xlu0 %v1758_v17, %s1640_s15 }
  0x66   : > { %1044 = vrot.lane.b32.xlu2 %v1784_v21, %s1640_s15 }
  0x6a   : > { %679 = vrot.lane.b32.xlu1 %v1758_v17, %s1639_s10  ;;  %946 = vrot.lane.b32.xlu0 %v1766_v18, %s1639_s10 }
  0x72   : > { %771 = vrot.lane.b32.xlu1 %v1751_v16, %s1640_s15  ;;  %1040 = vrot.lane.b32.xlu0 %v1768_v19, %s1640_s15 }
  0x7a   : > { %942 = vrot.lane.b32.xlu1 %v1776_v20, %s1639_s10 }
  0x80   : > { %v340_v25 = vpop.permute.xlu2 %339 }
  0x82   : > { %948 = vrot.lane.b32.xlu1 %v1784_v21, %s1639_s10 }
  0x88   : > { %v344_v39 = vpop.permute.xlu2 %343 }
  0x8a   : > { %1042 = vrot.lane.b32.xlu1 %v1766_v18, %s1640_s15 }
  0x90   : > { %v463_v63 = vpop.permute.xlu2 %462 }
  0x98   : > { %v531_v2 = vpop.permute.xlu2 %530 }
  0x9c   : > { %v312_v24 = vpop.permute.xlu1 %311  ;;  %v304_v26 = vpop.permute.xlu0 %303 }
  0x9d   : > { %v318_v27 = vmul.f32 %v304_v26, %v282_v22  ;;  %v319_v28 = vmul.f32 %v304_v26, %v283_v23  ;;  %v322_v50 = vmul.f32 %v312_v24, %v286_v44  ;;  %v323_v51 = vmul.f32 %v312_v24, %v287_v45 }
  0x9f   : > { %v354_v29 = vadd.f32 %v340_v25, %v318_v27  ;;  %v355_v30 = vadd.f32 %v340_v25, %v319_v28 }
  0xa0   : > { %v676_v5 = vpop.permute.xlu2 %675 }
  0xa1   : > { %v1796_v31 = vmax.f32 %v354_v29, 0.0  ;;  %v1798_v32 = vmax.f32 %v355_v30, 0.0 }
  0xa3   : > { %2602 = vst [vmem:[#allocation4_spill] sm:$0xff] %v1796_v31  ;;  %389 = vrot.lane.b32.xlu0 %v1798_v32, %s1641_s16  ;;  %387 = vrot.lane.b32.xlu2 %v1796_v31, %s1641_s16 }
  0xa4   : > { %2603 = vst [vmem:[#allocation5_spill] sm:$0xff] %v1798_v32  ;;  %v316_v35 = vpop.permute.xlu1 %315  ;;  %v308_v36 = vpop.permute.xlu0 %307 }
  0xa5   : > { %371 = vst.msk [vmem:[%s1695_s30] sm:$0xff] %vm370_vm3, %v1796_v31  ;;  %v320_v37 = vmul.f32 %v308_v36, %v284_v33  ;;  %v321_v38 = vmul.f32 %v308_v36, %v285_v34  ;;  %v324_v48 = vmul.f32 %v316_v35, %v288_v40  ;;  %v325_v49 = vmul.f32 %v316_v35, %v289_v41 }
  0xa6   : > { %372 = vst.msk [vmem:[%s1695_s30 + $0x8] sm:$0xff] %vm370_vm3, %v1798_v32 }
  0xa7   : > { %v356_v42 = vadd.f32 %v344_v39, %v320_v37  ;;  %v357_v43 = vadd.f32 %v344_v39, %v321_v38 }
  0xa8   : > { %v774_v9 = vpop.permute.xlu2 %773 }
  0xa9   : > { %v1816_v46 = vmax.f32 %v356_v42, 0.0  ;;  %v1818_v47 = vmax.f32 %v357_v43, 0.0 }
  0xab   : > { %2604 = vst [vmem:[#allocation6_spill] sm:$0xff] %v1816_v46  ;;  %391 = vrot.lane.b32.xlu1 %v1816_v46, %s1641_s16  ;;  %393 = vrot.lane.b32.xlu2 %v1818_v47, %s1641_s16 }
  0xac   : > { %2605 = vst [vmem:[#allocation7_spill] sm:$0xff] %v1818_v47  ;;  %v352_v52 = vpop.permute.xlu1 %351  ;;  %v348_v55 = vpop.permute.xlu0 %347 }
  0xad   : > { %373 = vst.msk [vmem:[%s1695_s30 + $0x10] sm:$0xff] %vm370_vm3, %v1816_v46  ;;  %v360_v53 = vadd.f32 %v352_v52, %v324_v48  ;;  %v361_v54 = vadd.f32 %v352_v52, %v325_v49  ;;  %v358_v56 = vadd.f32 %v348_v55, %v322_v50  ;;  %v359_v57 = vadd.f32 %v348_v55, %v323_v51 }
  0xae   : > { %374 = vst.msk [vmem:[%s1695_s30 + $0x18] sm:$0xff] %vm370_vm3, %v1818_v47 }
  0xaf   : > { %v1830_v58 = vmax.f32 %v360_v53, 0.0  ;;  %v1832_v59 = vmax.f32 %v361_v54, 0.0  ;;  %v1834_v60 = vmax.f32 %v358_v56, 0.0  ;;  %v1836_v61 = vmax.f32 %v359_v57, 0.0 }
  0xb0   : > { %v945_v12 = vpop.permute.xlu2 %944 }
  0xb1   : > { %2606 = vst [vmem:[#allocation8_spill] sm:$0xff] %v1830_v58  ;;  %395 = vrot.lane.b32.xlu0 %v1834_v60, %s1641_s16 }
  0xb2   : > { %2607 = vst [vmem:[#allocation9_spill] sm:$0xff] %v1832_v59 }
  0xb3   : > { %2608 = vst [vmem:[#allocation10_spill] sm:$0xff] %v1834_v60  ;;  %397 = vrot.lane.b32.xlu1 %v1836_v61, %s1641_s16  ;;  %399 = vrot.lane.b32.xlu2 %v1830_v58, %s1641_s16 }
  0xb4   : > { %2609 = vst [vmem:[#allocation11_spill] sm:$0xff] %v1836_v61  ;;  %v461_v62 = vpop.permute.xlu1 %460  ;;  %v465_v0 = vpop.permute.xlu0 %464 }
  0xb5   : > { %377 = vst.msk [vmem:[%s1695_s30 + $0x30] sm:$0xff] %vm370_vm3, %v1830_v58 }
  0xb6   : > { %378 = vst.msk [vmem:[%s1695_s30 + $0x38] sm:$0xff] %vm370_vm3, %v1832_v59 }
  0xb7   : > { %375 = vst.msk [vmem:[%s1695_s30 + $0x20] sm:$0xff] %vm370_vm3, %v1834_v60 }
  0xb8   : > { %376 = vst.msk [vmem:[%s1695_s30 + $0x28] sm:$0xff] %vm370_vm3, %v1836_v61  ;;  %s1868_s30 = spop %1533 }
  0xb9   : > { %1539 = vpush %v461_v62  ;;  %401 = vrot.lane.b32.xlu0 %v1832_v59, %s1641_s16  ;;  %s1870_s17 = spop %1535 }
  0xba   : > { %1541 = vpush %v463_v63  ;;  %s1872_s18 = spop %1537 }
  0xbb   : > { %1543 = vpush %v465_v0  ;;  %v2569_v35 = vstv %s1872_s18 }
  0xbc   : > { %v467_v1 = vpop.permute.xlu1 %466  ;;  %v533_v3 = vpop.permute.xlu0 %532 }
  0xbd   : > { %1545 = vpush %v467_v1 }
  0xc4   : > { %v529_v4 = vpop.permute.xlu1 %528  ;;  %v678_v7 = vpop.permute.xlu0 %677 }
  0xc5   : > { %1547 = vpush %v529_v4 }
  0xc6   : > { %1549 = vpush %v531_v2 }
  0xc7   : > { %1551 = vpush %v533_v3 }
  0xcc   : > { %v535_v6 = vpop.permute.xlu1 %534  ;;  %v770_v10 = vpop.permute.xlu0 %769 }
  0xcd   : > { %1553 = vpush %v535_v6 }
  0xce   : > { %1555 = vpush %v1749_v15 }
  0xcf   : > { %1557 = vpush %v1751_v16 }
  0xd0   : > { %1559 = vpush %v1743_v14  ;;  %v1039_v14 = vpop.permute.xlu2 %1038 }
  0xd1   : > { %1561 = vpush %v1758_v17 }
  0xd4   : > { %v674_v8 = vpop.permute.xlu1 %673  ;;  %v776_v13 = vpop.permute.xlu0 %775 }
  0xd5   : > { %1563 = vpush %v674_v8 }
  0xd6   : > { %1565 = vpush %v676_v5 }
  0xd7   : > { %1567 = vpush %v678_v7 }
  0xd8   : > { %v1045_v17 = vpop.permute.xlu2 %1044 }
  0xdc   : > { %v680_v11 = vpop.permute.xlu1 %679  ;;  %v947_v15 = vpop.permute.xlu0 %946 }
  0xdd   : > { %1569 = vpush %v680_v11 }
  0xde   : > { %1571 = vpush %v770_v10 }
  0xe4   : > { %v772_v22 = vpop.permute.xlu1 %771 }
  0xe5   : > { %1573 = vpush %v772_v22 }
  0xe6   : > { %1575 = vpush %v774_v9 }
  0xe7   : > { %1577 = vpush %v776_v13 }
  0xe8   : > { %1579 = vpush %v1776_v20 }
  0xe9   : > { %1581 = vpush %v1768_v19 }
  0xea   : > { %1583 = vpush %v1766_v18  ;;  %s1874_s19 = spop %1539  ;;  %v1041_v18 = vpop.permute.xlu0 %1040 }
  0xeb   : > { %1585 = vpush %v1784_v21  ;;  %s1876_s20 = spop %1541  ;;  %v469_v23 = vstv %s1874_s19 }
  0xec   : > { %v943_v16 = vpop.permute.xlu1 %942  ;;  %s1878_s22 = spop %1543  ;;  %v472_v2 = vstv %s1876_s20 }
  0xed   : > { %1587 = vpush %v943_v16  ;;  %v475_v11 = vstv %s1878_s22 }
  0xee   : > { %1589 = vpush %v945_v12  ;;  %s1880_s23 = spop %1545 }
  0xef   : > { %1591 = vpush %v947_v15  ;;  %v478_v12 = vstv %s1880_s23 }
  0xf4   : > { %v949_v19 = vpop.permute.xlu1 %948 }
  0xf5   : > { %1593 = vpush %v949_v19 }
  0xf6   : > { %1595 = vpush %v1039_v14  ;;  %s1882_s24 = spop %1547 }
  0xf7   : > { %1597 = vpush %v1041_v18  ;;  %s1884_s25 = spop %1549  ;;  %v537_v10 = vstv %s1882_s24 }
  0xf8   : > { %s1886_s26 = spop %1551  ;;  %v540_v15 = vstv %s1884_s25 }
  0xfc   : > { %v1043_v20 = vpop.permute.xlu1 %1042 }
  0xfd   : > { %1599 = vpush %v1043_v20  ;;  %v388_v21 = vpop.permute.xlu2 %387 }
  0xfe   : > { %1601 = vpush %v1045_v17  ;;  %s1889_s28 = spop %1553 }
  0xff   : > { %412 = vst.msk [vmem:[#allocation2 + $0x3] sm:$0xff] %vm411_vm4, %v388_v21  ;;  %s1556_s29 = spop %1555  ;;  %v2570_v17 = vstv %s1889_s28 }
 0x100   : > { %v1892_v24 = vstv %s1556_s29  ;;  %s1558_s7 = spop %1557 }
 0x101   : > { %s1903_s10 = spop %1559  ;;  %v1905_v29 = vstv %s1558_s7 }
 0x102   : > { %s1562_s11 = spop %1561  ;;  %v2028_v21 = vstv %s1903_s10  ;;  %s1643_s10 = smov 122  }
 0x103   : > { %v1929_v38 = vstv %s1562_s11 }
 0x105   : > { %v394_v26 = vpop.permute.xlu2 %393 }
 0x106   : > { %v1894_v25 = vld [vmem:[#allocation2] sm:$0xff]  ;;  %415 = vst.msk [vmem:[#allocation2 + $0x23] sm:$0xff] %vm411_vm4, %v394_v26  ;;  %s1913_s12 = spop %1563 }
 0x107   : > { %2610 = vst [vmem:[#allocation12_spill] sm:$0xff] %v1894_v25  ;;  %v480_v27 = vmul.f32 %v469_v23, %v1894_v25  ;;  %v1899_v28 = vmul.f32 %v1892_v24, %v1894_v25  ;;  %s1916_s13 = spop %1565  ;;  %v682_v13 = vstv %s1913_s12  ;;  %v2024_v18 = vmul.f32 %v537_v10, %v1894_v25 }
 0x108   : > { %s1918_s14 = spop %1567 }
 0x109   : > { %496 = vrot.lane.b32.xlu2 %v480_v27, %s2566_s8  ;;  %v2037_v27 = vmul.f32 %v682_v13, %v1894_v25 }
 0x10d   : > { %v1907_v30 = vld [vmem:[#allocation2 + $0x28] sm:$0x3f]  ;;  %v400_v33 = vpop.permute.xlu2 %399 }
 0x10e   : > { %v1911_v34 = vmul.f32 %v1905_v29, %v1907_v30  ;;  %418 = vst.msk [vmem:[#allocation2 + $0x4b] sm:$0xff] %vm411_vm4, %v400_v33  ;;  %s1920_s15 = spop %1569  ;;  %v2040_v33 = vstv %s1918_s14 }
 0x10f   : > { %s1923_s16 = spop %1571 }
 0x115   : > { %v1925_v36 = vld [vmem:[#allocation2 + $0x48] sm:$0xff]  ;;  %v390_v37 = vpop.permute.xlu0 %389 }
 0x116   : > { %s1927_s19 = spop %1573  ;;  %413 = vst.msk [vmem:[#allocation2 + $0xb] sm:$0xff] %vm411_vm4, %v390_v37  ;;  %v1939_v39 = vmul.f32 %v2569_v35, %v1925_v36  ;;  %v1943_v41 = vmul.f32 %v1929_v38, %v1925_v36  ;;  %v486_v37 = vmul.f32 %v478_v12, %v1925_v36 }
 0x117   : > { %s1932_s29 = spop %1575 }
 0x118   : > { %s1934_s7 = spop %1577  ;;  %2611 = vst [vmem:[#allocation13_spill] sm:$0xff] %v1939_v39 }
 0x119   : > { %s1580_s8 = spop %1579 }
 0x11a   : > { %v870_v40 = vstv %s1580_s8  ;;  %s1582_s0 = spop %1581 }
 0x11b   : > { %v1946_v42 = vmul.f32 %v870_v40, %v1894_v25  ;;  %v1948_v43 = vstv %s1582_s0  ;;  %s1950_s11 = spop %1583 }
 0x11c   : > { %v1954_v44 = vmul.f32 %v1948_v43, %v1907_v30  ;;  %s1586_s1 = spop %1585 }
 0x11d   : > { %v1956_v45 = vstv %s1586_s1  ;;  %v1958_v48 = vld [vmem:[#allocation2 + $0x8] sm:$0xff]  ;;  %v1960_v49 = vld [vmem:[#allocation2 + $0x10] sm:$0x3f]  ;;  %v392_v51 = vpop.permute.xlu1 %391  ;;  %s2615_s1 = smov 125  }
 0x11e   : > { %2612 = vst [vmem:[#allocation14_spill] sm:$0xff] %v1960_v49  ;;  %v1964_v50 = vmul.f32 %v1956_v45, %v1925_v36  ;;  %s1588_s0 = spop %1587  ;;  %v1967_v52 = vmul.f32 %v870_v40, %v1958_v48  ;;  %v1970_v53 = vmul.f32 %v870_v40, %v1960_v49  ;;  %v481_v55 = vmul.f32 %v469_v23, %v1958_v48 }
 0x11f   : > { %414 = vst.msk [vmem:[#allocation2 + $0x1b] sm:$0xff] %vm411_vm4, %v392_v51  ;;  %v1973_v54 = vstv %s1588_s0  ;;  %v1997_v6 = vmul.f32 %v1892_v24, %v1958_v48  ;;  %v2001_v7 = vmul.f32 %v1892_v24, %v1960_v49  ;;  %s2007_s20 = spop %1589  ;;  %v2031_v23 = vstv %s1916_s13 }
 0x120   : > { %2613 = vst [vmem:[#allocation15_spill] sm:$0xff] %v1973_v54  ;;  %v962_v56 = vmul.f32 %v1973_v54, %v1894_v25  ;;  %v1980_v57 = vmul.f32 %v1973_v54, %v1958_v48  ;;  %498 = vrot.lane.b32.xlu0 %v481_v55, %s2615_s1  ;;  %s2011_s8 = spop %1591  ;;  %v2045_v40 = vstv %s1950_s11  ;;  %v2052_v55 = vmul.f32 %v2570_v17, %v1925_v36 }
 0x121   : > { %v2092_v26 = vmul.f32 %v682_v13, %v1960_v49 }
 0x122   : > { %2614 = vst [vmem:[#allocation16_spill] sm:$0xff] %v1980_v57  ;;  %v986_v62 = vrot.slane %v962_v56, 6  ;;  %v2568_v63 = vrot.slane %v1980_v57, 6  ;;  %v549_v56 = vmul.f32 %v537_v10, %v1958_v48 }
 0x123   : > { %v396_v0 = vpop.permute.xlu0 %395 }
 0x124   : > { %v1987_v1 = vsel %vm905_vm5, %v986_v62, %v2568_v63  ;;  %416 = vst.msk [vmem:[#allocation2 + $0x33] sm:$0xff] %vm411_vm4, %v396_v0  ;;  %v2057_v0 = vstv %s2007_s20  ;;  %v2076_v62 = vstv %s2011_s8 }
 0x125   : > { %2616 = vst [vmem:[#allocation17_spill] sm:$0xff] %v1987_v1  ;;  %v398_v5 = vpop.permute.xlu1 %397 }
 0x126   : > { %v1991_v3 = vld [vmem:[#allocation2 + $0x18] sm:$0xff]  ;;  %v1993_v4 = vld [vmem:[#allocation2 + $0x20] sm:$0xff]  ;;  %417 = vst.msk [vmem:[#allocation2 + $0x3b] sm:$0xff] %vm411_vm4, %v398_v5  ;;  %s1594_s0 = spop %1593  ;;  %v2061_v5 = vmul.f32 %v682_v13, %v1958_v48 }
 0x127   : > { %v482_v8 = vmul.f32 %v472_v2, %v1991_v3  ;;  %v483_v9 = vmul.f32 %v472_v2, %v1993_v4  ;;  %s1596_s22 = spop %1595  ;;  %v2047_v51 = vstv %s1594_s0  ;;  %2617 = vst [vmem:[#allocation18_spill] sm:$0xff] %v2057_v0  ;;  %v550_v58 = vmul.f32 %v540_v15, %v1991_v3 }
 0x128   : > { %s1598_s23 = spop %1597  ;;  %2619 = vst [vmem:[#allocation20_spill] sm:$0xff] %v2076_v62  ;;  %v551_v32 = vmul.f32 %v540_v15, %v1993_v4  ;;  %v2123_v15 = vmul.f32 %v2031_v23, %v1993_v4 }
 0x129   : > { %500 = vrot.lane.b32.xlu1 %v482_v8, %s2615_s1  ;;  %502 = vrot.lane.b32.xlu2 %v483_v9, %s2615_s1  ;;  %v2080_v8 = vmul.f32 %v2047_v51, %v1925_v36  ;;  %v1050_v35 = vstv %s1598_s23 }
 0x12a   : > { %v1062_v59 = vmul.f32 %v1050_v35, %v1993_v4 }
 0x12b   : > { %v2016_v22 = vld [vmem:[#allocation2 + $0x30] sm:$0xff]  ;;  %v402_v14 = vpop.permute.xlu0 %401  ;;  %v1001_v13 = vrot.slane %v2080_v8, 6  ;;  %v1063_v8 = vmul.f32 %v1050_v35, %v1907_v30 }
 0x12c   : > { %419 = vst.msk [vmem:[#allocation2 + $0x53] sm:$0xff] %vm411_vm4, %v402_v14  ;;  %v484_v19 = vmul.f32 %v475_v11, %v2016_v22  ;;  %v2067_v14 = vmul.f32 %v2057_v0, %v1991_v3  ;;  %v968_v16 = vmul.f32 %v2076_v62, %v2016_v22  ;;  %v1088_v1 = vrot.slane %v1062_v59, 6 }
 0x12d   : > { %v2033_v24 = vld [vmem:[#allocation2 + $0x38] sm:$0xff] }
 0x12e   : > { %504 = vrot.lane.b32.xlu0 %v484_v19, %s2615_s1  ;;  %v485_v2 = vmul.f32 %v475_v11, %v2033_v24  ;;  %v1047_v19 = vstv %s1596_s22  ;;  %v2073_v11 = vmul.f32 %v2057_v0, %v1993_v4  ;;  %s1600_s24 = spop %1599  ;;  %v991_v9 = vrot.slane %v2067_v14, 6 }
 0x12f   : > { %v1058_v20 = vmul.f32 %v1047_v19, %v1894_v25  ;;  %v1053_v61 = vstv %s1600_s24  ;;  %v1059_v47 = vmul.f32 %v1047_v19, %v1958_v48  ;;  %v1060_v46 = vmul.f32 %v1047_v19, %v1960_v49  ;;  %s1602_s25 = spop %1601 }
 0x130   : > { %2618 = vst [vmem:[#allocation19_spill] sm:$0xff] %v2073_v11  ;;  %v1065_v60 = vmul.f32 %v1053_v61, %v2033_v24  ;;  %v1056_v39 = vstv %s1602_s25  ;;  %v696_v14 = vmul.f32 %v2031_v23, %v1991_v3  ;;  %v2622_v25 = vrot.slane %v2073_v11, 6 }
 0x131   : > { %508 = vrot.lane.b32.xlu2 %v486_v37, %s2615_s1  ;;  %506 = vrot.lane.b32.xlu1 %v485_v2, %s2615_s1  ;;  %v2086_v37 = vmul.f32 %v2076_v62, %v2033_v24  ;;  %v1061_v2 = vmul.f32 %v1050_v35, %v1991_v3  ;;  %v1082_v10 = vrot.slane %v1058_v20, 6  ;;  %v1083_v35 = vrot.slane %v1059_v47, 6 }
 0x132   : > { %v1085_v20 = vrot.slane %v1060_v46, 6  ;;  %v1064_v62 = vmul.f32 %v1053_v61, %v2016_v22  ;;  %v1093_v49 = vrot.slane %v1065_v60, 6  ;;  %v1067_v46 = vmul.f32 %v1056_v39, %v1925_v36 }
 0x133   : > { %2620 = vst [vmem:[#allocation21_spill] sm:$0xff] %v2086_v37  ;;  %v2088_v63 = vld [vmem:[#allocation2 + $0x50] sm:$0xff]  ;;  %v2115_v31 = vld [vmem:[#allocation2 + $0x58] sm:$0x3f]  ;;  %v2148_v60 = vmul.f32 %v2040_v33, %v2033_v24 }
 0x134   : > { %v487_v17 = vmul.f32 %v478_v12, %v2088_v63  ;;  %v2106_v12 = vld [vmem:[#allocation2 + $0x40] sm:$0x3f]  ;;  %v1068_v0 = vmul.f32 %v1056_v39, %v2088_v63  ;;  %v1069_v57 = vmul.f32 %v1056_v39, %v2115_v31 }
 0x135   : > { %v1066_v19 = vmul.f32 %v1053_v61, %v2106_v12  ;;  %v2137_v61 = vmul.f32 %v2047_v51, %v2088_v63 }
 0x136   : > { %510 = vrot.lane.b32.xlu0 %v487_v17, %s2615_s1  ;;  %v996_v17 = vrot.slane %v968_v16, 6  ;;  %v1087_v16 = vrot.slane %v1061_v2, 6  ;;  %v722_v2 = vrot.slane %v696_v14, 3  ;;  %v2623_v14 = vstv %s1886_s26 }
 0x137   : > { %v1095_v47 = vrot.slane %v1066_v19, 6  ;;  %v2597_v39 = vrot.slane %v2137_v61, 6  ;;  %v553_v19 = vmul.f32 %v2623_v14, %v2033_v24  ;;  %v2624_v59 = vmov %v2623_v14 }
 0x138   : > { %v552_v11 = vmul.f32 %v2624_v59, %v2016_v22  ;;  %v2180_v59 = vsel %vm905_vm5, %v1083_v35, %v1085_v20  ;;  %v638_v20 = vrot.slane %v1997_v6, 3 }
 0x139   : > { %564 = vrot.lane.b32.xlu2 %v2024_v18, %s1643_s10  ;;  %568 = vrot.lane.b32.xlu1 %v550_v58, %s1643_s10  ;;  %v2621_v18 = vrot.slane %v2086_v37, 6  ;;  %v1090_v58 = vrot.slane %v1063_v8, 6  ;;  %v2143_v37 = vsel %vm905_vm5, %v991_v9, %v2622_v25  ;;  %v1100_v8 = vrot.slane %v1069_v57, 6 }
 0x13a   : > { %v2158_v25 = vsel %vm905_vm5, %v1087_v16, %v1088_v1  ;;  %v2169_v57 = vsel %vm905_vm5, %v1082_v10, %v1083_v35  ;;  %v2625_v9 = vrot.slane %v2123_v15, 3  ;;  %v2626_v10 = vstv %s1889_s28 }
 0x13b   : > { %v2132_v54 = vsel %vm905_vm5, %v996_v17, %v2621_v18  ;;  %v1092_v17 = vrot.slane %v1064_v62, 6  ;;  %v1098_v18 = vrot.slane %v1068_v0, 6  ;;  %v1097_v62 = vrot.slane %v1067_v46, 6 }
 0x13c   : > { %v2166_v0 = vsel %vm905_vm5, %v1093_v49, %v1095_v47  ;;  %v724_v16 = vsel %vm636_vm6, %v722_v2, %v2625_v9  ;;  %v2177_v46 = vmul.f32 %v2040_v33, %v2106_v12  ;;  %v555_v47 = vmul.f32 %v2626_v10, %v2088_v63 }
 0x13d   : > { %v2191_v14 = vsel %vm905_vm5, %v1092_v17, %v1093_v49  ;;  %v2194_v2 = vsel %vm905_vm5, %v1097_v62, %v1098_v18  ;;  %v2197_v9 = vsel %vm905_vm5, %v1098_v18, %v1100_v8  ;;  %v2629_v35 = vstv %s1872_s18 }
 0x13e   : > { %566 = vrot.lane.b32.xlu0 %v549_v56, %s1643_s10  ;;  %v2163_v56 = vsel %vm905_vm5, %v1001_v13, %v2597_v39  ;;  %v2183_v13 = vsel %vm905_vm5, %v1088_v1, %v1090_v58  ;;  %2627 = vst [vmem:[#allocation22_spill] sm:$0xff] %v2194_v2  ;;  %v2202_v1 = vmul.f32 %v2629_v35, %v2088_v63  ;;  %v2631_v8 = vrot.slane %v1899_v28, 3 }
 0x13f   : > { %2628 = vst [vmem:[#allocation23_spill] sm:$0xff] %v2197_v9  ;;  %v616_v58 = vmul.f32 %v1905_v29, %v1993_v4  ;;  %v622_v49 = vmul.f32 %v1929_v38, %v2088_v63  ;;  %v619_v17 = vmul.f32 %v2028_v21, %v2033_v24  ;;  %v620_v18 = vmul.f32 %v2028_v21, %v2106_v12 }
 0x140   : > { %2630 = vst [vmem:[#allocation24_spill] sm:$0xff] %v2202_v1  ;;  %v2218_v62 = vsel %vm636_vm6, %v2631_v8, %v638_v20  ;;  %v640_v10 = vrot.slane %v2001_v7, 3  ;;  %v2632_v9 = vrot.slane %v1911_v34, 3  ;;  %v623_v7 = vmul.f32 %v1929_v38, %v2115_v31 }
 0x141   : > { %570 = vrot.lane.b32.xlu2 %v551_v32, %s1643_s10  ;;  %574 = vrot.lane.b32.xlu1 %v553_v19, %s1643_s10  ;;  %v615_v19 = vmul.f32 %v1905_v29, %v1991_v3  ;;  %v643_v6 = vrot.slane %v616_v58, 3  ;;  %v618_v29 = vmul.f32 %v2028_v21, %v2016_v22  ;;  %v653_v39 = vrot.slane %v622_v49, 3 }
 0x142   : > { %v648_v32 = vrot.slane %v619_v17, 3  ;;  %v650_v1 = vrot.slane %v620_v18, 3  ;;  %v2230_v28 = vsel %vm636_vm6, %v638_v20, %v640_v10  ;;  %v655_v38 = vrot.slane %v623_v7, 3 }
 0x143   : > { %v642_v35 = vrot.slane %v615_v19, 3  ;;  %v2227_v2 = vsel %vm636_vm6, %v643_v6, %v2632_v9  ;;  %v647_v58 = vrot.slane %v618_v29, 3  ;;  %v884_v9 = vmul.f32 %v1948_v43, %v1991_v3 }
 0x144   : > { %v2243_v34 = vsel %vm636_vm6, %v648_v32, %v650_v1  ;;  %v885_v49 = vmul.f32 %v1948_v43, %v1993_v4  ;;  %v2635_v17 = vrot.slane %v1967_v52, 6  ;;  %v887_v8 = vmul.f32 %v2045_v40, %v2016_v22 }
 0x145   : > { %v2235_v21 = vsel %vm636_vm6, %v642_v35, %v643_v6  ;;  %v2250_v20 = vsel %vm636_vm6, %v647_v58, %v648_v32  ;;  %v911_v18 = vrot.slane %v884_v9, 6  ;;  %v889_v32 = vmul.f32 %v2045_v40, %v2106_v12 }
 0x146   : > { %572 = vrot.lane.b32.xlu0 %v552_v11, %s1643_s10  ;;  %v2633_v11 = vrot.slane %v1943_v41, 3  ;;  %v2634_v41 = vrot.slane %v1970_v53, 6  ;;  %v2269_v43 = vsel %vm636_vm6, %v653_v39, %v655_v38  ;;  %v912_v53 = vrot.slane %v885_v49, 6 }
 0x147   : > { %v2636_v6 = vmov %v2635_v17  ;;  %v2637_v10 = vrot.slane %v1946_v42, 6  ;;  %v891_v29 = vmul.f32 %v1956_v45, %v2088_v63  ;;  %v919_v58 = vrot.slane %v889_v32, 6 }
 0x148   : > { %v2240_v19 = vsel %vm636_vm6, %v2633_v11, %v653_v39  ;;  %v2259_v1 = vsel %vm905_vm5, %v2635_v17, %v2634_v41  ;;  %v916_v7 = vrot.slane %v887_v8, 6  ;;  %v730_v39 = vrot.slane %v2177_v46, 3 }
 0x149   : > { %576 = vrot.lane.b32.xlu2 %v2052_v55, %s1643_s10  ;;  %741 = vrot.lane.b32.xlu1 %v724_v16, %s2615_s1  ;;  %v888_v55 = vmul.f32 %v2045_v40, %v2033_v24  ;;  %v2276_v16 = vsel %vm905_vm5, %v2637_v10, %v2636_v6  ;;  %v892_v40 = vmul.f32 %v1956_v45, %v2115_v31  ;;  %v922_v52 = vrot.slane %v891_v29, 6  ;;  %v2642_v6 = vld [vmem:[#allocation12_spill] sm:$0xff] }
 0x14a   : > { %v2284_v11 = vsel %vm905_vm5, %v911_v18, %v912_v53  ;;  %v2638_v42 = vrot.slane %v1954_v44, 6  ;;  %v717_v38 = vrot.slane %v2037_v27, 3  ;;  %v2639_v41 = vrot.slane %v1964_v50, 6 }
 0x14b   : > { %v917_v35 = vrot.slane %v888_v55, 6  ;;  %v924_v46 = vrot.slane %v892_v40, 6  ;;  %v778_v44 = vstv %s1923_s16  ;;  %v2640_v18 = vrot.slane %v2061_v5, 3 }
 0x14c   : > { %v2289_v9 = vsel %vm905_vm5, %v912_v53, %v2638_v42  ;;  %v2302_v17 = vsel %vm905_vm5, %v2639_v41, %v922_v52  ;;  %v2641_v55 = vrot.slane %v2148_v60, 3  ;;  %v720_v50 = vrot.slane %v2092_v26, 3 }
 0x14d   : > { %v2294_v49 = vsel %vm905_vm5, %v917_v35, %v919_v58  ;;  %v2297_v45 = vsel %vm905_vm5, %v916_v7, %v917_v35  ;;  %v719_v27 = vsel %vm636_vm6, %v717_v38, %v2640_v18  ;;  %v790_v8 = vmul.f32 %v778_v44, %v1958_v48 }
 0x14e   : > { %578 = vrot.lane.b32.xlu0 %v555_v47, %s1643_s10  ;;  %v2309_v47 = vsel %vm905_vm5, %v922_v52, %v924_v46  ;;  %v731_v32 = vsel %vm636_vm6, %v2641_v55, %v730_v39  ;;  %v698_v53 = vmul.f32 %v2031_v23, %v1907_v30  ;;  %v789_v10 = vmul.f32 %v778_v44, %v2642_v6 }
 0x14f   : > { %v2643_v29 = vmov %v2640_v18  ;;  %v814_v58 = vrot.slane %v790_v8, 3  ;;  %v691_v40 = vstv %s1920_s15  ;;  %v699_v26 = vmul.f32 %v2040_v33, %v2016_v22 }
 0x150   : > { %v721_v35 = vsel %vm636_vm6, %v2643_v29, %v720_v50  ;;  %v725_v7 = vrot.slane %v698_v53, 3  ;;  %v813_v39 = vrot.slane %v789_v10, 3  ;;  %v781_v52 = vstv %s1927_s19 }
 0x151   : > { %737 = vrot.lane.b32.xlu2 %v719_v27, %s2615_s1  ;;  %747 = vrot.lane.b32.xlu1 %v731_v32, %s2615_s1  ;;  %v2644_v23 = vrot.slane %v2123_v15, 3  ;;  %v703_v38 = vmul.f32 %v691_v40, %v2088_v63  ;;  %v793_v46 = vmul.f32 %v781_v52, %v1993_v4  ;;  %v702_v41 = vmul.f32 %v691_v40, %v1925_v36 }
 0x152   : > { %v815_v5 = vsel %vm636_vm6, %v813_v39, %v814_v58  ;;  %v794_v33 = vmul.f32 %v781_v52, %v1907_v30  ;;  %v727_v18 = vrot.slane %v699_v26, 3  ;;  %v2645_v27 = vmov %v2641_v55 }
 0x153   : > { %v726_v42 = vsel %vm636_vm6, %v2644_v23, %v725_v7  ;;  %v733_v15 = vrot.slane %v703_v38, 3  ;;  %v819_v32 = vrot.slane %v793_v46, 3  ;;  %v704_v50 = vmul.f32 %v691_v40, %v2115_v31  ;;  %v2646_v7 = vld [vmem:[#allocation14_spill] sm:$0xff] }
 0x154   : > { %v729_v55 = vsel %vm636_vm6, %v727_v18, %v2645_v27  ;;  %v438_v8 = vstv %s1864_s27  ;;  %v732_v53 = vrot.slane %v702_v41, 3  ;;  %v821_v10 = vrot.slane %v794_v33, 3 }
 0x155   : > { %v787_v29 = vstv %s1934_s7  ;;  %v791_v39 = vmul.f32 %v778_v44, %v2646_v7  ;;  %v452_v26 = vmul.f32 %v438_v8, %v2642_v6  ;;  %v735_v23 = vrot.slane %v704_v50, 3 }
 0x156   : > { %739 = vrot.lane.b32.xlu0 %v721_v35, %s2615_s1  ;;  %v734_v35 = vsel %vm636_vm6, %v732_v53, %v733_v15  ;;  %v822_v60 = vsel %vm636_vm6, %v819_v32, %v821_v10  ;;  %v799_v40 = vmul.f32 %v787_v29, %v2088_v63  ;;  %v798_v38 = vmul.f32 %v787_v29, %v1925_v36 }
 0x157   : > { %v816_v46 = vrot.slane %v791_v39, 3  ;;  %v736_v41 = vsel %vm636_vm6, %v733_v15, %v735_v23  ;;  %v792_v33 = vmul.f32 %v781_v52, %v1991_v3  ;;  %v784_v6 = vstv %s1932_s29 }
 0x158   : > { %v829_v44 = vrot.slane %v799_v40, 3  ;;  %v828_v18 = vrot.slane %v798_v38, 3  ;;  %v796_v63 = vmul.f32 %v784_v6, %v2033_v24  ;;  %v795_v52 = vmul.f32 %v784_v6, %v2016_v22 }
 0x159   : > { %743 = vrot.lane.b32.xlu2 %v726_v42, %s2615_s1  ;;  %833 = vrot.lane.b32.xlu1 %v815_v5, %s1643_s10  ;;  %v817_v27 = vsel %vm636_vm6, %v814_v58, %v816_v46  ;;  %v818_v53 = vrot.slane %v792_v33, 3  ;;  %v797_v58 = vmul.f32 %v784_v6, %v2106_v12  ;;  %v2650_v33 = vld [vmem:[#allocation17_spill] sm:$0xff]  ;;  %v2651_v6 = vld [vmem:[#allocation18_spill] sm:$0xff] }
 0x15a   : > { %v830_v36 = vsel %vm636_vm6, %v828_v18, %v829_v44  ;;  %v824_v15 = vrot.slane %v796_v63, 3  ;;  %v823_v39 = vrot.slane %v795_v52, 3  ;;  %v967_v18 = vmul.f32 %v2651_v6, %v1907_v30 }
 0x15e   : > { %745 = vrot.lane.b32.xlu0 %v729_v55, %s2615_s1  ;;  %v2647_v55 = vld [vmem:[#allocation15_spill] sm:$0xff] }
 0x15f   : > { %v964_v50 = vmul.f32 %v2647_v55, %v2646_v7  ;;  %v825_v7 = vsel %vm636_vm6, %v823_v39, %v824_v15  ;;  %v442_v55 = vstv %s1868_s30 }
 0x161   : > { %749 = vrot.lane.b32.xlu2 %v734_v35, %s2615_s1  ;;  %839 = vrot.lane.b32.xlu1 %v822_v60, %s1643_s10  ;;  %v989_v10 = vrot.slane %v964_v50, 6  ;;  %v820_v35 = vsel %vm636_vm6, %v818_v53, %v819_v32  ;;  %v2648_v60 = vld [vmem:[#allocation16_spill] sm:$0xff]  ;;  %v2654_v53 = vld [vmem:[#allocation19_spill] sm:$0xff] }
 0x162   : > { %v2649_v23 = vrot.slane %v2648_v60, 6  ;;  %v2655_v52 = vrot.slane %v2654_v53, 6 }
 0x163   : > { %v497_v42 = vpop.permute.xlu2 %496 }
 0x164   : > { %v520_v5 = vadd.f32 %v497_v42, %v452_v26  ;;  %v800_v26 = vmul.f32 %v787_v29, %v2115_v31  ;;  %v990_v40 = vsel %vm905_vm5, %v2649_v23, %v989_v10  ;;  %v826_v42 = vrot.slane %v797_v58, 3 }
 0x165   : > { %v973_v29 = vmul.f32 %v2047_v51, %v2115_v31  ;;  %v455_v31 = vmul.f32 %v442_v55, %v1993_v4  ;;  %v453_v58 = vmul.f32 %v438_v8, %v1958_v48 }
 0x166   : > { %751 = vrot.lane.b32.xlu0 %v736_v41, %s2615_s1  ;;  %v831_v32 = vrot.slane %v800_v26, 3  ;;  %v827_v38 = vsel %vm636_vm6, %v824_v15, %v826_v42 }
 0x167   : > { %v1004_v41 = vrot.slane %v973_v29, 6  ;;  %v2660_v29 = vld [vmem:[#allocation23_spill] sm:$0xff] }
 0x168   : > { %v832_v46 = vsel %vm636_vm6, %v829_v44, %v831_v32  ;;  %v2653_v44 = vrot.slane %v2137_v61, 6  ;;  %v2656_v61 = vld [vmem:[#allocation21_spill] sm:$0xff] }
 0x169   : > { %835 = vrot.lane.b32.xlu2 %v817_v27, %s1643_s10  ;;  %845 = vrot.lane.b32.xlu1 %v830_v36, %s1643_s10  ;;  %v2652_v27 = vld [vmem:[#allocation20_spill] sm:$0xff]  ;;  %v2657_v15 = vrot.slane %v2656_v61, 6 }
 0x16a   : > { %v970_v63 = vmul.f32 %v2652_v27, %v2106_v12  ;;  %v1005_v50 = vsel %vm905_vm5, %v2653_v44, %v1004_v41  ;;  %v2661_v41 = vld [vmem:[#allocation24_spill] sm:$0xff] }
 0x16c   : > { %v999_v36 = vrot.slane %v970_v63, 6 }
 0x16e   : > { %837 = vrot.lane.b32.xlu0 %v820_v35, %s1643_s10  ;;  %v1000_v10 = vsel %vm905_vm5, %v2657_v15, %v999_v36 }
 0x171   : > { %841 = vrot.lane.b32.xlu2 %v825_v7, %s1643_s10  ;;  %1008 = vrot.lane.b32.xlu1 %v990_v40, %s2615_s1  ;;  %v446_v40 = vstv %s1870_s17 }
 0x176   : > { %843 = vrot.lane.b32.xlu0 %v827_v38, %s1643_s10 }
 0x179   : > { %847 = vrot.lane.b32.xlu2 %v832_v46, %s1643_s10  ;;  %1014 = vrot.lane.b32.xlu1 %v2132_v54, %s2615_s1  ;;  %v994_v54 = vrot.slane %v967_v18, 6 }
 0x17b   : > { %v995_v12 = vsel %vm905_vm5, %v2655_v52, %v994_v54 }
 0x17e   : > { %1006 = vrot.lane.b32.xlu0 %v2650_v33, %s2615_s1 }
 0x181   : > { %1010 = vrot.lane.b32.xlu2 %v2143_v37, %s2615_s1  ;;  %1020 = vrot.lane.b32.xlu1 %v1005_v50, %s2615_s1  ;;  %v2658_v37 = vld [vmem:[#allocation13_spill] sm:$0xff] }
 0x183   : > { %v503_v51 = vpop.permute.xlu2 %502 }
 0x184   : > { %v523_v30 = vadd.f32 %v503_v51, %v455_v31 }
 0x186   : > { %1012 = vrot.lane.b32.xlu0 %v995_v12, %s2615_s1 }
 0x189   : > { %1016 = vrot.lane.b32.xlu2 %v1000_v10, %s2615_s1  ;;  %1106 = vrot.lane.b32.xlu1 %v2158_v25, %s1643_s10  ;;  %v2663_v10 = vld [vmem:[#allocation10_spill] sm:$0xff] }
 0x18b   : > { %v509_v4 = vpop.permute.xlu2 %508 }
 0x18c   : > { %v526_v35 = vadd.f32 %v509_v4, %v2658_v37 }
 0x18e   : > { %1018 = vrot.lane.b32.xlu0 %v2163_v56, %s2615_s1  ;;  %v454_v56 = vmul.f32 %v442_v55, %v1991_v3 }
 0x191   : > { %1102 = vrot.lane.b32.xlu2 %v2169_v57, %s1643_s10  ;;  %1112 = vrot.lane.b32.xlu1 %v2166_v0, %s1643_s10 }
 0x192   : > { %v499_v39 = vpop.permute.xlu0 %498 }
 0x193   : > { %v521_v7 = vadd.f32 %v499_v39, %v453_v58  ;;  %v565_v26 = vpop.permute.xlu2 %564  ;;  %v2664_v58 = vld [vmem:[#allocation5_spill] sm:$0xff] }
 0x194   : > { %v588_v25 = vadd.f32 %v565_v26, %v520_v5  ;;  %v456_v5 = vmul.f32 %v446_v40, %v2016_v22  ;;  %v1146_v39 = vsel %vm370_vm3, %v2664_v58, 0.0 }
 0x196   : > { %1104 = vrot.lane.b32.xlu0 %v2180_v59, %s1643_s10  ;;  %v665_v60 = vadd.f32 %v2218_v62, %v588_v25  ;;  %v2659_v62 = vld [vmem:[#allocation22_spill] sm:$0xff]  ;;  %v2665_v25 = vld [vmem:[#allocation9_spill] sm:$0xff] }
 0x199   : > { %1108 = vrot.lane.b32.xlu2 %v2183_v13, %s1643_s10  ;;  %v457_v13 = vmul.f32 %v446_v40, %v2033_v24 }
 0x19b   : > { %v501_v57 = vpop.permute.xlu1 %500  ;;  %v571_v48 = vpop.permute.xlu2 %570 }
 0x19c   : > { %v522_v23 = vadd.f32 %v501_v57, %v454_v56  ;;  %v591_v8 = vadd.f32 %v571_v48, %v523_v30  ;;  %v2662_v30 = vld [vmem:[#allocation4_spill] sm:$0xff]  ;;  %v1164_v56 = vsel %vm370_vm3, %v2665_v25, 0.0 }
 0x19d   : > { %v1143_v53 = vsel %vm370_vm3, %v2662_v30, 0.0 }
 0x19e   : > { %1110 = vrot.lane.b32.xlu0 %v2191_v14, %s1643_s10  ;;  %v668_v0 = vadd.f32 %v2227_v2, %v591_v8 }
 0x1a0   : > { %v505_v59 = vpop.permute.xlu0 %504 }
 0x1a1   : > { %v524_v42 = vadd.f32 %v505_v59, %v456_v5  ;;  %1114 = vrot.lane.b32.xlu2 %v2659_v62, %s1643_s10 }
 0x1a3   : > { %v577_v3 = vpop.permute.xlu2 %576  ;;  %v507_v32 = vpop.permute.xlu1 %506 }
 0x1a4   : > { %v594_v38 = vadd.f32 %v577_v3, %v526_v35  ;;  %v525_v46 = vadd.f32 %v507_v32, %v457_v13 }
 0x1a6   : > { %1116 = vrot.lane.b32.xlu0 %v2660_v29, %s1643_s10  ;;  %v2437_v14 = vadd.f32 %v2240_v19, %v594_v38 }
 0x1a8   : > { %v511_v2 = vpop.permute.xlu0 %510 }
 0x1a9   : > { %v527_v22 = vadd.f32 %v511_v2, %v2661_v41  ;;  %v2668_v2 = vld [vmem:[#allocation8_spill] sm:$0xff] }
 0x1aa   : > { %v1161_v41 = vsel %vm370_vm3, %v2668_v2, 0.0 }
 0x1ab   : > { %v738_v33 = vpop.permute.xlu2 %737  ;;  %v569_v6 = vpop.permute.xlu1 %568 }
 0x1ac   : > { %v590_v18 = vadd.f32 %v569_v6, %v522_v23 }
 0x1ae   : > { %v2441_v27 = vadd.f32 %v2235_v21, %v590_v18 }
 0x1b0   : > { %v567_v24 = vpop.permute.xlu0 %566 }
 0x1b1   : > { %v589_v63 = vadd.f32 %v567_v24, %v521_v7  ;;  %v761_v7 = vadd.f32 %v738_v33, %v665_v60 }
 0x1b3   : > { %v744_v55 = vpop.permute.xlu2 %743  ;;  %v666_v44 = vadd.f32 %v2230_v28, %v589_v63  ;;  %v575_v50 = vpop.permute.xlu1 %574  ;;  %v1155_v28 = vsel %vm370_vm3, %v2663_v10, 0.0 }
 0x1b4   : > { %v593_v31 = vadd.f32 %v575_v50, %v525_v46  ;;  %v764_v13 = vadd.f32 %v744_v55, %v668_v0 }
 0x1b6   : > { %v2445_v54 = vadd.f32 %v2243_v34, %v593_v31 }
 0x1b8   : > { %v573_v19 = vpop.permute.xlu0 %572 }
 0x1b9   : > { %v592_v51 = vadd.f32 %v573_v19, %v524_v42  ;;  %v2667_v42 = vld [vmem:[#allocation7_spill] sm:$0xff] }
 0x1ba   : > { %v1152_v62 = vsel %vm370_vm3, %v2667_v42, 0.0 }
 0x1bb   : > { %v750_v36 = vpop.permute.xlu2 %749  ;;  %v669_v52 = vadd.f32 %v2250_v20, %v592_v51  ;;  %v742_v21 = vpop.permute.xlu1 %741  ;;  %1144 = vadd.xlane.f32.xlu1 %v1143_v53 }
 0x1bc   : > { %v767_v24 = vadd.f32 %v750_v36, %v2437_v14  ;;  %v763_v51 = vadd.f32 %v742_v21, %v2441_v27  ;;  %v1213_v27 = vmul.f32 %v2667_v42, %v2667_v42 }
 0x1c0   : > { %v579_v12 = vpop.permute.xlu0 %578 }
 0x1c1   : > { %v595_v61 = vadd.f32 %v579_v12, %v527_v22 }
 0x1c3   : > { %v836_v15 = vpop.permute.xlu2 %835  ;;  %v672_v4 = vadd.f32 %v2269_v43, %v595_v61  ;;  %v748_v34 = vpop.permute.xlu1 %747  ;;  %1156 = vadd.xlane.f32.xlu1 %v1155_v28  ;;  %v2666_v43 = vld [vmem:[#allocation6_spill] sm:$0xff] }
 0x1c4   : > { %v1149_v8 = vsel %vm370_vm3, %v2666_v43, 0.0  ;;  %v1212_v40 = vmul.f32 %v2666_v43, %v2666_v43  ;;  %v766_v21 = vadd.f32 %v748_v34, %v2445_v54 }
 0x1c8   : > { %v740_v37 = vpop.permute.xlu0 %739 }
 0x1c9   : > { %v762_v35 = vadd.f32 %v740_v37, %v666_v44  ;;  %v1211_v44 = vmul.f32 %v2664_v58, %v2664_v58  ;;  %v1227_v37 = vsel %vm370_vm3, %v1213_v27, 0.0  ;;  %v1216_v58 = vmul.f32 %v2668_v2, %v2668_v2 }
 0x1ca   : > { %1147 = vadd.xlane.f32.xlu2 %v1146_v39 }
 0x1cb   : > { %v858_v20 = vadd.f32 %v836_v15, %v762_v35  ;;  %v842_v26 = vpop.permute.xlu2 %841  ;;  %v834_v57 = vpop.permute.xlu1 %833  ;;  %1165 = vadd.xlane.f32.xlu1 %v1164_v56  ;;  %v1221_v14 = vsel %vm370_vm3, %v1211_v44, 0.0 }
 0x1cc   : > { %v857_v23 = vadd.f32 %v834_v57, %v761_v7 }
 0x1cd   : > { %v2458_v48 = vadd.f32 %v2259_v1, %v858_v20  ;;  %v1224_v1 = vsel %vm370_vm3, %v1212_v40, 0.0  ;;  %v1236_v20 = vsel %vm370_vm3, %v1216_v58, 0.0 }
 0x1ce   : > { %v934_v60 = vadd.f32 %v2276_v16, %v857_v23  ;;  %v2669_v16 = vld [vmem:[#allocation11_spill] sm:$0xff] }
 0x1cf   : > { %v1215_v22 = vmul.f32 %v2669_v16, %v2669_v16  ;;  %v1158_v18 = vsel %vm370_vm3, %v2669_v16, 0.0 }
 0x1d0   : > { %v746_v5 = vpop.permute.xlu0 %745  ;;  %1150 = vadd.xlane.f32.xlu0 %v1149_v8 }
 0x1d1   : > { %v765_v59 = vadd.f32 %v746_v5, %v669_v52  ;;  %v1233_v55 = vsel %vm370_vm3, %v1215_v22, 0.0 }
 0x1d2   : > { %1153 = vadd.xlane.f32.xlu2 %v1152_v62 }
 0x1d3   : > { %v861_v3 = vadd.f32 %v842_v26, %v765_v59  ;;  %v848_v32 = vpop.permute.xlu2 %847  ;;  %v840_v38 = vpop.permute.xlu1 %839  ;;  %1225 = vadd.xlane.f32.xlu1 %v1224_v1 }
 0x1d4   : > { %v860_v46 = vadd.f32 %v840_v38, %v764_v13 }
 0x1d5   : > { %v2469_v29 = vadd.f32 %v2297_v45, %v861_v3 }
 0x1d6   : > { %v937_v0 = vadd.f32 %v2289_v9, %v860_v46  ;;  %v1210_v9 = vmul.f32 %v2662_v30, %v2662_v30  ;;  %v1214_v30 = vmul.f32 %v2663_v10, %v2663_v10  ;;  %v1217_v10 = vmul.f32 %v2665_v25, %v2665_v25 }
 0x1d8   : > { %v752_v33 = vpop.permute.xlu0 %751  ;;  %1162 = vadd.xlane.f32.xlu0 %v1161_v41  ;;  %v1218_v12 = vsel %vm370_vm3, %v1210_v9, 0.0  ;;  %v1230_v28 = vsel %vm370_vm3, %v1214_v30, 0.0  ;;  %v1239_v54 = vsel %vm370_vm3, %v1217_v10, 0.0 }
 0x1d9   : > { %v768_v6 = vadd.f32 %v752_v33, %v672_v4 }
 0x1da   : > { %1159 = vadd.xlane.f32.xlu2 %v1158_v18 }
 0x1db   : > { %v864_v63 = vadd.f32 %v848_v32, %v768_v6  ;;  %v1011_v45 = vpop.permute.xlu2 %1010  ;;  %v846_v50 = vpop.permute.xlu1 %845  ;;  %1234 = vadd.xlane.f32.xlu1 %v1233_v55 }
 0x1dc   : > { %v863_v31 = vadd.f32 %v846_v50, %v767_v24 }
 0x1dd   : > { %v2485_v19 = vadd.f32 %v2309_v47, %v864_v63 }
 0x1de   : > { %v940_v53 = vadd.f32 %v2302_v17, %v863_v31 }
 0x1e0   : > { %v838_v36 = vpop.permute.xlu0 %837  ;;  %1222 = vadd.xlane.f32.xlu0 %v1221_v14 }
 0x1e1   : > { %v859_v52 = vadd.f32 %v838_v36, %v763_v51 }
 0x1e2   : > { %1219 = vadd.xlane.f32.xlu2 %v1218_v12 }
 0x1e3   : > { %v936_v61 = vadd.f32 %v2284_v11, %v859_v52  ;;  %v1009_v15 = vpop.permute.xlu1 %1008  ;;  %v1017_v47 = vpop.permute.xlu2 %1016 }
 0x1e4   : > { %v1031_v2 = vadd.f32 %v1009_v15, %v2458_v48 }
 0x1e5   : > { %v1032_v8 = vadd.f32 %v1011_v45, %v936_v61 }
 0x1e8   : > { %v844_v4 = vpop.permute.xlu0 %843  ;;  %1231 = vadd.xlane.f32.xlu0 %v1230_v28 }
 0x1e9   : > { %v862_v17 = vadd.f32 %v844_v4, %v766_v21 }
 0x1ea   : > { %1228 = vadd.xlane.f32.xlu2 %v1227_v37 }
 0x1eb   : > { %v939_v11 = vadd.f32 %v2294_v49, %v862_v17  ;;  %v1015_v35 = vpop.permute.xlu1 %1014  ;;  %v1103_v39 = vpop.permute.xlu2 %1102 }
 0x1ec   : > { %v1034_v48 = vadd.f32 %v1015_v35, %v2469_v29 }
 0x1ed   : > { %v1035_v32 = vadd.f32 %v1017_v47, %v939_v11 }
 0x1f0   : > { %v1007_v34 = vpop.permute.xlu0 %1006  ;;  %1240 = vadd.xlane.f32.xlu0 %v1239_v54 }
 0x1f1   : > { %v1030_v7 = vadd.f32 %v1007_v34, %v934_v60 }
 0x1f2   : > { %1237 = vadd.xlane.f32.xlu2 %v1236_v20 }
 0x1f3   : > { %v1126_v26 = vadd.f32 %v1103_v39, %v1030_v7  ;;  %v1021_v49 = vpop.permute.xlu1 %1020  ;;  %v1109_v56 = vpop.permute.xlu2 %1108 }
 0x1f4   : > { %v1037_v9 = vadd.f32 %v1021_v49, %v2485_v19 }
 0x1f5   : > { %1134 = vst.msk [vmem:[%s1700_s9] sm:$0xff] %vm370_vm3, %v1126_v26  ;;  %v1282_v25 = vsel %vm370_vm3, %v1126_v26, 0.0 }
 0x1f6   : > { %1283 = vadd.xlane.f32.xlu1 %v1282_v25 }
 0x1f8   : > { %v1013_v57 = vpop.permute.xlu0 %1012 }
 0x1f9   : > { %v1033_v23 = vadd.f32 %v1013_v57, %v937_v0  ;;  %v1346_v0 = vmul.f32 %v1126_v26, %v1126_v26 }
 0x1fb   : > { %v1129_v43 = vadd.f32 %v1109_v56, %v1033_v23  ;;  %v1107_v40 = vpop.permute.xlu1 %1106  ;;  %v1115_v13 = vpop.permute.xlu2 %1114  ;;  %v1354_v24 = vsel %vm370_vm3, %v1346_v0, 0.0 }
 0x1fc   : > { %v1128_v5 = vadd.f32 %v1107_v40, %v1032_v8 }
 0x1fd   : > { %1137 = vst.msk [vmem:[%s1700_s9 + $0x18] sm:$0xff] %vm370_vm3, %v1129_v43  ;;  %v1291_v60 = vsel %vm370_vm3, %v1129_v43, 0.0  ;;  %v1349_v44 = vmul.f32 %v1129_v43, %v1129_v43 }
 0x1fe   : > { %1292 = vadd.xlane.f32.xlu1 %v1291_v60  ;;  %1136 = vst.msk [vmem:[%s1700_s9 + $0x10] sm:$0xff] %vm370_vm3, %v1128_v5  ;;  %v1288_v59 = vsel %vm370_vm3, %v1128_v5, 0.0  ;;  %v1348_v30 = vmul.f32 %v1128_v5, %v1128_v5 }
 0x1ff   : > { %1289 = vadd.xlane.f32.xlu0 %v1288_v59  ;;  %v1363_v29 = vsel %vm370_vm3, %v1349_v44, 0.0 }
 0x200   : > { %v1019_v42 = vpop.permute.xlu0 %1018  ;;  %v1360_v19 = vsel %vm370_vm3, %v1348_v30, 0.0 }
 0x201   : > { %v1036_v62 = vadd.f32 %v1019_v42, %v940_v53 }
 0x203   : > { %v1132_v3 = vadd.f32 %v1115_v13, %v1036_v62  ;;  %v1113_v1 = vpop.permute.xlu1 %1112 }
 0x204   : > { %v1131_v38 = vadd.f32 %v1113_v1, %v1035_v32 }
 0x205   : > { %1140 = vst.msk [vmem:[%s1700_s9 + $0x30] sm:$0xff] %vm370_vm3, %v1132_v3  ;;  %v1300_v46 = vsel %vm370_vm3, %v1132_v3, 0.0  ;;  %v1352_v53 = vmul.f32 %v1132_v3, %v1132_v3 }
 0x206   : > { %1301 = vadd.xlane.f32.xlu1 %v1300_v46  ;;  %1139 = vst.msk [vmem:[%s1700_s9 + $0x28] sm:$0xff] %vm370_vm3, %v1131_v38  ;;  %v1297_v41 = vsel %vm370_vm3, %v1131_v38, 0.0  ;;  %v1351_v15 = vmul.f32 %v1131_v38, %v1131_v38 }
 0x207   : > { %1298 = vadd.xlane.f32.xlu0 %v1297_v41  ;;  %v1372_v61 = vsel %vm370_vm3, %v1352_v53, 0.0 }
 0x208   : > { %v1105_v16 = vpop.permute.xlu0 %1104  ;;  %v1369_v47 = vsel %vm370_vm3, %v1351_v15, 0.0 }
 0x209   : > { %v1127_v22 = vadd.f32 %v1105_v16, %v1031_v2 }
 0x20b   : > { %1135 = vst.msk [vmem:[%s1700_s9 + $0x8] sm:$0xff] %vm370_vm3, %v1127_v22  ;;  %v1285_v33 = vsel %vm370_vm3, %v1127_v22, 0.0  ;;  %v1347_v6 = vmul.f32 %v1127_v22, %v1127_v22 }
 0x20c   : > { %1286 = vadd.xlane.f32.xlu2 %v1285_v33 }
 0x20d   : > { %v1357_v18 = vsel %vm370_vm3, %v1347_v6, 0.0 }
 0x20e   : > { %1358 = vadd.xlane.f32.xlu1 %v1357_v18  ;;  %v1142_v18 = vld [vmem:[#allocation3] sm:$0xf] }
 0x20f   : > { %1355 = vadd.xlane.f32.xlu0 %v1354_v24 }
 0x210   : > { %v1111_v63 = vpop.permute.xlu0 %1110 }
 0x211   : > { %v1130_v45 = vadd.f32 %v1111_v63, %v1034_v48 }
 0x213   : > { %1138 = vst.msk [vmem:[%s1700_s9 + $0x20] sm:$0xff] %vm370_vm3, %v1130_v45  ;;  %v1294_v55 = vsel %vm370_vm3, %v1130_v45, 0.0  ;;  %v1350_v50 = vmul.f32 %v1130_v45, %v1130_v45 }
 0x214   : > { %1295 = vadd.xlane.f32.xlu2 %v1294_v55 }
 0x215   : > { %v1366_v31 = vsel %vm370_vm3, %v1350_v50, 0.0 }
 0x216   : > { %1367 = vadd.xlane.f32.xlu1 %v1366_v31 }
 0x217   : > { %1364 = vadd.xlane.f32.xlu0 %v1363_v29 }
 0x218   : > { %v1117_v51 = vpop.permute.xlu0 %1116 }
 0x219   : > { %v1133_v14 = vadd.f32 %v1117_v51, %v1037_v9 }
 0x21b   : > { %1141 = vst.msk [vmem:[%s1700_s9 + $0x38] sm:$0xff] %vm370_vm3, %v1133_v14  ;;  %v1303_v36 = vsel %vm370_vm3, %v1133_v14, 0.0  ;;  %v1353_v52 = vmul.f32 %v1133_v14, %v1133_v14 }
 0x21c   : > { %1304 = vadd.xlane.f32.xlu2 %v1303_v36 }
 0x21d   : > { %v1375_v12 = vsel %vm370_vm3, %v1353_v52, 0.0 }
 0x21e   : > { %1376 = vadd.xlane.f32.xlu1 %v1375_v12 }
 0x21f   : > { %1373 = vadd.xlane.f32.xlu0 %v1372_v61 }
 0x224   : > { %1361 = vadd.xlane.f32.xlu2 %v1360_v19 }
 0x22c   : > { %1370 = vadd.xlane.f32.xlu2 %v1369_v47 }
 0x22e   : > { %v1145_v27 = vpop.xlane.xlu1 %1144 }
 0x236   : > { %v1157_v21 = vpop.xlane.xlu1 %1156 }
 0x23d   : > { %v1148_v28 = vpop.xlane.xlu2 %1147 }
 0x23e   : > { %v1167_v4 = vadd.f32 %v1148_v28, %v1145_v27  ;;  %v1166_v35 = vpop.xlane.xlu1 %1165 }
 0x240   : > { %v1168_v37 = vrot.slane %v1167_v4, 4 }
 0x242   : > { %v1169_v39 = vadd.f32 %v1168_v37, %v1167_v4 }
 0x243   : > { %v1151_v17 = vpop.xlane.xlu0 %1150 }
 0x244   : > { %v1170_v26 = vrot.slane %v1169_v39, 2 }
 0x245   : > { %v1154_v11 = vpop.xlane.xlu2 %1153 }
 0x246   : > { %v1174_v10 = vadd.f32 %v1154_v11, %v1151_v17  ;;  %v1171_v8 = vadd.f32 %v1170_v26, %v1169_v39  ;;  %v1226_v40 = vpop.xlane.xlu1 %1225 }
 0x248   : > { %v1175_v58 = vrot.slane %v1174_v10, 4  ;;  %v1172_v3 = vrot.slane %v1171_v8, 1 }
 0x24a   : > { %v1176_v54 = vadd.f32 %v1175_v58, %v1174_v10  ;;  %v1173_v16 = vadd.f32 %v1172_v3, %v1171_v8 }
 0x24b   : > { %v1163_v34 = vpop.xlane.xlu0 %1162 }
 0x24c   : > { %v1177_v7 = vrot.slane %v1176_v54, 2  ;;  %v1188_v20 = vadd.f32 %v1166_v35, %v1163_v34 }
 0x24d   : > { %v1160_v49 = vpop.xlane.xlu2 %1159 }
 0x24e   : > { %v1189_v25 = vrot.slane %v1188_v20, 4  ;;  %v1181_v56 = vadd.f32 %v1160_v49, %v1157_v21  ;;  %v1178_v57 = vadd.f32 %v1177_v7, %v1176_v54  ;;  %v1235_v48 = vpop.xlane.xlu1 %1234 }
 0x250   : > { %v1190_v23 = vadd.f32 %v1189_v25, %v1188_v20  ;;  %v1182_v43 = vrot.slane %v1181_v56, 4  ;;  %v1179_v59 = vrot.slane %v1178_v57, 1 }
 0x252   : > { %v1191_v5 = vrot.slane %v1190_v23, 2  ;;  %v1183_v60 = vadd.f32 %v1182_v43, %v1181_v56  ;;  %v1180_v46 = vadd.f32 %v1179_v59, %v1178_v57 }
 0x253   : > { %v1223_v42 = vpop.xlane.xlu0 %1222 }
 0x254   : > { %v1192_v62 = vadd.f32 %v1191_v5, %v1190_v23  ;;  %v1184_v13 = vrot.slane %v1183_v60, 2  ;;  %v1200_v0 = vsel %vm1199_vm7, %v1180_v46, %v1173_v16 }
 0x255   : > { %v1220_v32 = vpop.xlane.xlu2 %1219 }
 0x256   : > { %v1185_v1 = vadd.f32 %v1184_v13, %v1183_v60  ;;  %v1242_v38 = vadd.f32 %v1223_v42, %v1220_v32  ;;  %v1193_v2 = vrot.slane %v1192_v62, 1 }
 0x258   : > { %v1186_v41 = vrot.slane %v1185_v1, 1  ;;  %v1243_v33 = vrot.slane %v1242_v38, 4  ;;  %v1194_v6 = vadd.f32 %v1193_v2, %v1192_v62 }
 0x25a   : > { %v1187_v22 = vadd.f32 %v1186_v41, %v1185_v1  ;;  %v1244_v31 = vadd.f32 %v1243_v33, %v1242_v38 }
 0x25b   : > { %v1232_v24 = vpop.xlane.xlu0 %1231 }
 0x25c   : > { %v1202_v63 = vsel %vm1201_vm8, %v1187_v22, %v1200_v0  ;;  %v1256_v45 = vadd.f32 %v1235_v48, %v1232_v24  ;;  %v1245_v36 = vrot.slane %v1244_v31, 2 }
 0x25d   : > { %v1204_v55 = vsel %vm1203_vm9, %v1194_v6, %v1202_v63  ;;  %v1229_v44 = vpop.xlane.xlu2 %1228 }
 0x25e   : > { %v1206_v50 = vadd.f32 %v1204_v55, %v1142_v18  ;;  %v1257_v9 = vrot.slane %v1256_v45, 4  ;;  %v1249_v29 = vadd.f32 %v1229_v44, %v1226_v40  ;;  %v1246_v19 = vadd.f32 %v1245_v36, %v1244_v31 }
 0x260   : > { %1208 = vst.msk [vmem:[#allocation3] sm:$0xf] %vm1207_vm10, %v1206_v50  ;;  %v1250_v51 = vrot.slane %v1249_v29, 4  ;;  %v1258_v14 = vadd.f32 %v1257_v9, %v1256_v45  ;;  %v1247_v17 = vrot.slane %v1246_v19, 1 }
 0x262   : > { %v1251_v53 = vadd.f32 %v1250_v51, %v1249_v29  ;;  %v1259_v61 = vrot.slane %v1258_v14, 2  ;;  %v1248_v58 = vadd.f32 %v1247_v17, %v1246_v19 }
 0x263   : > { %v1241_v52 = vpop.xlane.xlu0 %1240 }
 0x264   : > { %v1252_v12 = vrot.slane %v1251_v53, 2  ;;  %v1260_v28 = vadd.f32 %v1259_v61, %v1258_v14 }
 0x265   : > { %v1238_v30 = vpop.xlane.xlu2 %1237 }
 0x266   : > { %v1253_v15 = vadd.f32 %v1252_v12, %v1251_v53  ;;  %v1263_v47 = vadd.f32 %v1241_v52, %v1238_v30  ;;  %v1261_v35 = vrot.slane %v1260_v28, 1 }
 0x267   : > { %v1209_v56 = vld [vmem:[#allocation3] sm:$0xf] }
 0x268   : > { %v1254_v27 = vrot.slane %v1253_v15, 1  ;;  %v1264_v21 = vrot.slane %v1263_v47, 4  ;;  %v1262_v7 = vadd.f32 %v1261_v35, %v1260_v28 }
 0x269   : > { %v1284_v4 = vpop.xlane.xlu1 %1283 }
 0x26a   : > { %v1265_v37 = vadd.f32 %v1264_v21, %v1263_v47  ;;  %v1255_v11 = vadd.f32 %v1254_v27, %v1253_v15 }
 0x26c   : > { %v1266_v10 = vrot.slane %v1265_v37, 2  ;;  %v1274_v54 = vsel %vm1199_vm7, %v1255_v11, %v1248_v58 }
 0x26d   : > { %v1275_v49 = vsel %vm1201_vm8, %v1262_v7, %v1274_v54 }
 0x26e   : > { %v1267_v39 = vadd.f32 %v1266_v10, %v1265_v37 }
 0x270   : > { %v1268_v34 = vrot.slane %v1267_v39, 1 }
 0x271   : > { %v1293_v20 = vpop.xlane.xlu1 %1292 }
 0x272   : > { %v1269_v26 = vadd.f32 %v1268_v34, %v1267_v39  ;;  %v1290_v25 = vpop.xlane.xlu0 %1289 }
 0x273   : > { %v1313_v59 = vadd.f32 %v1293_v20, %v1290_v25 }
 0x274   : > { %v1276_v57 = vsel %vm1203_vm9, %v1269_v26, %v1275_v49 }
 0x275   : > { %v1278_v23 = vadd.f32 %v1276_v57, %v1209_v56  ;;  %v1314_v13 = vrot.slane %v1313_v59, 4 }
 0x277   : > { %1280 = vst.msk [vmem:[#allocation3] sm:$0xf] %vm1279_vm11, %v1278_v23  ;;  %v1315_v46 = vadd.f32 %v1314_v13, %v1313_v59 }
 0x279   : > { %v1302_v43 = vpop.xlane.xlu1 %1301  ;;  %v1316_v33 = vrot.slane %v1315_v46, 2 }
 0x27a   : > { %v1299_v8 = vpop.xlane.xlu0 %1298 }
 0x27b   : > { %v1317_v63 = vadd.f32 %v1316_v33, %v1315_v46 }
 0x27d   : > { %v1318_v14 = vrot.slane %v1317_v63, 1 }
 0x27e   : > { %v1281_v35 = vld [vmem:[#allocation3] sm:$0xf] }
 0x27f   : > { %v1287_v40 = vpop.xlane.xlu2 %1286  ;;  %v1319_v47 = vadd.f32 %v1318_v14, %v1317_v63 }
 0x280   : > { %v1306_v5 = vadd.f32 %v1287_v40, %v1284_v4 }
 0x281   : > { %v1359_v60 = vpop.xlane.xlu1 %1358 }
 0x282   : > { %v1356_v42 = vpop.xlane.xlu0 %1355  ;;  %v1307_v62 = vrot.slane %v1306_v5, 4 }
 0x283   : > { %v1378_v44 = vadd.f32 %v1359_v60, %v1356_v42 }
 0x284   : > { %v1308_v32 = vadd.f32 %v1307_v62, %v1306_v5 }
 0x285   : > { %v1379_v53 = vrot.slane %v1378_v44, 4 }
 0x286   : > { %v1309_v16 = vrot.slane %v1308_v32, 2 }
 0x287   : > { %v1296_v3 = vpop.xlane.xlu2 %1295  ;;  %v1380_v28 = vadd.f32 %v1379_v53, %v1378_v44 }
 0x288   : > { %v1320_v1 = vadd.f32 %v1299_v8, %v1296_v3  ;;  %v1310_v18 = vadd.f32 %v1309_v16, %v1308_v32 }
 0x289   : > { %v1368_v38 = vpop.xlane.xlu1 %1367  ;;  %v1381_v54 = vrot.slane %v1380_v28, 2 }
 0x28a   : > { %v1321_v2 = vrot.slane %v1320_v1, 4  ;;  %v1365_v41 = vpop.xlane.xlu0 %1364  ;;  %v1311_v31 = vrot.slane %v1310_v18, 1 }
 0x28b   : > { %v1382_v56 = vadd.f32 %v1381_v54, %v1380_v28 }
 0x28c   : > { %v1322_v22 = vadd.f32 %v1321_v2, %v1320_v1  ;;  %v1312_v12 = vadd.f32 %v1311_v31, %v1310_v18 }
 0x28d   : > { %v1383_v40 = vrot.slane %v1382_v56, 1 }
 0x28e   : > { %v1323_v0 = vrot.slane %v1322_v22, 2  ;;  %v1338_v4 = vsel %vm1199_vm7, %v1319_v47, %v1312_v12 }
 0x28f   : > { %v1305_v6 = vpop.xlane.xlu2 %1304  ;;  %v1384_v62 = vadd.f32 %v1383_v40, %v1382_v56 }
 0x290   : > { %v1327_v48 = vadd.f32 %v1305_v6, %v1302_v43  ;;  %v1324_v24 = vadd.f32 %v1323_v0, %v1322_v22 }
 0x291   : > { %v1377_v55 = vpop.xlane.xlu1 %1376 }
 0x292   : > { %v1328_v45 = vrot.slane %v1327_v48, 4  ;;  %v1374_v50 = vpop.xlane.xlu0 %1373  ;;  %v1325_v29 = vrot.slane %v1324_v24, 1 }
 0x293   : > { %v1399_v51 = vadd.f32 %v1377_v55, %v1374_v50 }
 0x294   : > { %v1329_v9 = vadd.f32 %v1328_v45, %v1327_v48  ;;  %v1326_v19 = vadd.f32 %v1325_v29, %v1324_v24 }
 0x295   : > { %v1400_v15 = vrot.slane %v1399_v51, 4 }
 0x296   : > { %v1330_v36 = vrot.slane %v1329_v9, 2  ;;  %v1339_v11 = vsel %vm1201_vm8, %v1326_v19, %v1338_v4 }
 0x297   : > { %v1362_v52 = vpop.xlane.xlu2 %1361  ;;  %v1401_v10 = vadd.f32 %v1400_v15, %v1399_v51 }
 0x298   : > { %v1331_v61 = vadd.f32 %v1330_v36, %v1329_v9  ;;  %v1385_v30 = vadd.f32 %v1365_v41, %v1362_v52 }
 0x299   : > { %v1402_v26 = vrot.slane %v1401_v10, 2 }
 0x29a   : > { %v1332_v27 = vrot.slane %v1331_v61, 1  ;;  %v1386_v21 = vrot.slane %v1385_v30, 4 }
 0x29b   : > { %v1403_v23 = vadd.f32 %v1402_v26, %v1401_v10 }
 0x29c   : > { %v1333_v17 = vadd.f32 %v1332_v27, %v1331_v61  ;;  %v1387_v37 = vadd.f32 %v1386_v21, %v1385_v30 }
 0x29d   : > { %v1404_v60 = vrot.slane %v1403_v23, 1 }
 0x29e   : > { %v1340_v58 = vsel %vm1203_vm9, %v1333_v17, %v1339_v11  ;;  %v1388_v39 = vrot.slane %v1387_v37, 2 }
 0x29f   : > { %v1342_v34 = vadd.f32 %v1340_v58, %v1281_v35  ;;  %v1371_v7 = vpop.xlane.xlu2 %1370  ;;  %v1405_v3 = vadd.f32 %v1404_v60, %v1403_v23 }
 0x2a0   : > { %v1392_v20 = vadd.f32 %v1371_v7, %v1368_v38  ;;  %v1389_v49 = vadd.f32 %v1388_v39, %v1387_v37 }
 0x2a1   : > { %1344 = vst.msk [vmem:[#allocation3] sm:$0xf] %vm1343_vm12, %v1342_v34 }
 0x2a2   : > { %v1393_v25 = vrot.slane %v1392_v20, 4  ;;  %v1390_v43 = vrot.slane %v1389_v49, 1 }
 0x2a4   : > { %v1394_v57 = vadd.f32 %v1393_v25, %v1392_v20  ;;  %v1391_v59 = vadd.f32 %v1390_v43, %v1389_v49 }
 0x2a6   : > { %v1395_v8 = vrot.slane %v1394_v57, 2  ;;  %v1410_v32 = vsel %vm1199_vm7, %v1391_v59, %v1384_v62 }
 0x2a8   : > { %v1396_v5 = vadd.f32 %v1395_v8, %v1394_v57  ;;  %v1345_v38 = vld [vmem:[#allocation3] sm:$0xf] }
 0x2aa   : > { %v1397_v42 = vrot.slane %v1396_v5, 1 }
 0x2ac   : > { %v1398_v13 = vadd.f32 %v1397_v42, %v1396_v5 }
 0x2ae   : > { %v1411_v1 = vsel %vm1201_vm8, %v1398_v13, %v1410_v32 }
 0x2af   : > { %v1412_v46 = vsel %vm1203_vm9, %v1405_v3, %v1411_v1 }
 0x2b0   : > { %v1414_v2 = vadd.f32 %v1412_v46, %v1345_v38 }
 0x2b2   : > { %1416 = vst.msk [vmem:[#allocation3] sm:$0xf] %vm1415_vm13, %v1414_v2 }
 0x2b9   : > { %v1417_v41 = vld [vmem:[#allocation3] sm:$0xf] }
 0x2ba   : > { %1419 = vst.msk [vmem:[%s2565_s6] sm:$0xf] %vm1418_vm14, %v1417_v41 }
 0x2bb PF: > { %s17_s21 = sadd.s32 1, %s1635_s21  }
 0x2bc   : > { %p14_p5 = scmp.ge.s32.totalorder %s17_s21, 4  }
 0x2be   :  { %16 = sbr.rel (!%p14_p5) target bundleno = 3 (0x3), region = 90 }

// kernel: double_conv.13
= control target key start
LH: loop header
LB: loop body
LE: loop exit
PB: predicated region body
PF: predicated region fallthrough
CT: control target
= control target key end

     0   :  { %s529_s15 = smov 0   ;;  %s531_s16 = smov 0   ;;  %s571_s0 = inlined_call_operand.vmem [shape: f32[2,4,256], index: 0, kind: input, shape index: {}]   ;;  %s572_s1 = inlined_call_operand.vmem [shape: f32[2,4,256], index: 1, kind: input, shape index: {}]   ;;  %s573_s2 = inlined_call_operand.vmem [shape: f32[8,1], index: 2, kind: input, shape index: {}]   ;;  %s574_s3 = inlined_call_operand.vmem [shape: f32[8,1], index: 3, kind: input, shape index: {}]   ;;  %s575_s4 = inlined_call_operand.vmem [shape: f32[2,8,256], index: 4, kind: output, shape index: {}]  }
   0x1   :  { %s533_s17 = smov 0  }
   0x2 LB: > { %s26_s18 = sadd.s32 1, %s495_s16  ;;  %p437_p0 = scmp.ge.s32.totalorder %s499_s17, 1  ;;  %s499_s17 = sphi %s533_s17, %s14_s17   ;;  %s495_s16 = sphi %s531_s16, %s577_s16   ;;  %s491_s15 = sphi %s529_s15, %s576_s15  }
   0x3   : > { %p28_p1 = scmp.ge.s32.totalorder %s26_s18, 2  ;;  %p200_p2 = scmp.lt.s32.totalorder %s499_s17, 3 }
   0x5   : > { %s579_s18 = smov (%p28_p1, %s26_s18), 0  ;;  %p201_p3 = pnand %p437_p0, %p200_p2 }
   0x6   : > { %p244_p4 = scmp.lt.s32.totalorder (!%p201_p3), %s491_s15, 1 }
   0x7   : > { %204 = sbr.rel (%p201_p3) target bundleno = 163 (0xa3), region = 36 }
   0xc   : > { %v273_v0 = vld [vmem:[%s573_s2] sm:$0xff]  ;;  %v501_v1 = vmov 0   ;;  %s581_s15 = smov (!%p244_p4, %s491_s15), 1  ;;  %v502_v3 = vmov 839922192  }
   0xd   : > { %476 = vset.pattern.permute.xlu0 %v501_v1  ;;  %v274_v2 = vld [vmem:[%s574_s3] sm:$0xff]  ;;  %v281_v4 = vunpack.c.l.s4 %v502_v3  ;;  %s446_s23 = sshll.u32 %s581_s15, 3  ;;  %v503_v7 = vmov 1985246804   ;;  %s448_s30 = sshll.u32 %s581_s15, 4 }
   0xe   : > { %278 = vperm.xlu0 %476, %v273_v0   ;;  %s251_s26 = scalar_lea.vmem %s571_s0, %s446_s23  ;;  %v299_v8 = vunpack.c.l.s4 %v503_v7  ;;  %s261_s29 = scalar_lea.vmem %s572_s1, %s446_s23 }
   0xf   : > { %v282_v6 = vunpack.c.0.s8 %v281_v4  ;;  %v275_v10 = vld [vmem:[%s251_s26] sm:$0xff]  ;;  %s271_s7 = scalar_lea.vmem %s575_s4, %s448_s30 }
  0x10   : > { %v300_v12 = vunpack.c.0.s8 %v299_v8  ;;  %v297_v18 = vld [vmem:[%s261_s29] sm:$0xff] }
  0x16   : > { %288 = vperm.xlu0 %476, %v274_v2  }
  0x80   : > { %v279_v5 = vpop.permute.xlu0 %278 }
  0x81   : > { %v283_v9 = vperm.slane %v279_v5, %v282_v6  ;;  %v301_v16 = vperm.slane %v279_v5, %v300_v12 }
  0x83   : > { %v285_v13 = vmul.f32 %v283_v9, %v275_v10  ;;  %v303_v20 = vmul.f32 %v301_v16, %v297_v18 }
  0x88   : > { %v289_v11 = vpop.permute.xlu0 %288 }
  0x89   : > { %v293_v14 = vperm.slane %v289_v11, %v282_v6  ;;  %v307_v19 = vperm.slane %v289_v11, %v300_v12 }
  0x8b   : > { %v295_v15 = vadd.f32 %v293_v14, %v285_v13  ;;  %v309_v21 = vadd.f32 %v307_v19, %v303_v20 }
  0x8d   : > { %v296_v17 = vmax.f32 %v295_v15, 0.0  ;;  %v310_v24 = vmax.f32 %v309_v21, 0.0 }
  0x8f   : > { %312 = vst [vmem:[#allocation1] ss:$2 sm:$0xff] %v296_v17 }
  0x96   : > { %v313_v22 = vld.sshfl [vmem:[#allocation1] sm:$0xff pattern:$0x75316420]  ;;  %v314_v23 = vld.sshfl [vmem:[#allocation1 + $0x8] sm:$0xff pattern:$0x75316420] }
  0x97   : > { %317 = vst [vmem:[%s271_s7] sm:$0xf] %v313_v22 }
  0x98   : > { %318 = vst [vmem:[%s271_s7 + $0x8] sm:$0xf] %v314_v23 }
  0x99   : > { %321 = vst [vmem:[#allocation1 + $0x1] ss:$2 sm:$0xff] %v310_v24 }
  0xa0   : > { %v322_v25 = vld.sshfl [vmem:[#allocation1] sm:$0xff pattern:$0x75316420]  ;;  %v323_v26 = vld.sshfl [vmem:[#allocation1 + $0x8] sm:$0xff pattern:$0x75316420] }
  0xa1   : > { %326 = vst [vmem:[%s271_s7] sm:$0xf0] %v322_v25 }
  0xa2   : > { %327 = vst [vmem:[%s271_s7 + $0x8] sm:$0xf0] %v323_v26 }
  0xa3 PF: > { %s14_s17 = sadd.s32 1, %s499_s17   ;;  %s576_s15 = smov %s495_s16 }
  0xa4   : > { %p11_p5 = scmp.ge.s32.totalorder %s14_s17, 4   ;;  %s577_s16 = smov %s579_s18 }
  0xa6   :  { %13 = sbr.rel (!%p11_p5) target bundleno = 2 (0x2), region = 70 }

</bundles_post_ra>
